<compile_context>
chip_gen: v7x
topology: tpu7x:2x2x1
jax: 0.10.0
libtpu: 0.0.40
codegen_flags: <defaults>
</compile_context>

<pallas_src>
import functools
import math

import jax
import jax.numpy as jnp
from jax.experimental import pallas as pl
from jax.experimental.pallas import tpu as pltpu

_LN_EPS = 1e-6


# --------------------------------------------------------------------------
# Kernel 1: fused q/kv projection + multi-head softmax attention (per batch)
# --------------------------------------------------------------------------
def _proj_attn_kernel(x_ref, w_ref, b_ref, ctx_ref, ident_ref, *, num_heads, scale):
    _, n, c = x_ref.shape
    d = c // num_heads

    x = x_ref[0].astype(jnp.float32)                                  # (N, C)
    qkv = jnp.dot(x, w_ref[...].astype(jnp.float32),
                  preferred_element_type=jnp.float32)                 # (N, 3C)
    qkv = qkv + b_ref[...].astype(jnp.float32)

    # Identity branch == the v columns of the projection, already channels-last.
    # (lane-aligned slice: offset 2C is a multiple of 128)
    ident_ref[0] = qkv[:, 2 * c:].astype(ident_ref.dtype)

    # Per-head attention; static Python loop (unrolled), results concatenated
    # into one lane-dense (N, C) store.
    heads = []
    for h in range(num_heads):
        q_h = qkv[:, h * d:(h + 1) * d] * scale                       # pre-scale q
        k_h = qkv[:, c + h * d: c + (h + 1) * d]
        v_h = qkv[:, 2 * c + h * d: 2 * c + (h + 1) * d]
        s = jnp.einsum("qd,kd->qk", q_h, k_h,
                       preferred_element_type=jnp.float32)            # (N, N)
        s = s - jnp.max(s, axis=-1, keepdims=True)
        p = jnp.exp(s)
        p = p * pl.reciprocal(jnp.sum(p, axis=-1, keepdims=True), approx=True)
        heads.append(jnp.dot(p, v_h, preferred_element_type=jnp.float32))
    ctx_ref[0] = jnp.concatenate(heads, axis=-1).astype(ctx_ref.dtype)


def _proj_attn_pallas(x, wqkv, bqkv, *, num_heads, scale):
    b, n, c = x.shape
    kernel = functools.partial(_proj_attn_kernel, num_heads=num_heads, scale=scale)
    ctx, ident = pl.pallas_call(
        kernel,
        out_shape=(jax.ShapeDtypeStruct((b, n, c), x.dtype),
                   jax.ShapeDtypeStruct((b, n, c), x.dtype)),
        grid_spec=pltpu.PrefetchScalarGridSpec(
            num_scalar_prefetch=0,
            grid=(b,),
            in_specs=[
                pl.BlockSpec((1, n, c), lambda i: (i, 0, 0)),          # x row block
                pl.BlockSpec((c, 3 * c), lambda i: (0, 0)),            # fused qkv weight
                pl.BlockSpec((1, 3 * c), lambda i: (0, 0)),            # fused qkv bias
            ],
            out_specs=[
                pl.BlockSpec((1, n, c), lambda i: (i, 0, 0)),          # ctx (lane-dense)
                pl.BlockSpec((1, n, c), lambda i: (i, 0, 0)),          # identity branch
            ],
        ),
        compiler_params=pltpu.CompilerParams(
            dimension_semantics=("parallel",),
        ),
    )(x, wqkv, bqkv.reshape(1, 3 * c))
    return ctx, ident


# --------------------------------------------------------------------------
# Kernel 2: depthwise 3x3 conv + LayerNorm + residual add + projection
# --------------------------------------------------------------------------
def _up_ln_proj_kernel(ident_ref, ctx_ref, wup_ref, bup_ref, g_ref, beta_ref,
                       wp_ref, bp_ref, o_ref):
    _, hp2, wp2, c = ident_ref.shape
    h_out, w_out = hp2 - 2, wp2 - 2
    n = h_out * w_out

    # Depthwise 3x3: 9 shifted taps on the VPU, channels on the lane dim.
    # TODO(synk): at production image sizes, do the dx taps with pltpu.roll on
    # the W (sublane) axis instead of unaligned pl.ds slices.
    acc = jnp.zeros((h_out, w_out, c), jnp.float32)
    for dy in range(3):
        for dx in range(3):
            tap = ident_ref[0, pl.ds(dy, h_out), pl.ds(dx, w_out), :].astype(jnp.float32)
            w_tap = wup_ref[dy * 3 + dx].astype(jnp.float32).reshape(1, 1, c)
            acc = acc + tap * w_tap
    up = acc.reshape(n, c) + bup_ref[...].astype(jnp.float32)

    # LayerNorm(eps=1e-6) over channels.
    mean = jnp.mean(up, axis=-1, keepdims=True)
    cent = up - mean
    var = jnp.mean(cent * cent, axis=-1, keepdims=True)
    ln = cent * jax.lax.rsqrt(var + _LN_EPS)
    ln = ln * g_ref[...].astype(jnp.float32) + beta_ref[...].astype(jnp.float32)

    # Residual add + output projection (MXU, f32 accumulation).
    y = ctx_ref[0].astype(jnp.float32) + ln
    out = jnp.dot(y, wp_ref[...].astype(jnp.float32),
                  preferred_element_type=jnp.float32)
    out = out + bp_ref[...].astype(jnp.float32)
    o_ref[0] = out.astype(o_ref.dtype)


def _up_ln_proj_pallas(ident_pad, ctx, w_up9c, b_up, gamma, beta, wp, bp):
    b, hp2, wp2, c = ident_pad.shape
    n = ctx.shape[1]
    return pl.pallas_call(
        _up_ln_proj_kernel,
        out_shape=jax.ShapeDtypeStruct((b, n, c), ctx.dtype),
        grid_spec=pltpu.PrefetchScalarGridSpec(
            num_scalar_prefetch=0,
            grid=(b,),
            in_specs=[
                pl.BlockSpec((1, hp2, wp2, c), lambda i: (i, 0, 0, 0)),  # padded identity
                pl.BlockSpec((1, n, c), lambda i: (i, 0, 0)),            # attention ctx
                pl.BlockSpec((9, c), lambda i: (0, 0)),                  # dw conv taps
                pl.BlockSpec((1, c), lambda i: (0, 0)),                  # dw conv bias
                pl.BlockSpec((1, c), lambda i: (0, 0)),                  # LN gamma
                pl.BlockSpec((1, c), lambda i: (0, 0)),                  # LN beta
                pl.BlockSpec((c, c), lambda i: (0, 0)),                  # proj weight
                pl.BlockSpec((1, c), lambda i: (0, 0)),                  # proj bias
            ],
            out_specs=pl.BlockSpec((1, n, c), lambda i: (i, 0, 0)),
        ),
        compiler_params=pltpu.CompilerParams(
            dimension_semantics=("parallel",),
        ),
    )(ident_pad, ctx, w_up9c, b_up.reshape(1, c), gamma.reshape(1, c),
      beta.reshape(1, c), wp, bp.reshape(1, c))


# --------------------------------------------------------------------------
# Full forward pass
# --------------------------------------------------------------------------
def attention_pallas(x, H, W, params, *, num_heads, sr_ratio=1):
    """x: (B, N, C) with N == H*W. Weights are stored (in_features, out_features)."""
    if sr_ratio != 1:
        # TODO(synk): sr_ratio > 1 path (strided depthwise `sr` conv + sr_norm + PixelShuffle upsample) not implemented.
        raise NotImplementedError("only sr_ratio == 1 (the module default) is implemented")
    B, N, C = x.shape
    assert N == H * W and C % num_heads == 0
    d = C // num_heads
    scale = float(d) ** -0.5

    # Fused q + kv projection weights: columns are [q | k | v], each C wide.
    wqkv = jnp.concatenate([params["wq"], params["wkv"]], axis=1)    # (C, 3C)
    bqkv = jnp.concatenate([params["bq"], params["bkv"]], axis=0)    # (3C,)

    # Kernel 1: projection + attention. ctx and ident are both (B, N, C), lane-dense.
    ctx, ident = _proj_attn_pallas(x, wqkv, bqkv, num_heads=num_heads, scale=scale)

    # Identity branch is already channels-last; only a free reshape + halo pad remain.
    ident_hwc = ident.reshape(B, H, W, C)
    ident_pad = jnp.pad(ident_hwc, ((0, 0), (1, 1), (1, 1), (0, 0)))

    # Kernel 2: depthwise conv + LayerNorm + residual + projection.
    out = _up_ln_proj_pallas(ident_pad, ctx, params["w_up"].reshape(9, C),
                             params["b_up"], params["gamma"], params["beta"],
                             params["wp"], params["bp"])
    return out


# --------------------------------------------------------------------------
# Pure-JAX reference (mirrors the PyTorch forward exactly, sr_ratio == 1)
# --------------------------------------------------------------------------
def attention_ref(x, H, W, params, *, num_heads):
    B, N, C = x.shape
    d = C // num_heads
    scale = float(d) ** -0.5
    with jax.default_matmul_precision("highest"):
        q = jnp.matmul(x, params["wq"]) + params["bq"]
        q = q.reshape(B, N, num_heads, d).transpose(0, 2, 1, 3)
        kv = jnp.matmul(x, params["wkv"]) + params["bkv"]
        kv = kv.reshape(B, N, 2, num_heads, d).transpose(2, 0, 3, 1, 4)
        k, v = kv[0], kv[1]
        attn = jnp.matmul(q, jnp.swapaxes(k, -2, -1)) * scale
        attn = jax.nn.softmax(attn, axis=-1)
        ctx = jnp.swapaxes(jnp.matmul(attn, v), 1, 2).reshape(B, N, C)

        ident = jnp.transpose(jnp.swapaxes(v, -1, -2).reshape(B, C, H, W), (0, 2, 3, 1))
        w_hwio = params["w_up"][:, :, None, :]                      # (3, 3, 1, C)
        up = jax.lax.conv_general_dilated(
            ident, w_hwio, window_strides=(1, 1), padding=((1, 1), (1, 1)),
            dimension_numbers=("NHWC", "HWIO", "NHWC"),
            feature_group_count=C) + params["b_up"]
        up = up.reshape(B, N, C)

        mean = jnp.mean(up, axis=-1, keepdims=True)
        var = jnp.mean((up - mean) ** 2, axis=-1, keepdims=True)
        ln = (up - mean) * jax.lax.rsqrt(var + _LN_EPS)
        ln = ln * params["gamma"] + params["beta"]
        out = jnp.matmul(ctx + ln, params["wp"]) + params["bp"]
    return out


if __name__ == "__main__":
    key = jax.random.PRNGKey(0)
    B, Himg, Wimg, dim, num_heads = 2, 8, 8, 128, 8   # N = 64 tokens, head_dim = 16
    N = Himg * Wimg
    keys = jax.random.split(key, 11)

    def u(k, shape, bound):
        return jax.random.uniform(k, shape, jnp.float32, -bound, bound)

    bound = 1.0 / math.sqrt(dim)
    params = {
        "wq":    u(keys[0], (dim, dim), bound),          # (in, out) layout
        "bq":    u(keys[1], (dim,), bound),
        "wkv":   u(keys[2], (dim, 2 * dim), bound),
        "bkv":   u(keys[3], (2 * dim,), bound),
        "w_up":  u(keys[4], (3, 3, dim), 1.0 / 3.0),     # depthwise 3x3: [ky, kx, channel]
        "b_up":  u(keys[5], (dim,), 1.0 / 3.0),
        "gamma": 1.0 + 0.1 * jax.random.normal(keys[6], (dim,), jnp.float32),
        "beta":  0.1 * jax.random.normal(keys[7], (dim,), jnp.float32),
        "wp":    u(keys[8], (dim, dim), bound),
        "bp":    u(keys[9], (dim,), bound),
    }
    x = jax.random.normal(keys[10], (B, N, dim), jnp.float32)

    fwd = jax.jit(attention_pallas, static_argnums=(1, 2),
                  static_argnames=("num_heads", "sr_ratio"))
    out = fwd(x, Himg, Wimg, params, num_heads=num_heads, sr_ratio=1)
    out = jax.block_until_ready(out)

    ref = attention_ref(x, Himg, Wimg, params, num_heads=num_heads)
    assert out.shape == (B, N, dim)
    max_err = float(jnp.max(jnp.abs(out - ref)))
    assert jnp.allclose(out, ref, atol=2e-3, rtol=2e-3), f"mismatch vs reference: {max_err}"

    print("KERNEL_OK")
</pallas_src>

<mosaic_0001>
module attributes {stable_mosaic.version = 11 : i64} {
  func.func @_proj_attn_kernel(%arg0: i32, %arg1: memref<1x64x128xf32, #tpu.memory_space<vmem>>, %arg2: memref<128x384xf32, #tpu.memory_space<vmem>>, %arg3: memref<1x384xf32, #tpu.memory_space<vmem>>, %arg4: memref<1x64x128xf32, #tpu.memory_space<vmem>>, %arg5: memref<1x64x128xf32, #tpu.memory_space<vmem>>) attributes {dimension_semantics = [#tpu.dimension_semantics<parallel>], iteration_bounds = array<i64: 2>, scalar_prefetch = 0 : i64, scratch_operands = 0 : i64, tpu.core_type = #tpu.core_type<tc>, window_params = [{transform_indices = @transform_0, window_bounds = array<i64: 1, 64, 128>}, {pipeline_mode = #tpu.pipeline_mode<synchronous>, transform_indices = @transform_1, window_bounds = array<i64: 128, 384>}, {pipeline_mode = #tpu.pipeline_mode<synchronous>, transform_indices = @transform_2, window_bounds = array<i64: 1, 384>}, {transform_indices = @transform_3, window_bounds = array<i64: 1, 64, 128>}, {transform_indices = @transform_4, window_bounds = array<i64: 1, 64, 128>}]} {
    %c0 = arith.constant 0 : index
    %c0_0 = arith.constant 0 : index
    %c0_1 = arith.constant 0 : index
    %0 = vector.load %arg1[%c0, %c0_0, %c0_1] : memref<1x64x128xf32, #tpu.memory_space<vmem>>, vector<1x64x128xf32>
    %1 = vector.shape_cast %0 : vector<1x64x128xf32> to vector<64x128xf32>
    %c0_2 = arith.constant 0 : index
    %c0_3 = arith.constant 0 : index
    %2 = vector.load %arg2[%c0_2, %c0_3] : memref<128x384xf32, #tpu.memory_space<vmem>>, vector<128x384xf32>
    %cst = arith.constant dense<0.000000e+00> : vector<64x384xf32>
    %3 = tpu.matmul %1, %2, %cst {dimension_numbers = #tpu.dot_dimension_numbers<[1], [0], [0], [1], [0, 0, 1, 1], [], []>} : vector<64x128xf32>, vector<128x384xf32>, vector<64x384xf32> -> vector<64x384xf32>
    %c0_4 = arith.constant 0 : index
    %c0_5 = arith.constant 0 : index
    %4 = vector.load %arg3[%c0_4, %c0_5] : memref<1x384xf32, #tpu.memory_space<vmem>>, vector<1x384xf32>
    %5 = vector.broadcast %4 : vector<1x384xf32> to vector<64x384xf32>
    %6 = arith.addf %3, %5 : vector<64x384xf32>
    %7 = vector.extract_strided_slice %6 {offsets = [0, 256], sizes = [64, 128], strides = [1, 1]} : vector<64x384xf32> to vector<64x128xf32>
    %c0_6 = arith.constant 0 : index
    %c0_7 = arith.constant 0 : index
    %c0_8 = arith.constant 0 : index
    %8 = vector.load %arg5[%c0_6, %c0_7, %c0_8] : memref<1x64x128xf32, #tpu.memory_space<vmem>>, vector<1x64x128xf32>
    %9 = vector.shape_cast %8 : vector<1x64x128xf32> to vector<64x128xf32>
    %10 = vector.shape_cast %7 : vector<64x128xf32> to vector<1x64x128xf32>
    tpu.vector_store %arg5[%c0_6, %c0_7, %c0_8], %10 {strides = array<i32>} : memref<1x64x128xf32, #tpu.memory_space<vmem>>, vector<1x64x128xf32>,
    %11 = vector.extract_strided_slice %6 {offsets = [0, 0], sizes = [64, 16], strides = [1, 1]} : vector<64x384xf32> to vector<64x16xf32>
    %cst_9 = arith.constant 2.500000e-01 : f32
    %12 = vector.broadcast %cst_9 : f32 to vector<64x16xf32>
    %13 = arith.mulf %11, %12 : vector<64x16xf32>
    %14 = vector.extract_strided_slice %6 {offsets = [0, 128], sizes = [64, 16], strides = [1, 1]} : vector<64x384xf32> to vector<64x16xf32>
    %15 = vector.extract_strided_slice %6 {offsets = [0, 256], sizes = [64, 16], strides = [1, 1]} : vector<64x384xf32> to vector<64x16xf32>
    "tpu.trace_start"() <{level = 10 : i32, message = "qd,kd->qk"}> : () -> ()
    %cst_10 = arith.constant dense<0.000000e+00> : vector<64x64xf32>
    %16 = tpu.matmul %13, %14, %cst_10 {dimension_numbers = #tpu.dot_dimension_numbers<[1], [1], [0], [0], [0, 0, 1, 0], [], []>} : vector<64x16xf32>, vector<64x16xf32>, vector<64x64xf32> -> vector<64x64xf32>
    "tpu.trace_stop"() : () -> ()
    %cst_11 = arith.constant dense<0xFF800000> : vector<64xf32>
    %17 = vector.multi_reduction <maximumf>, %16, %cst_11 [1] : vector<64x64xf32> to vector<64xf32>
    %18 = vector.shape_cast %17 : vector<64xf32> to vector<64x1xf32>
    %19 = vector.broadcast %18 : vector<64x1xf32> to vector<64x64xf32>
    %20 = arith.subf %16, %19 : vector<64x64xf32>
    %21 = math.exp %20 : vector<64x64xf32>
    %cst_12 = arith.constant dense<0.000000e+00> : vector<64xf32>
    %22 = vector.multi_reduction <add>, %21, %cst_12 [1] : vector<64x64xf32> to vector<64xf32>
    %23 = vector.shape_cast %22 : vector<64xf32> to vector<64x1xf32>
    %24 = tpu.reciprocal %23 {approx = true} : vector<64x1xf32> -> vector<64x1xf32>
    %25 = vector.broadcast %24 : vector<64x1xf32> to vector<64x64xf32>
    %26 = arith.mulf %21, %25 : vector<64x64xf32>
    %cst_13 = arith.constant dense<0.000000e+00> : vector<64x16xf32>
    %27 = tpu.matmul %26, %15, %cst_13 {dimension_numbers = #tpu.dot_dimension_numbers<[1], [0], [0], [1], [0, 0, 1, 1], [], []>} : vector<64x64xf32>, vector<64x16xf32>, vector<64x16xf32> -> vector<64x16xf32>
    %28 = vector.extract_strided_slice %6 {offsets = [0, 16], sizes = [64, 16], strides = [1, 1]} : vector<64x384xf32> to vector<64x16xf32>
    %cst_14 = arith.constant 2.500000e-01 : f32
    %29 = vector.broadcast %cst_14 : f32 to vector<64x16xf32>
    %30 = arith.mulf %28, %29 : vector<64x16xf32>
    %31 = vector.extract_strided_slice %6 {offsets = [0, 144], sizes = [64, 16], strides = [1, 1]} : vector<64x384xf32> to vector<64x16xf32>
    %32 = vector.extract_strided_slice %6 {offsets = [0, 272], sizes = [64, 16], strides = [1, 1]} : vector<64x384xf32> to vector<64x16xf32>
    "tpu.trace_start"() <{level = 10 : i32, message = "qd,kd->qk"}> : () -> ()
    %cst_15 = arith.constant dense<0.000000e+00> : vector<64x64xf32>
    %33 = tpu.matmul %30, %31, %cst_15 {dimension_numbers = #tpu.dot_dimension_numbers<[1], [1], [0], [0], [0, 0, 1, 0], [], []>} : vector<64x16xf32>, vector<64x16xf32>, vector<64x64xf32> -> vector<64x64xf32>
    "tpu.trace_stop"() : () -> ()
    %cst_16 = arith.constant dense<0xFF800000> : vector<64xf32>
    %34 = vector.multi_reduction <maximumf>, %33, %cst_16 [1] : vector<64x64xf32> to vector<64xf32>
    %35 = vector.shape_cast %34 : vector<64xf32> to vector<64x1xf32>
    %36 = vector.broadcast %35 : vector<64x1xf32> to vector<64x64xf32>
    %37 = arith.subf %33, %36 : vector<64x64xf32>
    %38 = math.exp %37 : vector<64x64xf32>
    %cst_17 = arith.constant dense<0.000000e+00> : vector<64xf32>
    %39 = vector.multi_reduction <add>, %38, %cst_17 [1] : vector<64x64xf32> to vector<64xf32>
    %40 = vector.shape_cast %39 : vector<64xf32> to vector<64x1xf32>
    %41 = tpu.reciprocal %40 {approx = true} : vector<64x1xf32> -> vector<64x1xf32>
    %42 = vector.broadcast %41 : vector<64x1xf32> to vector<64x64xf32>
    %43 = arith.mulf %38, %42 : vector<64x64xf32>
    %cst_18 = arith.constant dense<0.000000e+00> : vector<64x16xf32>
    %44 = tpu.matmul %43, %32, %cst_18 {dimension_numbers = #tpu.dot_dimension_numbers<[1], [0], [0], [1], [0, 0, 1, 1], [], []>} : vector<64x64xf32>, vector<64x16xf32>, vector<64x16xf32> -> vector<64x16xf32>
    %45 = vector.extract_strided_slice %6 {offsets = [0, 32], sizes = [64, 16], strides = [1, 1]} : vector<64x384xf32> to vector<64x16xf32>
    %cst_19 = arith.constant 2.500000e-01 : f32
    %46 = vector.broadcast %cst_19 : f32 to vector<64x16xf32>
    %47 = arith.mulf %45, %46 : vector<64x16xf32>
    %48 = vector.extract_strided_slice %6 {offsets = [0, 160], sizes = [64, 16], strides = [1, 1]} : vector<64x384xf32> to vector<64x16xf32>
    %49 = vector.extract_strided_slice %6 {offsets = [0, 288], sizes = [64, 16], strides = [1, 1]} : vector<64x384xf32> to vector<64x16xf32>
    "tpu.trace_start"() <{level = 10 : i32, message = "qd,kd->qk"}> : () -> ()
    %cst_20 = arith.constant dense<0.000000e+00> : vector<64x64xf32>
    %50 = tpu.matmul %47, %48, %cst_20 {dimension_numbers = #tpu.dot_dimension_numbers<[1], [1], [0], [0], [0, 0, 1, 0], [], []>} : vector<64x16xf32>, vector<64x16xf32>, vector<64x64xf32> -> vector<64x64xf32>
    "tpu.trace_stop"() : () -> ()
    %cst_21 = arith.constant dense<0xFF800000> : vector<64xf32>
    %51 = vector.multi_reduction <maximumf>, %50, %cst_21 [1] : vector<64x64xf32> to vector<64xf32>
    %52 = vector.shape_cast %51 : vector<64xf32> to vector<64x1xf32>
    %53 = vector.broadcast %52 : vector<64x1xf32> to vector<64x64xf32>
    %54 = arith.subf %50, %53 : vector<64x64xf32>
    %55 = math.exp %54 : vector<64x64xf32>
    %cst_22 = arith.constant dense<0.000000e+00> : vector<64xf32>
    %56 = vector.multi_reduction <add>, %55, %cst_22 [1] : vector<64x64xf32> to vector<64xf32>
    %57 = vector.shape_cast %56 : vector<64xf32> to vector<64x1xf32>
    %58 = tpu.reciprocal %57 {approx = true} : vector<64x1xf32> -> vector<64x1xf32>
    %59 = vector.broadcast %58 : vector<64x1xf32> to vector<64x64xf32>
    %60 = arith.mulf %55, %59 : vector<64x64xf32>
    %cst_23 = arith.constant dense<0.000000e+00> : vector<64x16xf32>
    %61 = tpu.matmul %60, %49, %cst_23 {dimension_numbers = #tpu.dot_dimension_numbers<[1], [0], [0], [1], [0, 0, 1, 1], [], []>} : vector<64x64xf32>, vector<64x16xf32>, vector<64x16xf32> -> vector<64x16xf32>
    %62 = vector.extract_strided_slice %6 {offsets = [0, 48], sizes = [64, 16], strides = [1, 1]} : vector<64x384xf32> to vector<64x16xf32>
    %cst_24 = arith.constant 2.500000e-01 : f32
    %63 = vector.broadcast %cst_24 : f32 to vector<64x16xf32>
    %64 = arith.mulf %62, %63 : vector<64x16xf32>
    %65 = vector.extract_strided_slice %6 {offsets = [0, 176], sizes = [64, 16], strides = [1, 1]} : vector<64x384xf32> to vector<64x16xf32>
    %66 = vector.extract_strided_slice %6 {offsets = [0, 304], sizes = [64, 16], strides = [1, 1]} : vector<64x384xf32> to vector<64x16xf32>
    "tpu.trace_start"() <{level = 10 : i32, message = "qd,kd->qk"}> : () -> ()
    %cst_25 = arith.constant dense<0.000000e+00> : vector<64x64xf32>
    %67 = tpu.matmul %64, %65, %cst_25 {dimension_numbers = #tpu.dot_dimension_numbers<[1], [1], [0], [0], [0, 0, 1, 0], [], []>} : vector<64x16xf32>, vector<64x16xf32>, vector<64x64xf32> -> vector<64x64xf32>
    "tpu.trace_stop"() : () -> ()
    %cst_26 = arith.constant dense<0xFF800000> : vector<64xf32>
    %68 = vector.multi_reduction <maximumf>, %67, %cst_26 [1] : vector<64x64xf32> to vector<64xf32>
    %69 = vector.shape_cast %68 : vector<64xf32> to vector<64x1xf32>
    %70 = vector.broadcast %69 : vector<64x1xf32> to vector<64x64xf32>
    %71 = arith.subf %67, %70 : vector<64x64xf32>
    %72 = math.exp %71 : vector<64x64xf32>
    %cst_27 = arith.constant dense<0.000000e+00> : vector<64xf32>
    %73 = vector.multi_reduction <add>, %72, %cst_27 [1] : vector<64x64xf32> to vector<64xf32>
    %74 = vector.shape_cast %73 : vector<64xf32> to vector<64x1xf32>
    %75 = tpu.reciprocal %74 {approx = true} : vector<64x1xf32> -> vector<64x1xf32>
    %76 = vector.broadcast %75 : vector<64x1xf32> to vector<64x64xf32>
    %77 = arith.mulf %72, %76 : vector<64x64xf32>
    %cst_28 = arith.constant dense<0.000000e+00> : vector<64x16xf32>
    %78 = tpu.matmul %77, %66, %cst_28 {dimension_numbers = #tpu.dot_dimension_numbers<[1], [0], [0], [1], [0, 0, 1, 1], [], []>} : vector<64x64xf32>, vector<64x16xf32>, vector<64x16xf32> -> vector<64x16xf32>
    %79 = vector.extract_strided_slice %6 {offsets = [0, 64], sizes = [64, 16], strides = [1, 1]} : vector<64x384xf32> to vector<64x16xf32>
    %cst_29 = arith.constant 2.500000e-01 : f32
    %80 = vector.broadcast %cst_29 : f32 to vector<64x16xf32>
    %81 = arith.mulf %79, %80 : vector<64x16xf32>
    %82 = vector.extract_strided_slice %6 {offsets = [0, 192], sizes = [64, 16], strides = [1, 1]} : vector<64x384xf32> to vector<64x16xf32>
    %83 = vector.extract_strided_slice %6 {offsets = [0, 320], sizes = [64, 16], strides = [1, 1]} : vector<64x384xf32> to vector<64x16xf32>
    "tpu.trace_start"() <{level = 10 : i32, message = "qd,kd->qk"}> : () -> ()
    %cst_30 = arith.constant dense<0.000000e+00> : vector<64x64xf32>
    %84 = tpu.matmul %81, %82, %cst_30 {dimension_numbers = #tpu.dot_dimension_numbers<[1], [1], [0], [0], [0, 0, 1, 0], [], []>} : vector<64x16xf32>, vector<64x16xf32>, vector<64x64xf32> -> vector<64x64xf32>
    "tpu.trace_stop"() : () -> ()
    %cst_31 = arith.constant dense<0xFF800000> : vector<64xf32>
    %85 = vector.multi_reduction <maximumf>, %84, %cst_31 [1] : vector<64x64xf32> to vector<64xf32>
    %86 = vector.shape_cast %85 : vector<64xf32> to vector<64x1xf32>
    %87 = vector.broadcast %86 : vector<64x1xf32> to vector<64x64xf32>
    %88 = arith.subf %84, %87 : vector<64x64xf32>
    %89 = math.exp %88 : vector<64x64xf32>
    %cst_32 = arith.constant dense<0.000000e+00> : vector<64xf32>
    %90 = vector.multi_reduction <add>, %89, %cst_32 [1] : vector<64x64xf32> to vector<64xf32>
    %91 = vector.shape_cast %90 : vector<64xf32> to vector<64x1xf32>
    %92 = tpu.reciprocal %91 {approx = true} : vector<64x1xf32> -> vector<64x1xf32>
    %93 = vector.broadcast %92 : vector<64x1xf32> to vector<64x64xf32>
    %94 = arith.mulf %89, %93 : vector<64x64xf32>
    %cst_33 = arith.constant dense<0.000000e+00> : vector<64x16xf32>
    %95 = tpu.matmul %94, %83, %cst_33 {dimension_numbers = #tpu.dot_dimension_numbers<[1], [0], [0], [1], [0, 0, 1, 1], [], []>} : vector<64x64xf32>, vector<64x16xf32>, vector<64x16xf32> -> vector<64x16xf32>
    %96 = vector.extract_strided_slice %6 {offsets = [0, 80], sizes = [64, 16], strides = [1, 1]} : vector<64x384xf32> to vector<64x16xf32>
    %cst_34 = arith.constant 2.500000e-01 : f32
    %97 = vector.broadcast %cst_34 : f32 to vector<64x16xf32>
    %98 = arith.mulf %96, %97 : vector<64x16xf32>
    %99 = vector.extract_strided_slice %6 {offsets = [0, 208], sizes = [64, 16], strides = [1, 1]} : vector<64x384xf32> to vector<64x16xf32>
    %100 = vector.extract_strided_slice %6 {offsets = [0, 336], sizes = [64, 16], strides = [1, 1]} : vector<64x384xf32> to vector<64x16xf32>
    "tpu.trace_start"() <{level = 10 : i32, message = "qd,kd->qk"}> : () -> ()
    %cst_35 = arith.constant dense<0.000000e+00> : vector<64x64xf32>
    %101 = tpu.matmul %98, %99, %cst_35 {dimension_numbers = #tpu.dot_dimension_numbers<[1], [1], [0], [0], [0, 0, 1, 0], [], []>} : vector<64x16xf32>, vector<64x16xf32>, vector<64x64xf32> -> vector<64x64xf32>
    "tpu.trace_stop"() : () -> ()
    %cst_36 = arith.constant dense<0xFF800000> : vector<64xf32>
    %102 = vector.multi_reduction <maximumf>, %101, %cst_36 [1] : vector<64x64xf32> to vector<64xf32>
    %103 = vector.shape_cast %102 : vector<64xf32> to vector<64x1xf32>
    %104 = vector.broadcast %103 : vector<64x1xf32> to vector<64x64xf32>
    %105 = arith.subf %101, %104 : vector<64x64xf32>
    %106 = math.exp %105 : vector<64x64xf32>
    %cst_37 = arith.constant dense<0.000000e+00> : vector<64xf32>
    %107 = vector.multi_reduction <add>, %106, %cst_37 [1] : vector<64x64xf32> to vector<64xf32>
    %108 = vector.shape_cast %107 : vector<64xf32> to vector<64x1xf32>
    %109 = tpu.reciprocal %108 {approx = true} : vector<64x1xf32> -> vector<64x1xf32>
    %110 = vector.broadcast %109 : vector<64x1xf32> to vector<64x64xf32>
    %111 = arith.mulf %106, %110 : vector<64x64xf32>
    %cst_38 = arith.constant dense<0.000000e+00> : vector<64x16xf32>
    %112 = tpu.matmul %111, %100, %cst_38 {dimension_numbers = #tpu.dot_dimension_numbers<[1], [0], [0], [1], [0, 0, 1, 1], [], []>} : vector<64x64xf32>, vector<64x16xf32>, vector<64x16xf32> -> vector<64x16xf32>
    %113 = vector.extract_strided_slice %6 {offsets = [0, 96], sizes = [64, 16], strides = [1, 1]} : vector<64x384xf32> to vector<64x16xf32>
    %cst_39 = arith.constant 2.500000e-01 : f32
    %114 = vector.broadcast %cst_39 : f32 to vector<64x16xf32>
    %115 = arith.mulf %113, %114 : vector<64x16xf32>
    %116 = vector.extract_strided_slice %6 {offsets = [0, 224], sizes = [64, 16], strides = [1, 1]} : vector<64x384xf32> to vector<64x16xf32>
    %117 = vector.extract_strided_slice %6 {offsets = [0, 352], sizes = [64, 16], strides = [1, 1]} : vector<64x384xf32> to vector<64x16xf32>
    "tpu.trace_start"() <{level = 10 : i32, message = "qd,kd->qk"}> : () -> ()
    %cst_40 = arith.constant dense<0.000000e+00> : vector<64x64xf32>
    %118 = tpu.matmul %115, %116, %cst_40 {dimension_numbers = #tpu.dot_dimension_numbers<[1], [1], [0], [0], [0, 0, 1, 0], [], []>} : vector<64x16xf32>, vector<64x16xf32>, vector<64x64xf32> -> vector<64x64xf32>
    "tpu.trace_stop"() : () -> ()
    %cst_41 = arith.constant dense<0xFF800000> : vector<64xf32>
    %119 = vector.multi_reduction <maximumf>, %118, %cst_41 [1] : vector<64x64xf32> to vector<64xf32>
    %120 = vector.shape_cast %119 : vector<64xf32> to vector<64x1xf32>
    %121 = vector.broadcast %120 : vector<64x1xf32> to vector<64x64xf32>
    %122 = arith.subf %118, %121 : vector<64x64xf32>
    %123 = math.exp %122 : vector<64x64xf32>
    %cst_42 = arith.constant dense<0.000000e+00> : vector<64xf32>
    %124 = vector.multi_reduction <add>, %123, %cst_42 [1] : vector<64x64xf32> to vector<64xf32>
    %125 = vector.shape_cast %124 : vector<64xf32> to vector<64x1xf32>
    %126 = tpu.reciprocal %125 {approx = true} : vector<64x1xf32> -> vector<64x1xf32>
    %127 = vector.broadcast %126 : vector<64x1xf32> to vector<64x64xf32>
    %128 = arith.mulf %123, %127 : vector<64x64xf32>
    %cst_43 = arith.constant dense<0.000000e+00> : vector<64x16xf32>
    %129 = tpu.matmul %128, %117, %cst_43 {dimension_numbers = #tpu.dot_dimension_numbers<[1], [0], [0], [1], [0, 0, 1, 1], [], []>} : vector<64x64xf32>, vector<64x16xf32>, vector<64x16xf32> -> vector<64x16xf32>
    %130 = vector.extract_strided_slice %6 {offsets = [0, 112], sizes = [64, 16], strides = [1, 1]} : vector<64x384xf32> to vector<64x16xf32>
    %cst_44 = arith.constant 2.500000e-01 : f32
    %131 = vector.broadcast %cst_44 : f32 to vector<64x16xf32>
    %132 = arith.mulf %130, %131 : vector<64x16xf32>
    %133 = vector.extract_strided_slice %6 {offsets = [0, 240], sizes = [64, 16], strides = [1, 1]} : vector<64x384xf32> to vector<64x16xf32>
    %134 = vector.extract_strided_slice %6 {offsets = [0, 368], sizes = [64, 16], strides = [1, 1]} : vector<64x384xf32> to vector<64x16xf32>
    "tpu.trace_start"() <{level = 10 : i32, message = "qd,kd->qk"}> : () -> ()
    %cst_45 = arith.constant dense<0.000000e+00> : vector<64x64xf32>
    %135 = tpu.matmul %132, %133, %cst_45 {dimension_numbers = #tpu.dot_dimension_numbers<[1], [1], [0], [0], [0, 0, 1, 0], [], []>} : vector<64x16xf32>, vector<64x16xf32>, vector<64x64xf32> -> vector<64x64xf32>
    "tpu.trace_stop"() : () -> ()
    %cst_46 = arith.constant dense<0xFF800000> : vector<64xf32>
    %136 = vector.multi_reduction <maximumf>, %135, %cst_46 [1] : vector<64x64xf32> to vector<64xf32>
    %137 = vector.shape_cast %136 : vector<64xf32> to vector<64x1xf32>
    %138 = vector.broadcast %137 : vector<64x1xf32> to vector<64x64xf32>
    %139 = arith.subf %135, %138 : vector<64x64xf32>
    %140 = math.exp %139 : vector<64x64xf32>
    %cst_47 = arith.constant dense<0.000000e+00> : vector<64xf32>
    %141 = vector.multi_reduction <add>, %140, %cst_47 [1] : vector<64x64xf32> to vector<64xf32>
    %142 = vector.shape_cast %141 : vector<64xf32> to vector<64x1xf32>
    %143 = tpu.reciprocal %142 {approx = true} : vector<64x1xf32> -> vector<64x1xf32>
    %144 = vector.broadcast %143 : vector<64x1xf32> to vector<64x64xf32>
    %145 = arith.mulf %140, %144 : vector<64x64xf32>
    %cst_48 = arith.constant dense<0.000000e+00> : vector<64x16xf32>
    %146 = tpu.matmul %145, %134, %cst_48 {dimension_numbers = #tpu.dot_dimension_numbers<[1], [0], [0], [1], [0, 0, 1, 1], [], []>} : vector<64x64xf32>, vector<64x16xf32>, vector<64x16xf32> -> vector<64x16xf32>
    %147 = tpu.concatenate %27, %44, %61, %78, %95, %112, %129, %146 in 1 : vector<64x16xf32>, vector<64x16xf32>, vector<64x16xf32>, vector<64x16xf32>, vector<64x16xf32>, vector<64x16xf32>, vector<64x16xf32>, vector<64x16xf32> -> vector<64x128xf32>
    %c0_49 = arith.constant 0 : index
    %c0_50 = arith.constant 0 : index
    %c0_51 = arith.constant 0 : index
    %148 = vector.load %arg4[%c0_49, %c0_50, %c0_51] : memref<1x64x128xf32, #tpu.memory_space<vmem>>, vector<1x64x128xf32>
    %149 = vector.shape_cast %148 : vector<1x64x128xf32> to vector<64x128xf32>
    %150 = vector.shape_cast %147 : vector<64x128xf32> to vector<1x64x128xf32>
    tpu.vector_store %arg4[%c0_49, %c0_50, %c0_51], %150 {strides = array<i32>} : memref<1x64x128xf32, #tpu.memory_space<vmem>>, vector<1x64x128xf32>,
    return
  }
  func.func @transform_0(%arg0: i32) -> (i32, i32, i32) {
    %c0_i32 = arith.constant 0 : i32
    %c0_i32_0 = arith.constant 0 : i32
    %c0_i32_1 = arith.constant 0 : i32
    return %arg0, %c0_i32, %c0_i32_0 : i32, i32, i32
  }
  func.func @transform_1(%arg0: i32) -> (i32, i32) {
    %c0_i32 = arith.constant 0 : i32
    %c0_i32_0 = arith.constant 0 : i32
    %c0_i32_1 = arith.constant 0 : i32
    return %c0_i32, %c0_i32_0 : i32, i32
  }
  func.func @transform_2(%arg0: i32) -> (i32, i32) {
    %c0_i32 = arith.constant 0 : i32
    %c0_i32_0 = arith.constant 0 : i32
    %c0_i32_1 = arith.constant 0 : i32
    return %c0_i32, %c0_i32_0 : i32, i32
  }
  func.func @transform_3(%arg0: i32) -> (i32, i32, i32) {
    %c0_i32 = arith.constant 0 : i32
    %c0_i32_0 = arith.constant 0 : i32
    %c0_i32_1 = arith.constant 0 : i32
    return %arg0, %c0_i32, %c0_i32_0 : i32, i32, i32
  }
  func.func @transform_4(%arg0: i32) -> (i32, i32, i32) {
    %c0_i32 = arith.constant 0 : i32
    %c0_i32_0 = arith.constant 0 : i32
    %c0_i32_1 = arith.constant 0 : i32
    return %arg0, %c0_i32, %c0_i32_0 : i32, i32, i32
  }
}

module attributes {stable_mosaic.version = 11 : i64} {
  func.func @_up_ln_proj_kernel(%arg0: i32, %arg1: memref<1x10x10x128xf32, #tpu.memory_space<vmem>>, %arg2: memref<1x64x128xf32, #tpu.memory_space<vmem>>, %arg3: memref<9x128xf32, #tpu.memory_space<vmem>>, %arg4: memref<1x128xf32, #tpu.memory_space<vmem>>, %arg5: memref<1x128xf32, #tpu.memory_space<vmem>>, %arg6: memref<1x128xf32, #tpu.memory_space<vmem>>, %arg7: memref<128x128xf32, #tpu.memory_space<vmem>>, %arg8: memref<1x128xf32, #tpu.memory_space<vmem>>, %arg9: memref<1x64x128xf32, #tpu.memory_space<vmem>>) attributes {dimension_semantics = [#tpu.dimension_semantics<parallel>], iteration_bounds = array<i64: 2>, scalar_prefetch = 0 : i64, scratch_operands = 0 : i64, tpu.core_type = #tpu.core_type<tc>, window_params = [{transform_indices = @transform_0, window_bounds = array<i64: 1, 10, 10, 128>}, {transform_indices = @transform_1, window_bounds = array<i64: 1, 64, 128>}, {pipeline_mode = #tpu.pipeline_mode<synchronous>, transform_indices = @transform_2, window_bounds = array<i64: 9, 128>}, {pipeline_mode = #tpu.pipeline_mode<synchronous>, transform_indices = @transform_3, window_bounds = array<i64: 1, 128>}, {pipeline_mode = #tpu.pipeline_mode<synchronous>, transform_indices = @transform_4, window_bounds = array<i64: 1, 128>}, {pipeline_mode = #tpu.pipeline_mode<synchronous>, transform_indices = @transform_5, window_bounds = array<i64: 1, 128>}, {pipeline_mode = #tpu.pipeline_mode<synchronous>, transform_indices = @transform_6, window_bounds = array<i64: 128, 128>}, {pipeline_mode = #tpu.pipeline_mode<synchronous>, transform_indices = @transform_7, window_bounds = array<i64: 1, 128>}, {transform_indices = @transform_8, window_bounds = array<i64: 1, 64, 128>}]} {
    %cst = arith.constant 0.000000e+00 : f32
    %0 = vector.broadcast %cst : f32 to vector<8x8x128xf32>
    %c0 = arith.constant 0 : index
    %c0_0 = arith.constant 0 : index
    %c0_1 = arith.constant 0 : index
    %c0_2 = arith.constant 0 : index
    %1 = vector.load %arg1[%c0, %c0_0, %c0_1, %c0_2] : memref<1x10x10x128xf32, #tpu.memory_space<vmem>>, vector<1x8x8x128xf32>
    %2 = vector.shape_cast %1 : vector<1x8x8x128xf32> to vector<8x8x128xf32>
    %c0_3 = arith.constant 0 : index
    %c0_4 = arith.constant 0 : index
    %3 = vector.load %arg3[%c0_3, %c0_4] : memref<9x128xf32, #tpu.memory_space<vmem>>, vector<1x128xf32>
    %4 = vector.shape_cast %3 : vector<1x128xf32> to vector<128xf32>
    %5 = vector.shape_cast %4 : vector<128xf32> to vector<1x1x128xf32>
    %6 = vector.broadcast %5 : vector<1x1x128xf32> to vector<8x8x128xf32>
    %7 = arith.mulf %2, %6 : vector<8x8x128xf32>
    %8 = arith.addf %0, %7 : vector<8x8x128xf32>
    %c0_5 = arith.constant 0 : index
    %c0_6 = arith.constant 0 : index
    %c1 = arith.constant 1 : index
    %c0_7 = arith.constant 0 : index
    %9 = vector.load %arg1[%c0_5, %c0_6, %c1, %c0_7] : memref<1x10x10x128xf32, #tpu.memory_space<vmem>>, vector<1x8x8x128xf32>
    %10 = vector.shape_cast %9 : vector<1x8x8x128xf32> to vector<8x8x128xf32>
    %c1_8 = arith.constant 1 : index
    %c0_9 = arith.constant 0 : index
    %11 = vector.load %arg3[%c1_8, %c0_9] : memref<9x128xf32, #tpu.memory_space<vmem>>, vector<1x128xf32>
    %12 = vector.shape_cast %11 : vector<1x128xf32> to vector<128xf32>
    %13 = vector.shape_cast %12 : vector<128xf32> to vector<1x1x128xf32>
    %14 = vector.broadcast %13 : vector<1x1x128xf32> to vector<8x8x128xf32>
    %15 = arith.mulf %10, %14 : vector<8x8x128xf32>
    %16 = arith.addf %8, %15 : vector<8x8x128xf32>
    %c0_10 = arith.constant 0 : index
    %c0_11 = arith.constant 0 : index
    %c2 = arith.constant 2 : index
    %c0_12 = arith.constant 0 : index
    %17 = vector.load %arg1[%c0_10, %c0_11, %c2, %c0_12] : memref<1x10x10x128xf32, #tpu.memory_space<vmem>>, vector<1x8x8x128xf32>
    %18 = vector.shape_cast %17 : vector<1x8x8x128xf32> to vector<8x8x128xf32>
    %c2_13 = arith.constant 2 : index
    %c0_14 = arith.constant 0 : index
    %19 = vector.load %arg3[%c2_13, %c0_14] : memref<9x128xf32, #tpu.memory_space<vmem>>, vector<1x128xf32>
    %20 = vector.shape_cast %19 : vector<1x128xf32> to vector<128xf32>
    %21 = vector.shape_cast %20 : vector<128xf32> to vector<1x1x128xf32>
    %22 = vector.broadcast %21 : vector<1x1x128xf32> to vector<8x8x128xf32>
    %23 = arith.mulf %18, %22 : vector<8x8x128xf32>
    %24 = arith.addf %16, %23 : vector<8x8x128xf32>
    %c0_15 = arith.constant 0 : index
    %c1_16 = arith.constant 1 : index
    %c0_17 = arith.constant 0 : index
    %c0_18 = arith.constant 0 : index
    %25 = vector.load %arg1[%c0_15, %c1_16, %c0_17, %c0_18] : memref<1x10x10x128xf32, #tpu.memory_space<vmem>>, vector<1x8x8x128xf32>
    %26 = vector.shape_cast %25 : vector<1x8x8x128xf32> to vector<8x8x128xf32>
    %c3 = arith.constant 3 : index
    %c0_19 = arith.constant 0 : index
    %27 = vector.load %arg3[%c3, %c0_19] : memref<9x128xf32, #tpu.memory_space<vmem>>, vector<1x128xf32>
    %28 = vector.shape_cast %27 : vector<1x128xf32> to vector<128xf32>
    %29 = vector.shape_cast %28 : vector<128xf32> to vector<1x1x128xf32>
    %30 = vector.broadcast %29 : vector<1x1x128xf32> to vector<8x8x128xf32>
    %31 = arith.mulf %26, %30 : vector<8x8x128xf32>
    %32 = arith.addf %24, %31 : vector<8x8x128xf32>
    %c0_20 = arith.constant 0 : index
    %c1_21 = arith.constant 1 : index
    %c1_22 = arith.constant 1 : index
    %c0_23 = arith.constant 0 : index
    %33 = vector.load %arg1[%c0_20, %c1_21, %c1_22, %c0_23] : memref<1x10x10x128xf32, #tpu.memory_space<vmem>>, vector<1x8x8x128xf32>
    %34 = vector.shape_cast %33 : vector<1x8x8x128xf32> to vector<8x8x128xf32>
    %c4 = arith.constant 4 : index
    %c0_24 = arith.constant 0 : index
    %35 = vector.load %arg3[%c4, %c0_24] : memref<9x128xf32, #tpu.memory_space<vmem>>, vector<1x128xf32>
    %36 = vector.shape_cast %35 : vector<1x128xf32> to vector<128xf32>
    %37 = vector.shape_cast %36 : vector<128xf32> to vector<1x1x128xf32>
    %38 = vector.broadcast %37 : vector<1x1x128xf32> to vector<8x8x128xf32>
    %39 = arith.mulf %34, %38 : vector<8x8x128xf32>
    %40 = arith.addf %32, %39 : vector<8x8x128xf32>
    %c0_25 = arith.constant 0 : index
    %c1_26 = arith.constant 1 : index
    %c2_27 = arith.constant 2 : index
    %c0_28 = arith.constant 0 : index
    %41 = vector.load %arg1[%c0_25, %c1_26, %c2_27, %c0_28] : memref<1x10x10x128xf32, #tpu.memory_space<vmem>>, vector<1x8x8x128xf32>
    %42 = vector.shape_cast %41 : vector<1x8x8x128xf32> to vector<8x8x128xf32>
    %c5 = arith.constant 5 : index
    %c0_29 = arith.constant 0 : index
    %43 = vector.load %arg3[%c5, %c0_29] : memref<9x128xf32, #tpu.memory_space<vmem>>, vector<1x128xf32>
    %44 = vector.shape_cast %43 : vector<1x128xf32> to vector<128xf32>
    %45 = vector.shape_cast %44 : vector<128xf32> to vector<1x1x128xf32>
    %46 = vector.broadcast %45 : vector<1x1x128xf32> to vector<8x8x128xf32>
    %47 = arith.mulf %42, %46 : vector<8x8x128xf32>
    %48 = arith.addf %40, %47 : vector<8x8x128xf32>
    %c0_30 = arith.constant 0 : index
    %c2_31 = arith.constant 2 : index
    %c0_32 = arith.constant 0 : index
    %c0_33 = arith.constant 0 : index
    %49 = vector.load %arg1[%c0_30, %c2_31, %c0_32, %c0_33] : memref<1x10x10x128xf32, #tpu.memory_space<vmem>>, vector<1x8x8x128xf32>
    %50 = vector.shape_cast %49 : vector<1x8x8x128xf32> to vector<8x8x128xf32>
    %c6 = arith.constant 6 : index
    %c0_34 = arith.constant 0 : index
    %51 = vector.load %arg3[%c6, %c0_34] : memref<9x128xf32, #tpu.memory_space<vmem>>, vector<1x128xf32>
    %52 = vector.shape_cast %51 : vector<1x128xf32> to vector<128xf32>
    %53 = vector.shape_cast %52 : vector<128xf32> to vector<1x1x128xf32>
    %54 = vector.broadcast %53 : vector<1x1x128xf32> to vector<8x8x128xf32>
    %55 = arith.mulf %50, %54 : vector<8x8x128xf32>
    %56 = arith.addf %48, %55 : vector<8x8x128xf32>
    %c0_35 = arith.constant 0 : index
    %c2_36 = arith.constant 2 : index
    %c1_37 = arith.constant 1 : index
    %c0_38 = arith.constant 0 : index
    %57 = vector.load %arg1[%c0_35, %c2_36, %c1_37, %c0_38] : memref<1x10x10x128xf32, #tpu.memory_space<vmem>>, vector<1x8x8x128xf32>
    %58 = vector.shape_cast %57 : vector<1x8x8x128xf32> to vector<8x8x128xf32>
    %c7 = arith.constant 7 : index
    %c0_39 = arith.constant 0 : index
    %59 = vector.load %arg3[%c7, %c0_39] : memref<9x128xf32, #tpu.memory_space<vmem>>, vector<1x128xf32>
    %60 = vector.shape_cast %59 : vector<1x128xf32> to vector<128xf32>
    %61 = vector.shape_cast %60 : vector<128xf32> to vector<1x1x128xf32>
    %62 = vector.broadcast %61 : vector<1x1x128xf32> to vector<8x8x128xf32>
    %63 = arith.mulf %58, %62 : vector<8x8x128xf32>
    %64 = arith.addf %56, %63 : vector<8x8x128xf32>
    %c0_40 = arith.constant 0 : index
    %c2_41 = arith.constant 2 : index
    %c2_42 = arith.constant 2 : index
    %c0_43 = arith.constant 0 : index
    %65 = vector.load %arg1[%c0_40, %c2_41, %c2_42, %c0_43] : memref<1x10x10x128xf32, #tpu.memory_space<vmem>>, vector<1x8x8x128xf32>
    %66 = vector.shape_cast %65 : vector<1x8x8x128xf32> to vector<8x8x128xf32>
    %c8 = arith.constant 8 : index
    %c0_44 = arith.constant 0 : index
    %67 = vector.load %arg3[%c8, %c0_44] : memref<9x128xf32, #tpu.memory_space<vmem>>, vector<1x128xf32>
    %68 = vector.shape_cast %67 : vector<1x128xf32> to vector<128xf32>
    %69 = vector.shape_cast %68 : vector<128xf32> to vector<1x1x128xf32>
    %70 = vector.broadcast %69 : vector<1x1x128xf32> to vector<8x8x128xf32>
    %71 = arith.mulf %66, %70 : vector<8x8x128xf32>
    %72 = arith.addf %64, %71 : vector<8x8x128xf32>
    %73 = vector.shape_cast %72 : vector<8x8x128xf32> to vector<64x128xf32>
    %c0_45 = arith.constant 0 : index
    %c0_46 = arith.constant 0 : index
    %74 = vector.load %arg4[%c0_45, %c0_46] : memref<1x128xf32, #tpu.memory_space<vmem>>, vector<1x128xf32>
    %75 = vector.broadcast %74 : vector<1x128xf32> to vector<64x128xf32>
    %76 = arith.addf %73, %75 : vector<64x128xf32>
    %cst_47 = arith.constant dense<0.000000e+00> : vector<64xf32>
    %77 = vector.multi_reduction <add>, %76, %cst_47 [1] : vector<64x128xf32> to vector<64xf32>
    %78 = vector.shape_cast %77 : vector<64xf32> to vector<64x1xf32>
    %cst_48 = arith.constant 1.280000e+02 : f32
    %79 = vector.broadcast %cst_48 : f32 to vector<64x1xf32>
    %80 = arith.divf %78, %79 : vector<64x1xf32>
    %81 = vector.broadcast %80 : vector<64x1xf32> to vector<64x128xf32>
    %82 = arith.subf %76, %81 : vector<64x128xf32>
    %83 = arith.mulf %82, %82 : vector<64x128xf32>
    %cst_49 = arith.constant dense<0.000000e+00> : vector<64xf32>
    %84 = vector.multi_reduction <add>, %83, %cst_49 [1] : vector<64x128xf32> to vector<64xf32>
    %85 = vector.shape_cast %84 : vector<64xf32> to vector<64x1xf32>
    %cst_50 = arith.constant 1.280000e+02 : f32
    %86 = vector.broadcast %cst_50 : f32 to vector<64x1xf32>
    %87 = arith.divf %85, %86 : vector<64x1xf32>
    %cst_51 = arith.constant 9.99999997E-7 : f32
    %88 = vector.broadcast %cst_51 : f32 to vector<64x1xf32>
    %89 = arith.addf %87, %88 : vector<64x1xf32>
    %90 = math.rsqrt %89 : vector<64x1xf32>
    %91 = vector.broadcast %90 : vector<64x1xf32> to vector<64x128xf32>
    %92 = arith.mulf %82, %91 : vector<64x128xf32>
    %c0_52 = arith.constant 0 : index
    %c0_53 = arith.constant 0 : index
    %93 = vector.load %arg5[%c0_52, %c0_53] : memref<1x128xf32, #tpu.memory_space<vmem>>, vector<1x128xf32>
    %94 = vector.broadcast %93 : vector<1x128xf32> to vector<64x128xf32>
    %95 = arith.mulf %92, %94 : vector<64x128xf32>
    %c0_54 = arith.constant 0 : index
    %c0_55 = arith.constant 0 : index
    %96 = vector.load %arg6[%c0_54, %c0_55] : memref<1x128xf32, #tpu.memory_space<vmem>>, vector<1x128xf32>
    %97 = vector.broadcast %96 : vector<1x128xf32> to vector<64x128xf32>
    %98 = arith.addf %95, %97 : vector<64x128xf32>
    %c0_56 = arith.constant 0 : index
    %c0_57 = arith.constant 0 : index
    %c0_58 = arith.constant 0 : index
    %99 = vector.load %arg2[%c0_56, %c0_57, %c0_58] : memref<1x64x128xf32, #tpu.memory_space<vmem>>, vector<1x64x128xf32>
    %100 = vector.shape_cast %99 : vector<1x64x128xf32> to vector<64x128xf32>
    %101 = arith.addf %100, %98 : vector<64x128xf32>
    %c0_59 = arith.constant 0 : index
    %c0_60 = arith.constant 0 : index
    %102 = vector.load %arg7[%c0_59, %c0_60] : memref<128x128xf32, #tpu.memory_space<vmem>>, vector<128x128xf32>
    %cst_61 = arith.constant dense<0.000000e+00> : vector<64x128xf32>
    %103 = tpu.matmul %101, %102, %cst_61 {dimension_numbers = #tpu.dot_dimension_numbers<[1], [0], [0], [1], [0, 0, 1, 1], [], []>} : vector<64x128xf32>, vector<128x128xf32>, vector<64x128xf32> -> vector<64x128xf32>
    %c0_62 = arith.constant 0 : index
    %c0_63 = arith.constant 0 : index
    %104 = vector.load %arg8[%c0_62, %c0_63] : memref<1x128xf32, #tpu.memory_space<vmem>>, vector<1x128xf32>
    %105 = vector.broadcast %104 : vector<1x128xf32> to vector<64x128xf32>
    %106 = arith.addf %103, %105 : vector<64x128xf32>
    %c0_64 = arith.constant 0 : index
    %c0_65 = arith.constant 0 : index
    %c0_66 = arith.constant 0 : index
    %107 = vector.load %arg9[%c0_64, %c0_65, %c0_66] : memref<1x64x128xf32, #tpu.memory_space<vmem>>, vector<1x64x128xf32>
    %108 = vector.shape_cast %107 : vector<1x64x128xf32> to vector<64x128xf32>
    %109 = vector.shape_cast %106 : vector<64x128xf32> to vector<1x64x128xf32>
    tpu.vector_store %arg9[%c0_64, %c0_65, %c0_66], %109 {strides = array<i32>} : memref<1x64x128xf32, #tpu.memory_space<vmem>>, vector<1x64x128xf32>,
    return
  }
  func.func @transform_0(%arg0: i32) -> (i32, i32, i32, i32) {
    %c0_i32 = arith.constant 0 : i32
    %c0_i32_0 = arith.constant 0 : i32
    %c0_i32_1 = arith.constant 0 : i32
    %c0_i32_2 = arith.constant 0 : i32
    return %arg0, %c0_i32, %c0_i32_0, %c0_i32_1 : i32, i32, i32, i32
  }
  func.func @transform_1(%arg0: i32) -> (i32, i32, i32) {
    %c0_i32 = arith.constant 0 : i32
    %c0_i32_0 = arith.constant 0 : i32
    %c0_i32_1 = arith.constant 0 : i32
    return %arg0, %c0_i32, %c0_i32_0 : i32, i32, i32
  }
  func.func @transform_2(%arg0: i32) -> (i32, i32) {
    %c0_i32 = arith.constant 0 : i32
    %c0_i32_0 = arith.constant 0 : i32
    %c0_i32_1 = arith.constant 0 : i32
    return %c0_i32, %c0_i32_0 : i32, i32
  }
  func.func @transform_3(%arg0: i32) -> (i32, i32) {
    %c0_i32 = arith.constant 0 : i32
    %c0_i32_0 = arith.constant 0 : i32
    %c0_i32_1 = arith.constant 0 : i32
    return %c0_i32, %c0_i32_0 : i32, i32
  }
  func.func @transform_4(%arg0: i32) -> (i32, i32) {
    %c0_i32 = arith.constant 0 : i32
    %c0_i32_0 = arith.constant 0 : i32
    %c0_i32_1 = arith.constant 0 : i32
    return %c0_i32, %c0_i32_0 : i32, i32
  }
  func.func @transform_5(%arg0: i32) -> (i32, i32) {
    %c0_i32 = arith.constant 0 : i32
    %c0_i32_0 = arith.constant 0 : i32
    %c0_i32_1 = arith.constant 0 : i32
    return %c0_i32, %c0_i32_0 : i32, i32
  }
  func.func @transform_6(%arg0: i32) -> (i32, i32) {
    %c0_i32 = arith.constant 0 : i32
    %c0_i32_0 = arith.constant 0 : i32
    %c0_i32_1 = arith.constant 0 : i32
    return %c0_i32, %c0_i32_0 : i32, i32
  }
  func.func @transform_7(%arg0: i32) -> (i32, i32) {
    %c0_i32 = arith.constant 0 : i32
    %c0_i32_0 = arith.constant 0 : i32
    %c0_i32_1 = arith.constant 0 : i32
    return %c0_i32, %c0_i32_0 : i32, i32
  }
  func.func @transform_8(%arg0: i32) -> (i32, i32, i32) {
    %c0_i32 = arith.constant 0 : i32
    %c0_i32_0 = arith.constant 0 : i32
    %c0_i32_1 = arith.constant 0 : i32
    return %arg0, %c0_i32, %c0_i32_0 : i32, i32, i32
  }
}

</mosaic_0001>

<bundles_post_ra>
// kernel: attention_pallas.3
= control target key start
LH: loop header
LB: loop body
LE: loop exit
PB: predicated region body
PF: predicated region fallthrough
CT: control target
= control target key end

     0   :  { %13 = vsyncpa [#allocation3], 0  ;;  %s1796_s0 = inlined_call_operand.vmem [shape: f32[2,10,10,128], index: 0, kind: input, shape index: {}]   ;;  %s1797_s1 = inlined_call_operand.vmem [shape: f32[2,64,128], index: 1, kind: input, shape index: {}]   ;;  %s1798_s2 = inlined_call_operand.vmem [shape: f32[9,128], index: 2, kind: input, shape index: {}]   ;;  %s1799_s3 = inlined_call_operand.vmem [shape: f32[1,128], index: 3, kind: input, shape index: {}]   ;;  %s1800_s4 = inlined_call_operand.vmem [shape: f32[1,128], index: 4, kind: input, shape index: {}]   ;;  %s1801_s5 = inlined_call_operand.vmem [shape: f32[1,128], index: 5, kind: input, shape index: {}]   ;;  %s1802_s6 = inlined_call_operand.vmem [shape: f32[128,128], index: 6, kind: input, shape index: {}]   ;;  %s1803_s7 = inlined_call_operand.vmem [shape: f32[1,128], index: 7, kind: input, shape index: {}]   ;;  %s1804_s8 = inlined_call_operand.hbm [shape: f32[2,64,128], index: 8, kind: output, shape index: {}]  }
   0x1   :  { %15 = vsyncpa [#allocation3 + $0x1], 0  ;;  %s1323_s27 = smov 0   ;;  %s1325_s28 = smov 0  }
   0x2   :  { %s1327_s29 = smov 0   ;;  %s1329_s30 = smov 0  }
   0x3 LB: > { %s1344_s9 = sadd.s32 4294967295, %s1273_s30   ;;  %s961_s10 = sadd.s32 4294967294, %s1273_s30   ;;  %s1273_s30 = sphi %s1329_s30, %s1810_s30   ;;  %s1269_s29 = sphi %s1327_s29, %s1809_s29   ;;  %s1265_s28 = sphi %s1325_s28, %s1808_s28   ;;  %s1261_s27 = sphi %s1323_s27, %s1807_s27  }
   0x4   : > { %s1348_s11 = sadd.s32 1, %s1273_s30   ;;  %s206_s12 = sadd.s32 1, %s1269_s29 }
   0x5   : > { %s203_s13 = ssub.s32 %s1273_s30, %s1348_s11  ;;  %p216_p0 = scmp.ne.s32.totalorder %s1269_s29, %s1265_s28 }
   0x6   : > { %p204_p1 = scmp.eq.s32.totalorder %s203_s13, 0  ;;  %p217_p2 = scmp.eq.s32.totalorder %s1344_s9, 1 }
   0x7   : > { %p222_p3 = scmp.ne.s32.totalorder %s1265_s28, %s1261_s27  ;;  %p223_p4 = scmp.eq.s32.totalorder %s961_s10, 1 }
   0x8   : > { %s1359_s14 = scalar_select %p204_p1, %s1269_s29, %s206_s12  }
   0x9   : > { %p1361_p5 = por %p217_p2, %p216_p0  ;;  %p1365_p6 = por %p223_p4, %p222_p3 }
   0xa   : > { %p964_p7 = scmp.ge.s32.totalorder %s1273_s30, 1  ;;  %p275_p8 = scmp.lt.s32.totalorder %s1273_s30, 3 }
   0xc   : > { %p276_p9 = pnand %p964_p7, %p275_p8 }
   0xd   : > { %p314_p10 = scmp.lt.s32.totalorder (!%p276_p9), %s1344_s9, 1  ;;  %v1379_v0 = vld [vmem:[%s1798_s2] ss:$0 sm:$0xff] (!%p276_p9)  ;;  %v1384_v1 = vld [vmem:[%s1798_s2 + $0x1] ss:$0 sm:$0xff] (!%p276_p9) }
   0xe   : > { %279 = sbr.rel (%p276_p9) target bundleno = 617 (0x269), region = 52  ;;  %v1389_v2 = vld [vmem:[%s1798_s2 + $0x2] ss:$0 sm:$0xff] (!%p276_p9)  ;;  %v1394_v3 = vld [vmem:[%s1798_s2 + $0x3] ss:$0 sm:$0xff] (!%p276_p9) }
   0xf   : > { %v1399_v4 = vld [vmem:[%s1798_s2 + $0x4] ss:$0 sm:$0xff] (!%p276_p9)  ;;  %v1409_v5 = vld [vmem:[%s1798_s2 + $0x5] ss:$0 sm:$0xff] (!%p276_p9)  ;;  %v1414_v6 = vld [vmem:[%s1798_s2 + $0x6] ss:$0 sm:$0xff] (!%p276_p9) }
  0x10   : > { %v1419_v7 = vld [vmem:[%s1798_s2 + $0x7] ss:$0 sm:$0xff] (!%p276_p9)  ;;  %v1434_v18 = vld [vmem:[%s1798_s2 + $0x8] ss:$0 sm:$0xff] (!%p276_p9) }
  0x15   : > { %s1373_s17 = scalar_select %p314_p10, %s1344_s9, 1 }
  0x17   : > { %s1153_s18 = smul.u32 160, %s1373_s17  ;;  %s1035_s26 = sshll.u32 %s1373_s17, 6 }
  0x18   : > { %s1700_s21 = scalar_lea.vmem %s1797_s1, %s1035_s26  ;;  %s311_s17 = sand.u32 1, %s1265_s28  }
  0x19   : > { %s1404_s20 = scalar_lea.vmem %s1796_s0, %s1153_s18  ;;  %s965_s23 = sshll.u32 %s311_s17, 6 }
  0x1a   : > { %v324_v8 = vld [vmem:[%s1404_s20] sm:$0xff]  ;;  %v972_v14 = vld [vmem:[%s1404_s20 + $0x10] sm:$0xff]  ;;  %s313_s18 = scalar_lea.vmem [#allocation2], %s965_s23  ;;  %s1036_s26 = sshll.u32 %s1344_s9, 10 }
  0x1b   : > { %v353_v9 = vld [vmem:[%s1404_s20 + $0x1] sm:$0xff]  ;;  %v337_v11 = vmul.f32 %v1379_v0, %v324_v8  ;;  %v981_v15 = vld [vmem:[%s1404_s20 + $0x11] sm:$0xff]  ;;  %v338_v19 = vmul.f32 %v972_v14, %v1379_v0  ;;  %v425_v21 = vmul.f32 %v1394_v3, %v972_v14  ;;  %s887_s10 = sshll.u32 %s313_s18, 4  ;;  %s1749_s19 = scalar_lea.hbm %s1804_s8, %s1036_s26  ;;  %s1751_s10 = int_to_ptr.vmem [resolvable:$true] %s887_s10 }
  0x1c   : > { %v382_v10 = vld [vmem:[%s1404_s20 + $0x2] sm:$0xff]  ;;  %v366_v12 = vmul.f32 %v1384_v1, %v353_v9  ;;  %v990_v16 = vld [vmem:[%s1404_s20 + $0x12] sm:$0xff]  ;;  %v454_v22 = vmul.f32 %v1399_v4, %v981_v15  ;;  %v367_v28 = vmul.f32 %v981_v15, %v1384_v1  ;;  %s1755_s9 = scalar_lea.sflag [#allocation3], %s311_s17 }
  0x1d   : > { %v395_v13 = vmul.f32 %v1389_v2, %v382_v10  ;;  %v999_v17 = vld [vmem:[%s1404_s20 + $0x20] sm:$0xff]  ;;  %v483_v23 = vmul.f32 %v1409_v5, %v990_v16  ;;  %v396_v29 = vmul.f32 %v990_v16, %v1389_v2  ;;  %v1459_v37 = vld [vmem:[%s1404_s20 + $0x50] sm:$0xff] }
  0x1e   : > { %v374_v20 = vadd.f32 %v366_v12, %v337_v11  ;;  %v1008_v24 = vld [vmem:[%s1404_s20 + $0x21] sm:$0xff]  ;;  %v513_v26 = vmul.f32 %v1414_v6, %v999_v17  ;;  %v426_v35 = vmul.f32 %v999_v17, %v1394_v3  ;;  %v375_v38 = vadd.f32 %v367_v28, %v338_v19  ;;  %v1463_v40 = vld [vmem:[%s1404_s20 + $0x30] sm:$0xff] }
  0x1f   : > { %v1017_v25 = vld [vmem:[%s1404_s20 + $0x22] sm:$0xff]  ;;  %v542_v27 = vmul.f32 %v1419_v7, %v1008_v24  ;;  %v455_v36 = vmul.f32 %v1008_v24, %v1399_v4  ;;  %v1466_v41 = vld [vmem:[%s1404_s20 + $0x31] sm:$0xff]  ;;  %v514_v45 = vmul.f32 %v1414_v6, %v1463_v40  ;;  %v429_v54 = vmul.f32 %v1394_v3, %v1459_v37 }
  0x20   : > { %v1447_v30 = vld [vmem:[%s1404_s20 + $0x40] sm:$0xff]  ;;  %v403_v33 = vadd.f32 %v395_v13, %v374_v20  ;;  %v571_v34 = vmul.f32 %v1434_v18, %v1017_v25  ;;  %v484_v39 = vmul.f32 %v1017_v25, %v1409_v5  ;;  %v543_v46 = vmul.f32 %v1419_v7, %v1466_v41  ;;  %v1477_v47 = vld [vmem:[%s1404_s20 + $0x32] sm:$0xff] }
  0x21   : > { %v1450_v31 = vld [vmem:[%s1404_s20 + $0x41] sm:$0xff]  ;;  %v341_v42 = vmul.f32 %v1379_v0, %v1447_v30  ;;  %v1482_v49 = vld [vmem:[%s1404_s20 + $0x51] sm:$0xff]  ;;  %v404_v51 = vadd.f32 %v396_v29, %v375_v38  ;;  %v572_v52 = vmul.f32 %v1434_v18, %v1477_v47  ;;  %v342_v59 = vmul.f32 %v1459_v37, %v1379_v0 }
  0x22   : > { %v1453_v32 = vld [vmem:[%s1404_s20 + $0x42] sm:$0xff]  ;;  %v370_v43 = vmul.f32 %v1384_v1, %v1450_v31  ;;  %v433_v44 = vadd.f32 %v425_v21, %v403_v33  ;;  %v1485_v50 = vld [vmem:[%s1404_s20 + $0x52] sm:$0xff]  ;;  %v458_v56 = vmul.f32 %v1399_v4, %v1482_v49  ;;  %v371_v8 = vmul.f32 %v1482_v49, %v1384_v1 }
  0x23   : > { %v399_v48 = vmul.f32 %v1389_v2, %v1453_v32  ;;  %v487_v57 = vmul.f32 %v1409_v5, %v1485_v50  ;;  %v1003_v58 = vld [vmem:[%s1404_s20 + $0x60] sm:$0xff]  ;;  %v434_v60 = vadd.f32 %v426_v35, %v404_v51  ;;  %v400_v9 = vmul.f32 %v1485_v50, %v1389_v2  ;;  %v1512_v35 = vld [vmem:[%s1404_s20 + $0x70] sm:$0xff] }
  0x24   : > { %v378_v53 = vadd.f32 %v370_v43, %v341_v42  ;;  %v462_v55 = vadd.f32 %v454_v22, %v433_v44  ;;  %v1012_v62 = vld [vmem:[%s1404_s20 + $0x61] sm:$0xff]  ;;  %v517_v11 = vmul.f32 %v1414_v6, %v1003_v58  ;;  %v379_v16 = vadd.f32 %v371_v8, %v342_v59  ;;  %v1013_v51 = vld [vmem:[%s1404_s20 + $0x71] sm:$0xff] }
  0x25   : > { %v1021_v63 = vld [vmem:[%s1404_s20 + $0x62] sm:$0xff]  ;;  %v546_v12 = vmul.f32 %v1419_v7, %v1012_v62  ;;  %v463_v14 = vadd.f32 %v455_v36, %v434_v60  ;;  %v430_v19 = vmul.f32 %v1003_v58, %v1394_v3  ;;  %v459_v21 = vmul.f32 %v1012_v62, %v1399_v4 }
  0x26   : > { %v407_v61 = vadd.f32 %v399_v48, %v378_v53  ;;  %v491_v10 = vadd.f32 %v483_v23, %v462_v55  ;;  %v575_v13 = vmul.f32 %v1434_v18, %v1021_v63  ;;  %v488_v22 = vmul.f32 %v1021_v63, %v1409_v5  ;;  %v1022_v53 = vld [vmem:[%s1404_s20 + $0x72] sm:$0xff] }
  0x27   : > { %v339_v23 = vmul.f32 %v999_v17, %v1379_v0  ;;  %v492_v28 = vadd.f32 %v484_v39, %v463_v14  ;;  %v408_v33 = vadd.f32 %v400_v9, %v379_v16  ;;  %v368_v36 = vmul.f32 %v1008_v24, %v1384_v1  ;;  %v1523_v17 = vld [vmem:[%s1799_s3] ss:$0 sm:$0xff] }
  0x28   : > { %v437_v15 = vadd.f32 %v429_v54, %v407_v61  ;;  %v521_v20 = vadd.f32 %v513_v26, %v491_v10  ;;  %v518_v42 = vmul.f32 %v1414_v6, %v1512_v35  ;;  %v397_v26 = vmul.f32 %v1017_v25, %v1389_v2 }
  0x29   : > { %v427_v43 = vmul.f32 %v1463_v40, %v1394_v3  ;;  %v522_v39 = vadd.f32 %v514_v45, %v492_v28  ;;  %v438_v48 = vadd.f32 %v430_v19, %v408_v33  ;;  %v376_v24 = vadd.f32 %v368_v36, %v339_v23 }
  0x2a   : > { %v466_v29 = vadd.f32 %v458_v56, %v437_v15  ;;  %v550_v38 = vadd.f32 %v542_v27, %v521_v20  ;;  %v547_v54 = vmul.f32 %v1419_v7, %v1013_v51  ;;  %v576_v55 = vmul.f32 %v1434_v18, %v1022_v53 }
  0x2b   : > { %v456_v25 = vmul.f32 %v1466_v41, %v1399_v4  ;;  %v551_v56 = vadd.f32 %v543_v46, %v522_v39  ;;  %v467_v60 = vadd.f32 %v459_v21, %v438_v48  ;;  %v405_v61 = vadd.f32 %v397_v26, %v376_v24  ;;  %v1005_v39 = vld [vmem:[%s1404_s20 + $0x80] sm:$0xff] }
  0x2c   : > { %v495_v44 = vadd.f32 %v487_v57, %v466_v29  ;;  %v579_v27 = vadd.f32 %v571_v34, %v550_v38  ;;  %v485_v45 = vmul.f32 %v1477_v47, %v1409_v5  ;;  %v343_v57 = vmul.f32 %v1003_v58, %v1379_v0  ;;  %v1014_v24 = vld [vmem:[%s1404_s20 + $0x81] sm:$0xff] }
  0x2d   : > { %v372_v34 = vmul.f32 %v1012_v62, %v1384_v1  ;;  %v580_v9 = vadd.f32 %v572_v52, %v551_v56  ;;  %v496_v14 = vadd.f32 %v488_v22, %v467_v60  ;;  %v435_v15 = vadd.f32 %v427_v43, %v405_v61  ;;  %v1023_v56 = vld [vmem:[%s1404_s20 + $0x82] sm:$0xff] }
  0x2e   : > { %v525_v59 = vadd.f32 %v517_v11, %v495_v44  ;;  %v1532_v8 = vadd.f32 %v1523_v17, %v579_v27  ;;  %v515_v46 = vmul.f32 %v1414_v6, %v1447_v30  ;;  %v401_v16 = vmul.f32 %v1021_v63, %v1389_v2 }
  0x2f   : > { %v380_v11 = vadd.f32 %v372_v34, %v343_v57  ;;  %v431_v19 = vmul.f32 %v1512_v35, %v1394_v3  ;;  %v1545_v20 = vadd.f32 %v1523_v17, %v580_v9  ;;  %v526_v62 = vadd.f32 %v518_v42, %v496_v14 }
  0x30   : > { %v554_v10 = vadd.f32 %v546_v12, %v525_v59  ;;  %602 = vadd.xlane.f32.xlu0 %v1532_v8  ;;  %v464_v52 = vadd.f32 %v456_v25, %v435_v15  ;;  %v544_v12 = vmul.f32 %v1419_v7, %v1450_v31  ;;  %v460_v22 = vmul.f32 %v1013_v51, %v1399_v4 }
  0x31   : > { %v409_v21 = vadd.f32 %v401_v16, %v380_v11  ;;  %604 = vadd.xlane.f32.xlu1 %v1545_v20  ;;  %v555_v23 = vadd.f32 %v547_v54, %v526_v62  ;;  %v489_v29 = vmul.f32 %v1022_v53, %v1409_v5  ;;  %v340_v33 = vmul.f32 %v1463_v40, %v1379_v0 }
  0x32   : > { %v583_v58 = vadd.f32 %v575_v13, %v554_v10  ;;  %v493_v28 = vadd.f32 %v485_v45, %v464_v52  ;;  %v369_v36 = vmul.f32 %v1466_v41, %v1384_v1  ;;  %v398_v38 = vmul.f32 %v1477_v47, %v1389_v2 }
  0x33   : > { %v439_v13 = vadd.f32 %v431_v19, %v409_v21  ;;  %v584_v42 = vadd.f32 %v576_v55, %v555_v23  ;;  %v573_v43 = vmul.f32 %v1434_v18, %v1453_v32  ;;  %v519_v48 = vmul.f32 %v1414_v6, %v1005_v39  ;;  %v1015_v19 = vld [vmem:[%s1404_s20 + $0x91] sm:$0xff] }
  0x34   : > { %v1552_v63 = vadd.f32 %v1523_v17, %v583_v58  ;;  %v523_v26 = vadd.f32 %v515_v46, %v493_v28  ;;  %v377_v40 = vadd.f32 %v369_v36, %v340_v33  ;;  %v428_v41 = vmul.f32 %v1394_v3, %v1447_v30 }
  0x35   : > { %v468_v44 = vadd.f32 %v460_v22, %v439_v13  ;;  %v1570_v27 = vadd.f32 %v1523_v17, %v584_v42  ;;  %v548_v54 = vmul.f32 %v1419_v7, %v1014_v24  ;;  %v457_v55 = vmul.f32 %v1399_v4, %v1450_v31 }
  0x36   : > { %610 = vadd.xlane.f32.xlu0 %v1552_v63  ;;  %v552_v47 = vadd.f32 %v544_v12, %v523_v26  ;;  %v406_v59 = vadd.f32 %v398_v38, %v377_v40  ;;  %v344_v60 = vmul.f32 %v1512_v35, %v1379_v0  ;;  %v373_v61 = vmul.f32 %v1013_v51, %v1384_v1  ;;  %v1024_v12 = vld [vmem:[%s1404_s20 + $0x92] sm:$0xff] }
  0x37   : > { %v497_v25 = vadd.f32 %v489_v29, %v468_v44  ;;  %612 = vadd.xlane.f32.xlu1 %v1570_v27  ;;  %v577_v45 = vmul.f32 %v1434_v18, %v1023_v56  ;;  %v486_v57 = vmul.f32 %v1409_v5, %v1453_v32  ;;  %v402_v34 = vmul.f32 %v1022_v53, %v1389_v2  ;;  %v1006_v53 = vld [vmem:[%s1404_s20 + $0x90] sm:$0xff]  ;;  %v740_v38 = vld [vmem:[%s1802_s6 + $0x18] sm:$0xff]  ;;  %s1275_s20 = smov [#allocation2]  }
  0x38   : > { %v581_v30 = vadd.f32 %v573_v43, %v552_v47  ;;  %v436_v9 = vadd.f32 %v428_v41, %v406_v59  ;;  %v381_v10 = vadd.f32 %v373_v61, %v344_v60  ;;  %v432_v14 = vmul.f32 %v1005_v39, %v1394_v3  ;;  %s1215_s22 = sshll.u32 %s1275_s20, 4  ;;  %s1216_s22 = int_to_ptr.vmem [resolvable:$false] %s1215_s22 }
  0x39   : > { %v527_v31 = vadd.f32 %v519_v48, %v497_v25  ;;  %v516_v1 = vmul.f32 %v1414_v6, %v1459_v37  ;;  %v461_v32 = vmul.f32 %v1014_v24, %v1399_v4  ;;  %v545_v2 = vmul.f32 %v1419_v7, %v1482_v49  ;;  %s1217_s23 = scalar_lea.vmem %s1216_s22, 2048  ;;  %p1218_p0 = scmp.lt.s32.totalorder %s1751_s10, %s1216_s22 }
  0x3a   : > { %v1586_v0 = vadd.f32 %v1523_v17, %v581_v30  ;;  %v465_v51 = vadd.f32 %v457_v55, %v436_v9  ;;  %v410_v15 = vadd.f32 %v402_v34, %v381_v10  ;;  %v490_v16 = vmul.f32 %v1023_v56, %v1409_v5  ;;  %v741_v9 = vld [vmem:[%s1802_s6 + $0x20] sm:$0xff]  ;;  %v742_v10 = vld [vmem:[%s1802_s6 + $0x28] sm:$0xff] }
  0x3b   : > { %v556_v35 = vadd.f32 %v548_v54, %v527_v31  ;;  %v574_v37 = vmul.f32 %v1434_v18, %v1485_v50  ;;  %v520_v4 = vmul.f32 %v1414_v6, %v1006_v53  ;;  %v549_v22 = vmul.f32 %v1419_v7, %v1015_v19  ;;  %v737_v6 = vld [vmem:[%s1802_s6] sm:$0xff]  ;;  %v738_v7 = vld [vmem:[%s1802_s6 + $0x8] sm:$0xff]  ;;  %v748_v19 = vld [vmem:[%s1802_s6 + $0x58] sm:$0xff] }
  0x3c   : > { %606 = vadd.xlane.f32.xlu0 %v1586_v0  ;;  %v494_v3 = vadd.f32 %v486_v57, %v465_v51  ;;  %v440_v11 = vadd.f32 %v432_v14, %v410_v15  ;;  %v578_v5 = vmul.f32 %v1434_v18, %v1024_v12  ;;  %v739_v18 = vld [vmem:[%s1802_s6 + $0x10] sm:$0xff]  ;;  %v1105_v36 = vpack.c.bf16 %v738_v7, %v737_v6 }
  0x3d   : > { %v585_v46 = vadd.f32 %v577_v45, %v556_v35  ;;  %v1109_v42 = vpack.c.bf16 %v740_v38, %v739_v18  ;;  %v1113_v14 = vpack.c.bf16 %v742_v10, %v741_v9  ;;  %v743_v15 = vld [vmem:[%s1802_s6 + $0x30] sm:$0xff]  ;;  %v725_v10 = vld [vmem:[%s1700_s21 + $0x20] sm:$0xff] }
  0x3e   : > { %v524_v62 = vadd.f32 %v516_v1, %v494_v3  ;;  %v469_v52 = vadd.f32 %v461_v32, %v440_v11  ;;  %1106 = vmatprep.subr.bf16.mxu0 %v1105_v36  ;;  %1137 = vmatprep.subr.bf16.mxu1 %v1105_v36  ;;  %v744_v32 = vld [vmem:[%s1802_s6 + $0x38] sm:$0xff]  ;;  %v745_v3 = vld [vmem:[%s1802_s6 + $0x40] sm:$0xff]  ;;  %v746_v11 = vld [vmem:[%s1802_s6 + $0x48] sm:$0xff] }
  0x3f   : > { %v600_v58 = vadd.f32 %v1523_v17, %v585_v46  ;;  %1108 = vmatpush3.bf16.msra.mxu0 %v1105_v36  ;;  %1145 = vmatpush3.bf16.msra.mxu1 %v1105_v36  ;;  %v1117_v53 = vpack.c.bf16 %v744_v32, %v743_v15  ;;  %v751_v12 = vld [vmem:[%s1802_s6 + $0x70] sm:$0xff] }
  0x40   : > { %v553_v21 = vadd.f32 %v545_v2, %v524_v62  ;;  %v498_v49 = vadd.f32 %v490_v16, %v469_v52  ;;  %1110 = vmatprep.subr.bf16.mxu0 %v1109_v42  ;;  %1138 = vmatprep.subr.bf16.mxu1 %v1109_v42  ;;  %v1121_v16 = vpack.c.bf16 %v746_v11, %v745_v3  ;;  %v749_v62 = vld [vmem:[%s1802_s6 + $0x60] sm:$0xff]  ;;  %v750_v52 = vld [vmem:[%s1802_s6 + $0x68] sm:$0xff] }
  0x41   : > { %614 = vadd.xlane.f32.xlu1 %v600_v58 }
  0x42   : > { %v582_v23 = vadd.f32 %v574_v37, %v553_v21  ;;  %v528_v28 = vadd.f32 %v520_v4, %v498_v49  ;;  %v747_v37 = vld [vmem:[%s1802_s6 + $0x50] sm:$0xff]  ;;  %v1129_v4 = vpack.c.bf16 %v750_v52, %v749_v62  ;;  %v752_v21 = vld [vmem:[%s1802_s6 + $0x78] sm:$0xff] }
  0x43   : > { %1112 = vmatpush3.bf16.msra.mxu0 %v1109_v42  ;;  %1146 = vmatpush3.bf16.msra.mxu1 %v1109_v42  ;;  %v1133_v49 = vpack.c.bf16 %v752_v21, %v751_v12 }
  0x44   : > { %v597_v29 = vadd.f32 %v1523_v17, %v582_v23  ;;  %v557_v50 = vadd.f32 %v549_v22, %v528_v28  ;;  %1114 = vmatprep.subr.bf16.mxu0 %v1113_v14  ;;  %1139 = vmatprep.subr.bf16.mxu1 %v1113_v14 }
  0x46   : > { %608 = vadd.xlane.f32.xlu0 %v597_v29  ;;  %v586_v13 = vadd.f32 %v578_v5, %v557_v50 }
  0x47   : > { %1116 = vmatpush3.bf16.msra.mxu0 %v1113_v14  ;;  %1147 = vmatpush3.bf16.msra.mxu1 %v1113_v14 }
  0x48   : > { %v601_v33 = vadd.f32 %v1523_v17, %v586_v13  ;;  %1118 = vmatprep.subr.bf16.mxu0 %v1117_v53  ;;  %1140 = vmatprep.subr.bf16.mxu1 %v1117_v53 }
  0x4a   : > { %616 = vadd.xlane.f32.xlu1 %v601_v33 }
  0x4b   : > { %1120 = vmatpush3.bf16.msra.mxu0 %v1117_v53  ;;  %1148 = vmatpush3.bf16.msra.mxu1 %v1117_v53 }
  0x4c   : > { %1122 = vmatprep.subr.bf16.mxu0 %v1121_v16  ;;  %1141 = vmatprep.subr.bf16.mxu1 %v1121_v16 }
  0x4f   : > { %1124 = vmatpush3.bf16.msra.mxu0 %v1121_v16  ;;  %1149 = vmatpush3.bf16.msra.mxu1 %v1121_v16 }
  0xbd   : > { %v603_v17 = vpop.xlane.xlu0 %602 }
  0xbe   : > { %v619_v26 = vmul.f32 0.0078125, %v603_v17  ;;  %v605_v39 = vpop.xlane.xlu1 %604 }
  0xbf   : > { %v620_v44 = vmul.f32 0.0078125, %v605_v39 }
  0xc0   : > { %v1619_v43 = vsub.f32 %v1532_v8, %v619_v26  ;;  %v1695_v26 = vld [vmem:[%s1800_s4] ss:$0 sm:$0xff] }
  0xc1   : > { %v1624_v40 = vsub.f32 %v1545_v20, %v620_v44 }
  0xc2   : > { %v635_v24 = vmul.f32 %v1619_v43, %v1619_v43 }
  0xc3   : > { %v611_v48 = vpop.xlane.xlu0 %610  ;;  %v636_v54 = vmul.f32 %v1624_v40, %v1624_v40 }
  0xc4   : > { %v623_v41 = vmul.f32 0.0078125, %v611_v48  ;;  %643 = vadd.xlane.f32.xlu0 %v635_v24  ;;  %v613_v55 = vpop.xlane.xlu1 %612  ;;  %v1706_v48 = vld [vmem:[%s1801_s5] ss:$0 sm:$0xff] }
  0xc5   : > { %v624_v8 = vmul.f32 0.0078125, %v613_v55 }
  0xc6   : > { %v1627_v47 = vsub.f32 %v1552_v63, %v623_v41 }
  0xc7   : > { %v1634_v56 = vsub.f32 %v1570_v27, %v624_v8  ;;  %v721_v8 = vld [vmem:[%s1700_s21] sm:$0xff] }
  0xc8   : > { %v639_v25 = vmul.f32 %v1627_v47, %v1627_v47  ;;  %645 = vadd.xlane.f32.xlu0 %v636_v54 }
  0xc9   : > { %v607_v20 = vpop.xlane.xlu0 %606  ;;  %v640_v60 = vmul.f32 %v1634_v56, %v1634_v56 }
  0xca   : > { %651 = vadd.xlane.f32.xlu1 %v639_v25  ;;  %v621_v59 = vmul.f32 0.0078125, %v607_v20 }
  0xcc   : > { %v1639_v63 = vsub.f32 %v1586_v0, %v621_v59 }
  0xce   : > { %653 = vadd.xlane.f32.xlu1 %v640_v60  ;;  %v615_v61 = vpop.xlane.xlu1 %614  ;;  %v637_v30 = vmul.f32 %v1639_v63, %v1639_v63 }
  0xcf   : > { %v625_v45 = vmul.f32 0.0078125, %v615_v61 }
  0xd0   : > { %647 = vadd.xlane.f32.xlu0 %v637_v30 }
  0xd1   : > { %v1643_v57 = vsub.f32 %v600_v58, %v625_v45  ;;  %v1125_v58 = vpack.c.bf16 %v748_v19, %v747_v37  ;;  %v722_v45 = vld [vmem:[%s1700_s21 + $0x8] sm:$0xff] }
  0xd3   : > { %v641_v27 = vmul.f32 %v1643_v57, %v1643_v57  ;;  %v609_v34 = vpop.xlane.xlu0 %608  ;;  %1126 = vmatprep.subr.bf16.mxu0 %v1125_v58  ;;  %1142 = vmatprep.subr.bf16.mxu1 %v1125_v58 }
  0xd4   : > { %v622_v31 = vmul.f32 0.0078125, %v609_v34  ;;  %1128 = vmatpush3.bf16.msra.mxu0 %v1125_v58  ;;  %1150 = vmatpush3.bf16.msra.mxu1 %v1125_v58  ;;  %v723_v58 = vld [vmem:[%s1700_s21 + $0x10] sm:$0xff] }
  0xd5   : > { %655 = vadd.xlane.f32.xlu1 %v641_v27  ;;  %1130 = vmatprep.subr.bf16.mxu0 %v1129_v4 }
  0xd6   : > { %v1653_v0 = vsub.f32 %v597_v29, %v622_v31  ;;  %1143 = vmatprep.subr.bf16.mxu1 %v1129_v4 }
  0xd7   : > { %v617_v1 = vpop.xlane.xlu1 %616 }
  0xd8   : > { %v626_v35 = vmul.f32 0.0078125, %v617_v1  ;;  %v638_v51 = vmul.f32 %v1653_v0, %v1653_v0  ;;  %1132 = vmatpush3.bf16.msra.mxu0 %v1129_v4  ;;  %1151 = vmatpush3.bf16.msra.mxu1 %v1129_v4 }
  0xd9   : > { %1134 = vmatprep.subr.bf16.mxu0 %v1133_v49  ;;  %1144 = vmatprep.subr.bf16.mxu1 %v1133_v49 }
  0xda   : > { %v1663_v2 = vsub.f32 %v601_v33, %v626_v35  ;;  %649 = vadd.xlane.f32.xlu0 %v638_v51 }
  0xdc   : > { %v642_v46 = vmul.f32 %v1663_v2, %v1663_v2  ;;  %1136 = vmatpush3.bf16.msra.mxu0 %v1133_v49  ;;  %1152 = vmatpush3.bf16.msra.mxu1 %v1133_v49 }
  0xde   : > { %657 = vadd.xlane.f32.xlu1 %v642_v46  ;;  %v726_v46 = vld [vmem:[%s1700_s21 + $0x28] sm:$0xff] }
 0x151   : > { %v644_v22 = vpop.xlane.xlu0 %643 }
 0x152   : > { %v659_v23 = vmul.f32 0.0078125, %v644_v22 }
 0x154   : > { %v667_v28 = vadd.f32 1e-06, %v659_v23 }
 0x155   : > { %v646_v5 = vpop.xlane.xlu0 %645 }
 0x156   : > { %1195 = vrsqrt.f32 %v667_v28  ;;  %v660_v50 = vmul.f32 0.0078125, %v646_v5 }
 0x157   : > { %v652_v29 = vpop.xlane.xlu1 %651 }
 0x158   : > { %v663_v13 = vmul.f32 0.0078125, %v652_v29  ;;  %v668_v33 = vadd.f32 1e-06, %v660_v50  ;;  %v724_v50 = vld [vmem:[%s1700_s21 + $0x18] sm:$0xff] }
 0x15a   : > { %v671_v6 = vadd.f32 1e-06, %v663_v13  ;;  %1197 = vrsqrt.f32 %v668_v33 }
 0x15b   : > { %v654_v7 = vpop.xlane.xlu1 %653 }
 0x15c   : > { %1199 = vrsqrt.f32 %v671_v6  ;;  %v664_v18 = vmul.f32 0.0078125, %v654_v7  ;;  %v728_v7 = vld [vmem:[%s1700_s21 + $0x38] sm:$0xff] }
 0x15d   : > { %v648_v38 = vpop.xlane.xlu0 %647 }
 0x15e   : > { %v672_v36 = vadd.f32 1e-06, %v664_v18  ;;  %v661_v42 = vmul.f32 0.0078125, %v648_v38 }
 0x160   : > { %1201 = vrsqrt.f32 %v672_v36  ;;  %v1196_v17 = vpop.eup %1195  ;;  %v669_v39 = vadd.f32 1e-06, %v661_v42 }
 0x161   : > { %v683_v44 = vmul.f32 %v1196_v17, %v1619_v43 }
 0x162   : > { %1203 = vrsqrt.f32 %v669_v39  ;;  %v656_v24 = vpop.xlane.xlu1 %655 }
 0x163   : > { %v698_v41 = vmul.f32 %v1695_v26, %v683_v44  ;;  %v665_v55 = vmul.f32 0.0078125, %v656_v24 }
 0x164   : > { %v1198_v54 = vpop.eup %1197 }
 0x165   : > { %v713_v20 = vadd.f32 %v1706_v48, %v698_v41  ;;  %v684_v59 = vmul.f32 %v1198_v54, %v1624_v40  ;;  %v673_v43 = vadd.f32 1e-06, %v665_v55 }
 0x166   : > { %v1200_v25 = vpop.eup %1199 }
 0x167   : > { %v687_v60 = vmul.f32 %v1200_v25, %v1627_v47  ;;  %v729_v61 = vadd.f32 %v721_v8, %v713_v20  ;;  %v699_v30 = vmul.f32 %v1695_v26, %v684_v59  ;;  %1205 = vrsqrt.f32 %v673_v43  ;;  %v650_v31 = vpop.xlane.xlu0 %649 }
 0x168   : > { %v662_v14 = vmul.f32 0.0078125, %v650_v31 }
 0x169   : > { %v702_v27 = vmul.f32 %v1695_v26, %v687_v60  ;;  %1093 = vmatprep.mubr.f32.mxu0 %v729_v61  ;;  %v714_v9 = vadd.f32 %v1706_v48, %v699_v30 }
 0x16a   : > { %v1202_v34 = vpop.eup %1201  ;;  %v670_v35 = vadd.f32 1e-06, %v662_v14 }
 0x16b   : > { %v717_v40 = vadd.f32 %v1706_v48, %v702_v27  ;;  %v688_v1 = vmul.f32 %v1202_v34, %v1634_v56  ;;  %v730_v47 = vadd.f32 %v722_v45, %v714_v9  ;;  %v658_v53 = vpop.xlane.xlu1 %657 }
 0x16c   : > { %v1204_v32 = vpop.eup %1203  ;;  %1207 = vrsqrt.f32 %v670_v35  ;;  %v666_v3 = vmul.f32 0.0078125, %v658_v53 }
 0x16d   : > { %v733_v51 = vadd.f32 %v725_v10, %v717_v40  ;;  %v703_v15 = vmul.f32 %v1695_v26, %v688_v1  ;;  %1094 = vmatmul.mubr.f32.vlgmr.msra.gmra.mrb[0].mxu0 %v730_v47  ;;  %v685_v11 = vmul.f32 %v1204_v32, %v1639_v63  ;;  %v727_v63 = vld [vmem:[%s1700_s21 + $0x30] sm:$0xff]  ;;  %s1211_s21 = scalar_lea.vmem %s1751_s10, 1024 }
 0x16e   : > { %v674_v37 = vadd.f32 1e-06, %v666_v3  ;;  %p1212_p11 = scmp.ne.s32.totalorder %s1751_s10, %s1211_s21  ;;  %p1219_p1 = scmp.lt.s32.totalorder %s1217_s23, %s1211_s21 }
 0x16f   : > { %1099 = vmatprep.mubr.f32.mxu1 %v733_v51  ;;  %v718_v16 = vadd.f32 %v1706_v48, %v703_v15  ;;  %v700_v56 = vmul.f32 %v1695_v26, %v685_v11 }
 0x170   : > { %1209 = vrsqrt.f32 %v674_v37  ;;  %p1213_p12 = pnand %p1212_p11, %p1361_p5  ;;  %p1220_p2 = por %p1219_p1, %p1218_p0 }
 0x171   : > { %v734_v19 = vadd.f32 %v726_v46, %v718_v16  ;;  %v1206_v62 = vpop.eup %1205  ;;  %v715_v52 = vadd.f32 %v1706_v48, %v700_v56 }
 0x172   : > { %v689_v4 = vmul.f32 %v1206_v62, %v1643_v57  ;;  %p1214_p13 = pneg %p1213_p12 }
 0x173   : > { %1100 = vmatmul.mubr.f32.vlgmr.msra.gmra.mrb[0].mxu1 %v734_v19  ;;  %v731_v12 = vadd.f32 %v723_v58, %v715_v52 }
 0x174   : > { %v704_v21 = vmul.f32 %v1695_v26, %v689_v4  ;;  %p1221_p3 = pnand %p1220_p2, %p1214_p13 }
 0x175   : > { %1096 = vmatprep.mubr.f32.mxu0 %v731_v12 }
 0x176   : > { %v719_v49 = vadd.f32 %v1706_v48, %v704_v21  ;;  %v1208_v22 = vpop.eup %1207 }
 0x177   : > { %v686_v23 = vmul.f32 %v1208_v22, %v1653_v0  ;;  %v1029_v0 = vld [vmem:[%s1803_s7] ss:$0 sm:$0xff] }
 0x178   : > { %v735_v28 = vadd.f32 %v727_v63, %v719_v49 }
 0x179   : > { %v701_v5 = vmul.f32 %v1695_v26, %v686_v23 }
 0x17a   : > { %1102 = vmatprep.mubr.f32.mxu1 %v735_v28  ;;  %v1210_v29 = vpop.eup %1209 }
 0x17b   : > { %v716_v57 = vadd.f32 %v1706_v48, %v701_v5  ;;  %v690_v13 = vmul.f32 %v1210_v29, %v1663_v2 }
 0x17d   : > { %v732_v33 = vadd.f32 %v724_v50, %v716_v57  ;;  %v705_v6 = vmul.f32 %v1695_v26, %v690_v13 }
 0x17f   : > { %1097 = vmatmul.mubr.f32.gmra.mrb[2].mxu0 %v732_v33  ;;  %v720_v18 = vadd.f32 %v1706_v48, %v705_v6 }
 0x181   : > { %v736_v36 = vadd.f32 %v728_v7, %v720_v18 }
 0x183   : > { %1103 = vmatmul.mubr.f32.gmra.mrb[2].mxu1 %v736_v36 }
 0x240   : > { %v1095_v38 = vpop.f32.mrb[0].mxu0 }
 0x241   : > { %v832_v42 = vadd.f32 %v1095_v38, %v1029_v0  ;;  %v826_v2 = vpop.f32.mrb[1].mxu0 }
 0x242   : > { %v827_v17 = vadd.f32 %v1029_v0, %v826_v2 }
 0x243   : > { %866 = vst [vmem:[%s313_s18 + $0x8] sm:$0xff] %v832_v42 }
 0x244   : > { %865 = vst [vmem:[%s313_s18] sm:$0xff] %v827_v17 }
 0x246   : > { %v1101_v26 = vpop.f32.mrb[0].mxu1 }
 0x247   : > { %v852_v39 = vadd.f32 %v1101_v26, %v1029_v0  ;;  %v846_v44 = vpop.f32.mrb[1].mxu1 }
 0x248   : > { %v847_v48 = vadd.f32 %v1029_v0, %v846_v44 }
 0x249   : > { %870 = vst [vmem:[%s313_s18 + $0x28] sm:$0xff] %v852_v39 }
 0x24a   : > { %869 = vst [vmem:[%s313_s18 + $0x20] sm:$0xff] %v847_v48 }
 0x252   : > { %v1098_v24 = vpop.f32.mrb[2].mxu0 }
 0x253   : > { %v842_v41 = vadd.f32 %v1098_v24, %v1029_v0  ;;  %v836_v54 = vpop.f32.mrb[3].mxu0 }
 0x254   : > { %v837_v55 = vadd.f32 %v1029_v0, %v836_v54 }
 0x255   : > { %868 = vst [vmem:[%s313_s18 + $0x18] sm:$0xff] %v842_v41 }
 0x256   : > { %867 = vst [vmem:[%s313_s18 + $0x10] sm:$0xff] %v837_v55  ;;  %v1104_v8 = vpop.f32.mrb[2].mxu1 }
 0x257   : > { %v862_v25 = vadd.f32 %v1104_v8, %v1029_v0  ;;  %v856_v20 = vpop.f32.mrb[3].mxu1 }
 0x258   : > { %v857_v59 = vadd.f32 %v1029_v0, %v856_v20 }
 0x259   : > { %872 = vst [vmem:[%s313_s18 + $0x38] sm:$0xff] %v862_v25 }
 0x25a   : > { %871 = vst [vmem:[%s313_s18 + $0x30] sm:$0xff] %v857_v59 }
 0x25b   : > { %1224 = shalt.err (!%p1221_p3)
}
 0x25c   : > { %s1225_s17 = scalar_lea.hbm %s1749_s19, 1024  ;;  %s1229_s18 = scalar_lea.hbm %s1804_s8, 2048 }
 0x25d   : > { %p1226_p4 = scmp.ne.s32.totalorder %s1749_s19, %s1225_s17  ;;  %p1230_p9 = scmp.lt.u32.totalorder %s1749_s19, %s1804_s8 }
 0x25e   : > { %p1231_p10 = scmp.lt.u32.totalorder %s1229_s18, %s1225_s17  ;;  %p1233_p12 = scmp.lt.u32.totalorder %s1225_s17, %s1749_s19 }
 0x25f   : > { %p1227_p7 = pnand %p1226_p4, %p1361_p5 }
 0x260   : > { %p1232_p11 = por %p1231_p10, %p1230_p9 }
 0x261   : > { %p1228_p8 = pneg %p1227_p7 }
 0x262   : > { %p1234_p13 = por %p1233_p12, %p1232_p11 }
 0x264   : > { %p1235_p0 = pnand %p1234_p13, %p1228_p8 }
 0x266   : > { %1238 = shalt.err (!%p1235_p0)
}
 0x267   : > { %s1276_s13 = smov 128   ;;  %s1277_s21 = smov 8  }
 0x268   : > { %1154 = dma.vmem_to_hbm [thread:$0]  (%p1361_p5), %s1751_s10, 1024, %s1749_s19, %s1755_s9, %s1276_s13, %s1276_s13, %s1277_s21  }
 0x269 PF: > { %p1160_p1 = scmp.ge.s32.totalorder %s1273_s30, 2  ;;  %s902_s20 = sand.u32 1, %s1261_s27  }
 0x26a   : > { %s903_s22 = scalar_lea.sflag [#allocation3], %s902_s20 }
 0x26b   : > { %p1157_p2 = pnand %p1160_p1, %p1365_p6 }
 0x26d   : > { %1256 = dma.done.wait (!%p1157_p2), %s903_s22, 1024  }
 0x26e   : > { %1258 = vsyncadd (!%p1157_p2), %s903_s22, 4294966272  ;;  %p18_p3 = scmp.ge.s32.totalorder %s1348_s11, 4   ;;  %s1807_s27 = smov %s1265_s28 }
 0x26f   : > { %s1808_s28 = smov %s1269_s29  ;;  %s1809_s29 = smov %s1359_s14 }
 0x270   : > { %s1810_s30 = smov %s1348_s11  ;;  %20 = sbr.rel (!%p18_p3) target bundleno = 3 (0x3), region = 92 }
 0x277   :  { %908 = vsyncpa [#allocation3], 1 }
 0x278   :  { %910 = vsyncpa [#allocation3 + $0x1], 1 }

// kernel: attention_pallas.2
= control target key start
LH: loop header
LB: loop body
LE: loop exit
PB: predicated region body
PF: predicated region fallthrough
CT: control target
= control target key end

     0   :  { %s6122_s15 = smov 0   ;;  %s7747_s0 = inlined_call_operand.vmem [shape: f32[2,64,128], index: 0, kind: input, shape index: {}]   ;;  %s7748_s1 = inlined_call_operand.vmem [shape: f32[128,384], index: 1, kind: input, shape index: {}]   ;;  %s7749_s2 = inlined_call_operand.vmem [shape: f32[1,384], index: 2, kind: input, shape index: {}]   ;;  %s7750_s3 = inlined_call_operand.vmem [shape: f32[2,64,128], index: 3, kind: output, shape index: {0}]   ;;  %s7751_s4 = inlined_call_operand.vmem [shape: f32[2,64,128], index: 4, kind: output, shape index: {1}]  }
   0x1 LB: > { %s4149_s16 = sadd.s32 4294967295, %s6087_s15   ;;  %p4153_p0 = scmp.ge.s32.totalorder %s6087_s15, 1  ;;  %s6087_s15 = sphi %s6122_s15, %s15_s15  }
   0x2   : > { %p165_p1 = scmp.lt.s32.totalorder %s6087_s15, 3 }
   0x4   : > { %p166_p2 = pnand %p4153_p0, %p165_p1 }
   0x6   : > { %169 = sbr.rel (%p166_p2) target bundleno = 5397 (0x1515), region = 32 }
   0xd   : > { %v220_v0 = vld [vmem:[%s7748_s1 + $0x8] sm:$0xff]  ;;  %v223_v1 = vld [vmem:[%s7748_s1 + $0x20] sm:$0xff]  ;;  %p196_p3 = scmp.lt.s32.totalorder %s4149_s16, 1  ;;  %v222_v4 = vld [vmem:[%s7748_s1 + $0x18] sm:$0xff]  ;;  %v6089_v7 = vmov 0.0   ;;  %v269_v57 = vlaneseq  ;;  %vm518_vm0 = vcmask 130048  }
   0xe   : > { %v219_v2 = vld [vmem:[%s7748_s1] sm:$0xff]  ;;  %v5129_v3 = vpack.c.bf16 %v223_v1, %v220_v0  ;;  %v226_v5 = vld [vmem:[%s7748_s1 + $0x38] sm:$0xff]  ;;  %v229_v6 = vld [vmem:[%s7748_s1 + $0x50] sm:$0xff]  ;;  %348 = vmatprep.mubr.f32.mxu0 %v6089_v7  ;;  %vm672_vm2 = vcmask 523264   ;;  %s6090_s26 = smov 112   ;;  %s6091_s27 = smov 96  }
   0xf   : > { %v5131_v8 = vpack.c.bf16 %v222_v4, %v219_v2  ;;  %v5133_v9 = vpack.c.bf16 %v229_v6, %v226_v5  ;;  %v225_v10 = vld [vmem:[%s7748_s1 + $0x30] sm:$0xff]  ;;  %v228_v11 = vld [vmem:[%s7748_s1 + $0x48] sm:$0xff]  ;;  %s7803_s16 = smov (!%p196_p3, %s4149_s16), 1  ;;  %v235_v13 = vld [vmem:[%s7748_s1 + $0x80] sm:$0xff]  ;;  %v6271_v58 = vshrl.u32 %v269_v57, 7  ;;  %s6092_s28 = smov 80  }
  0x10   : > { %v232_v12 = vld [vmem:[%s7748_s1 + $0x68] sm:$0xff]  ;;  %5130 = vmatprep.subr.bf16.mxu0 %v5129_v3  ;;  %v5135_v14 = vpack.c.bf16 %v228_v11, %v225_v10  ;;  %s6161_s11 = sshll.u32 %s7803_s16, 6  ;;  %v231_v16 = vld [vmem:[%s7748_s1 + $0x60] sm:$0xff]  ;;  %v234_v17 = vld [vmem:[%s7748_s1 + $0x78] sm:$0xff]  ;;  %s6093_s29 = smov 64   ;;  %vm4000_vm3 = vcmask 261120  }
  0x11   : > { %5132 = vmatpush1.bf16.msra.mxu0 %v5131_v8  ;;  %v5137_v15 = vpack.c.bf16 %v235_v13, %v232_v12  ;;  %v238_v18 = vld [vmem:[%s7748_s1 + $0x98] sm:$0xff]  ;;  %v241_v19 = vld [vmem:[%s7748_s1 + $0xb0] sm:$0xff]  ;;  %s6179_s23 = scalar_lea.vmem %s7747_s0, %s6161_s11  ;;  %v5139_v20 = vpack.c.bf16 %v234_v17, %v231_v16  ;;  %v240_v23 = vld [vmem:[%s7748_s1 + $0xa8] sm:$0xff]  ;;  %v271_v59 = vsub.s32 0, %v6271_v58  ;;  %v275_v62 = vsub.s32 1, %v6271_v58  ;;  %s6441_s25 = scalar_lea.vmem %s7751_s4, %s6161_s11 }
  0x12   : > { %5134 = vmatprep.subr.bf16.mxu0 %v5133_v9  ;;  %v5141_v21 = vpack.c.bf16 %v241_v19, %v238_v18  ;;  %v237_v22 = vld [vmem:[%s7748_s1 + $0x90] sm:$0xff]  ;;  %v244_v24 = vld [vmem:[%s7748_s1 + $0xc8] sm:$0xff]  ;;  %v247_v25 = vld [vmem:[%s7748_s1 + $0xe0] sm:$0xff]  ;;  %s6094_s30 = smov 48   ;;  %s6095_s5 = smov 32   ;;  %vm4009_vm4 = vcmask 392192  }
  0x13   : > { %v211_v26 = vld [vmem:[%s6179_s23] sm:$0xff]  ;;  %v5143_v27 = vpack.c.bf16 %v240_v23, %v237_v22  ;;  %v5145_v28 = vpack.c.bf16 %v247_v25, %v244_v24  ;;  %v246_v30 = vld [vmem:[%s7748_s1 + $0xd8] sm:$0xff]  ;;  %v253_v32 = vld [vmem:[%s7748_s1 + $0x110] sm:$0xff]  ;;  %s6096_s6 = smov 16   ;;  %vm4026_vm5 = vcmask 654336   ;;  %vm4035_vm6 = vcmask 785408   ;;  %s7689_s9 = scalar_lea.vmem %s7750_s3, %s6161_s11 }
  0x14   : > { %4669 = vmatprep.mubr.f32.mxu1 %v211_v26  ;;  %v243_v29 = vld [vmem:[%s7748_s1 + $0xc0] sm:$0xff]  ;;  %v250_v31 = vld [vmem:[%s7748_s1 + $0xf8] sm:$0xff]  ;;  %v249_v35 = vld [vmem:[%s7748_s1 + $0xf0] sm:$0xff]  ;;  %vm4044_vm7 = vcmask 916480  }
  0x15   : > { %5136 = vmatpush1.bf16.msra.mxu0 %v5135_v14  ;;  %v5147_v33 = vpack.c.bf16 %v246_v30, %v243_v29  ;;  %v5149_v34 = vpack.c.bf16 %v253_v32, %v250_v31  ;;  %v252_v36 = vld [vmem:[%s7748_s1 + $0x108] sm:$0xff]  ;;  %v259_v38 = vld [vmem:[%s7748_s1 + $0x140] sm:$0xff]  ;;  %v258_v42 = vld [vmem:[%s7748_s1 + $0x138] sm:$0xff] }
  0x16   : > { %5138 = vmatprep.subr.bf16.mxu0 %v5137_v15  ;;  %v256_v37 = vld [vmem:[%s7748_s1 + $0x128] sm:$0xff]  ;;  %v5151_v39 = vpack.c.bf16 %v252_v36, %v249_v35  ;;  %v255_v41 = vld [vmem:[%s7748_s1 + $0x120] sm:$0xff]  ;;  %v262_v43 = vld [vmem:[%s7748_s1 + $0x158] sm:$0xff] }
  0x17   : > { %v5153_v40 = vpack.c.bf16 %v259_v38, %v256_v37  ;;  %v265_v44 = vld [vmem:[%s7748_s1 + $0x170] sm:$0xff]  ;;  %v5155_v45 = vpack.c.bf16 %v258_v42, %v255_v41  ;;  %v264_v48 = vld [vmem:[%s7748_s1 + $0x168] sm:$0xff]  ;;  %v6248_v52 = vld [vmem:[%s6179_s23 + $0x18] sm:$0xff] }
  0x18   : > { %v5157_v46 = vpack.c.bf16 %v265_v44, %v262_v43  ;;  %v261_v47 = vld [vmem:[%s7748_s1 + $0x150] sm:$0xff]  ;;  %v6238_v50 = vld [vmem:[%s6179_s23 + $0x8] sm:$0xff]  ;;  %v6253_v53 = vld [vmem:[%s6179_s23 + $0x20] sm:$0xff] }
  0x19   : > { %5140 = vmatpush1.bf16.msra.mxu0 %v5139_v20  ;;  %v5159_v49 = vpack.c.bf16 %v264_v48, %v261_v47  ;;  %v6243_v51 = vld [vmem:[%s6179_s23 + $0x10] sm:$0xff]  ;;  %v6258_v54 = vld [vmem:[%s6179_s23 + $0x28] sm:$0xff]  ;;  %v6268_v56 = vld [vmem:[%s6179_s23 + $0x38] sm:$0xff] }
  0x1a   : > { %5142 = vmatprep.subr.bf16.mxu0 %v5141_v21  ;;  %v6263_v55 = vld [vmem:[%s6179_s23 + $0x30] sm:$0xff]  ;;  %v6277_v60 = vld [vmem:[%s7749_s2] sm:$0x7]  ;;  %vm6291_vm1 = vmpackc.low %vm518_vm0, %vm518_vm0 }
  0x1b   : > { %v6280_v61 = vrot.slane %v6277_v60, %v271_v59  ;;  %v276_v2 = vrot.slane %v6277_v60, %v275_v62  ;;  %v224_v57 = vld [vmem:[%s7748_s1 + $0x28] sm:$0xff]  ;;  %v227_v59 = vld [vmem:[%s7748_s1 + $0x40] sm:$0xff]  ;;  %v230_v62 = vld [vmem:[%s7748_s1 + $0x58] sm:$0xff] }
  0x1d   : > { %5144 = vmatpush1.bf16.msra.mxu0 %v5143_v27 }
  0x1e   : > { %5146 = vmatprep.subr.bf16.mxu0 %v5145_v28 }
  0x21   : > { %5148 = vmatpush1.bf16.msra.mxu0 %v5147_v33 }
  0x22   : > { %5150 = vmatprep.subr.bf16.mxu0 %v5149_v34 }
  0x25   : > { %5152 = vmatpush1.bf16.msra.mxu0 %v5151_v39 }
  0x26   : > { %5154 = vmatprep.subr.bf16.mxu0 %v5153_v40 }
  0x29   : > { %5156 = vmatpush1.bf16.msra.mxu0 %v5155_v45 }
  0x2a   : > { %5158 = vmatprep.subr.bf16.mxu0 %v5157_v46 }
  0x2d   : > { %5160 = vmatpush1.bf16.msra.mxu0 %v5159_v49  ;;  %v221_v49 = vld [vmem:[%s7748_s1 + $0x10] sm:$0xff] }
  0x30   : > { %349 = vmatmul.mubr.f32.vlgmr.msra.gmra.mrb[0].mxu0 %v211_v26 }
  0x31   : > { %354 = vmatprep.mubr.f32.mxu0 %v6089_v7 }
  0x34   : > { %355 = vmatmul.mubr.f32.gmra.mrb[2].mxu0 %v6238_v50 }
  0x35   : > { %360 = vmatprep.mubr.f32.mxu0 %v6089_v7 }
  0x38   : > { %361 = vmatmul.mubr.f32.gmra.mrb[4].mxu0 %v6243_v51 }
  0x39   : > { %366 = vmatprep.mubr.f32.mxu0 %v6089_v7 }
  0x3c   : > { %367 = vmatmul.mubr.f32.gmra.mrb[6].mxu0 %v6248_v52 }
  0x3d   : > { %372 = vmatprep.mubr.f32.mxu0 %v6089_v7 }
  0x40   : > { %373 = vmatmul.mubr.f32.gmra.mrb[8].mxu0 %v6253_v53 }
  0x41   : > { %378 = vmatprep.mubr.f32.mxu0 %v6089_v7 }
  0x44   : > { %379 = vmatmul.mubr.f32.gmra.mrb[10].mxu0 %v6258_v54 }
  0x45   : > { %384 = vmatprep.mubr.f32.mxu0 %v6089_v7 }
  0x48   : > { %385 = vmatmul.mubr.f32.gmra.mrb[12].mxu0 %v6263_v55 }
  0x49   : > { %390 = vmatprep.mubr.f32.mxu0 %v6089_v7 }
  0x4c   : > { %391 = vmatmul.mubr.f32.gmra.mrb[14].mxu0 %v6268_v56 }
 0x103   : > { %v350_v63 = vpop.f32.mrb[0].mxu0 }
 0x104   : > { %v351_v0 = vadd.f32 %v350_v63, %v6280_v61  ;;  %v352_v1 = vpop.f32.mrb[1].mxu0  ;;  %v5165_v63 = vpack.c.bf16 %v230_v62, %v227_v59 }
 0x105   : > { %v353_v6 = vadd.f32 %v352_v1, %v276_v2  ;;  %v236_v1 = vld [vmem:[%s7748_s1 + $0x88] sm:$0xff] }
 0x106   : > { %v6285_v3 = vmul.f32 0.25, %v351_v0  ;;  %v233_v0 = vld [vmem:[%s7748_s1 + $0x70] sm:$0xff] }
 0x107   : > { %v356_v4 = vpop.f32.mrb[2].mxu0 }
 0x108   : > { %v358_v5 = vpop.f32.mrb[3].mxu0  ;;  %4697 = vmatprep.mubr.msk.f32.mxu0 %vm518_vm0, %v6285_v3  ;;  %v357_v35 = vadd.f32 %v356_v4, %v6280_v61  ;;  %v239_v4 = vld [vmem:[%s7748_s1 + $0xa0] sm:$0xff] }
 0x109   : > { %v359_v7 = vadd.f32 %v358_v5, %v276_v2  ;;  %v242_v5 = vld [vmem:[%s7748_s1 + $0xb8] sm:$0xff] }
 0x10a   : > { %v6321_v37 = vmul.f32 0.25, %v357_v35 }
 0x10b   : > { %v362_v9 = vpop.f32.mrb[4].mxu0  ;;  %v5193_v10 = vpack.c.bf16 %v359_v7, %v353_v6  ;;  %v6295_v11 = vpack.i.bf16 %v359_v7, %v353_v6  ;;  %v5173_v6 = vpack.c.bf16 %v242_v5, %v239_v4  ;;  %v245_v7 = vld [vmem:[%s7748_s1 + $0xd0] sm:$0xff] }
 0x10c   : > { %v364_v12 = vpop.f32.mrb[5].mxu0  ;;  %v363_v36 = vadd.f32 %v362_v9, %v6280_v61  ;;  %v248_v9 = vld [vmem:[%s7748_s1 + $0xe8] sm:$0xff] }
 0x10d   : > { %5195 = vmatprep.subr.msk.bf16.mxu0 %vm6291_vm1, %v5193_v10  ;;  %v365_v15 = vadd.f32 %v364_v12, %v276_v2  ;;  %v251_v12 = vld [vmem:[%s7748_s1 + $0x100] sm:$0xff] }
 0x10e   : > { %5198 = vmatpush3.bf16.xpose.msk.msra.mxu0 %vm6291_vm1, %v5193_v10  ;;  %v6324_v39 = vmul.f32 0.25, %v363_v36  ;;  %v5177_v10 = vpack.c.bf16 %v248_v9, %v245_v7 }
 0x10f   : > { %v368_v13 = vpop.f32.mrb[6].mxu0 }
 0x110   : > { %v370_v14 = vpop.f32.mrb[7].mxu0  ;;  %v369_v38 = vadd.f32 %v368_v13, %v6280_v61  ;;  %v254_v13 = vld [vmem:[%s7748_s1 + $0x118] sm:$0xff] }
 0x111   : > { %v371_v16 = vadd.f32 %v370_v14, %v276_v2  ;;  %v5181_v14 = vpack.c.bf16 %v254_v13, %v251_v12 }
 0x112   : > { %v6331_v41 = vmul.f32 0.25, %v369_v38 }
 0x113   : > { %v374_v17 = vpop.f32.mrb[8].mxu0  ;;  %v5199_v18 = vpack.c.bf16 %v371_v16, %v365_v15  ;;  %v6301_v19 = vpack.i.bf16 %v371_v16, %v365_v15  ;;  %v257_v15 = vld [vmem:[%s7748_s1 + $0x130] sm:$0xff]  ;;  %v260_v16 = vld [vmem:[%s7748_s1 + $0x148] sm:$0xff] }
 0x114   : > { %v376_v20 = vpop.f32.mrb[9].mxu0  ;;  %v375_v40 = vadd.f32 %v374_v17, %v6280_v61  ;;  %v5185_v17 = vpack.c.bf16 %v260_v16, %v257_v15 }
 0x115   : > { %5201 = vmatprep.subr.msk.bf16.mxu0 %vm6291_vm1, %v5199_v18  ;;  %v377_v23 = vadd.f32 %v376_v20, %v276_v2  ;;  %v266_v20 = vld [vmem:[%s7748_s1 + $0x178] sm:$0xff] }
 0x116   : > { %5204 = vmatpush3.bf16.xpose.msk.msra.mxu0 %vm6291_vm1, %v5199_v18  ;;  %v6334_v43 = vmul.f32 0.25, %v375_v40  ;;  %v263_v18 = vld [vmem:[%s7748_s1 + $0x160] sm:$0xff] }
 0x117   : > { %v380_v21 = vpop.f32.mrb[10].mxu0 }
 0x118   : > { %v382_v22 = vpop.f32.mrb[11].mxu0  ;;  %v381_v42 = vadd.f32 %v380_v21, %v6280_v61  ;;  %v5189_v21 = vpack.c.bf16 %v266_v20, %v263_v18 }
 0x119   : > { %v383_v24 = vadd.f32 %v382_v22, %v276_v2 }
 0x11a   : > { %v6341_v45 = vmul.f32 0.25, %v381_v42  ;;  %v279_v42 = vsub.s32 2, %v6271_v58 }
 0x11b   : > { %v386_v25 = vpop.f32.mrb[12].mxu0  ;;  %v5205_v26 = vpack.c.bf16 %v383_v24, %v377_v23  ;;  %v6307_v27 = vpack.i.bf16 %v383_v24, %v377_v23 }
 0x11c   : > { %v388_v28 = vpop.f32.mrb[13].mxu0  ;;  %v387_v44 = vadd.f32 %v386_v25, %v6280_v61 }
 0x11d   : > { %5207 = vmatprep.subr.msk.bf16.mxu0 %vm6291_vm1, %v5205_v26  ;;  %v389_v31 = vadd.f32 %v388_v28, %v276_v2 }
 0x11e   : > { %5210 = vmatpush3.bf16.xpose.msk.msra.mxu0 %vm6291_vm1, %v5205_v26  ;;  %v6344_v47 = vmul.f32 0.25, %v387_v44 }
 0x11f   : > { %v392_v29 = vpop.f32.mrb[14].mxu0 }
 0x120   : > { %v394_v30 = vpop.f32.mrb[15].mxu0  ;;  %v393_v46 = vadd.f32 %v392_v29, %v6280_v61  ;;  %v5161_v61 = vpack.c.bf16 %v224_v57, %v221_v49  ;;  %v280_v49 = vrot.slane %v6277_v60, %v279_v42 }
 0x121   : > { %v395_v32 = vadd.f32 %v394_v30, %v276_v2  ;;  %v5169_v2 = vpack.c.bf16 %v236_v1, %v233_v0 }
 0x122   : > { %v6350_v48 = vmul.f32 0.25, %v393_v46  ;;  %5162 = vmatprep.subr.bf16.mxu1 %v5161_v61 }
 0x123   : > { %v5211_v33 = vpack.c.bf16 %v395_v32, %v389_v31  ;;  %v6313_v34 = vpack.i.bf16 %v395_v32, %v389_v31  ;;  %5164 = vmatpush3.bf16.msra.mxu1 %v5161_v61 }
 0x124   : > { %5166 = vmatprep.subr.bf16.mxu1 %v5165_v63 }
 0x125   : > { %5213 = vmatprep.subr.msk.bf16.mxu0 %vm6291_vm1, %v5211_v33 }
 0x126   : > { %5216 = vmatpush3.bf16.xpose.msk.msra.mxu0 %vm6291_vm1, %v5211_v33 }
 0x127   : > { %5168 = vmatpush3.bf16.msra.mxu1 %v5165_v63 }
 0x128   : > { %5170 = vmatprep.subr.bf16.mxu1 %v5169_v2 }
 0x12b   : > { %5172 = vmatpush3.bf16.msra.mxu1 %v5169_v2 }
 0x12c   : > { %5174 = vmatprep.subr.bf16.mxu1 %v5173_v6 }
 0x12d   : > { %4698 = vmatmul.mubr.msk.f32.vlgmr.msra.gmra.mrb[16].mxu0 %vm518_vm0, %v6321_v37 }
 0x12e   : > { %4700 = vmatprep.mubr.msk.f32.mxu0 %vm518_vm0, %v6324_v39 }
 0x12f   : > { %5176 = vmatpush3.bf16.msra.mxu1 %v5173_v6 }
 0x130   : > { %5178 = vmatprep.subr.bf16.mxu1 %v5177_v10 }
 0x131   : > { %4701 = vmatmul.mubr.msk.f32.gmra.mrb[18].mxu0 %vm518_vm0, %v6331_v41 }
 0x132   : > { %4703 = vmatprep.mubr.msk.f32.mxu0 %vm518_vm0, %v6334_v43 }
 0x133   : > { %5180 = vmatpush3.bf16.msra.mxu1 %v5177_v10 }
 0x134   : > { %5182 = vmatprep.subr.bf16.mxu1 %v5181_v14 }
 0x135   : > { %4704 = vmatmul.mubr.msk.f32.gmra.mrb[20].mxu0 %vm518_vm0, %v6341_v45 }
 0x136   : > { %4706 = vmatprep.mubr.msk.f32.mxu0 %vm518_vm0, %v6344_v47 }
 0x137   : > { %5184 = vmatpush3.bf16.msra.mxu1 %v5181_v14 }
 0x138   : > { %5186 = vmatprep.subr.bf16.mxu1 %v5185_v17 }
 0x139   : > { %4707 = vmatmul.mubr.msk.f32.gmra.mrb[22].mxu0 %vm518_vm0, %v6350_v48 }
 0x13b   : > { %5188 = vmatpush3.bf16.msra.mxu1 %v5185_v17 }
 0x13c   : > { %5190 = vmatprep.subr.bf16.mxu1 %v5189_v21 }
 0x13f   : > { %5192 = vmatpush3.bf16.msra.mxu1 %v5189_v21 }
 0x142   : > { %4670 = vmatmul.mubr.f32.vlgmr.msra.gmra.mrb[0].mxu1 %v6238_v50 }
 0x143   : > { %4672 = vmatprep.mubr.f32.mxu1 %v6243_v51 }
 0x146   : > { %4673 = vmatmul.mubr.f32.gmra.mrb[2].mxu1 %v6248_v52 }
 0x147   : > { %4675 = vmatprep.mubr.f32.mxu1 %v6253_v53 }
 0x14a   : > { %4676 = vmatmul.mubr.f32.gmra.mrb[4].mxu1 %v6258_v54 }
 0x14b   : > { %4678 = vmatprep.mubr.f32.mxu1 %v6263_v55 }
 0x14e   : > { %4679 = vmatmul.mubr.f32.gmra.mrb[6].mxu1 %v6268_v56 }
 0x200   : > { %v4699_v22 = vpop.f32.mrb[16].mxu0 }
 0x201   : > { %v633_v23 = vpop.f32.mrb[17].mxu0  ;;  %v676_v52 = vsel %vm672_vm2, %v4699_v22, -inf }
 0x202   : > { %v673_v24 = vsel %vm672_vm2, %v633_v23, -inf }
 0x203   : > { %674 = vmax.xlane.f32.xlu0 %v673_v24 }
 0x204   : > { %v6410_v25 = vpop.f32.mrb[18].mxu0 }
 0x205   : > { %v6412_v50 = vpop.f32.mrb[19].mxu0  ;;  %v682_v51 = vsel %vm672_vm2, %v6410_v25, -inf }
 0x206   : > { %683 = vmax.xlane.f32.xlu1 %v682_v51  ;;  %v679_v55 = vsel %vm672_vm2, %v6412_v50, -inf }
 0x207   : > { %677 = vmax.xlane.f32.xlu0 %v676_v52 }
 0x208   : > { %v6417_v53 = vpop.f32.mrb[20].mxu0 }
 0x209   : > { %v6419_v54 = vpop.f32.mrb[21].mxu0  ;;  %v688_v29 = vsel %vm672_vm2, %v6417_v53, -inf }
 0x20a   : > { %680 = vmax.xlane.f32.xlu1 %v679_v55  ;;  %v685_v56 = vsel %vm672_vm2, %v6419_v54, -inf }
 0x20b   : > { %686 = vmax.xlane.f32.xlu0 %v685_v56 }
 0x20c   : > { %v6425_v26 = vpop.f32.mrb[22].mxu0 }
 0x20d   : > { %v6427_v28 = vpop.f32.mrb[23].mxu0  ;;  %v694_v31 = vsel %vm672_vm2, %v6425_v26, -inf }
 0x20e   : > { %689 = vmax.xlane.f32.xlu1 %v688_v29  ;;  %v691_v30 = vsel %vm672_vm2, %v6427_v28, -inf }
 0x20f   : > { %692 = vmax.xlane.f32.xlu0 %v691_v30 }
 0x212   : > { %695 = vmax.xlane.f32.xlu1 %v694_v31 }
 0x215   : > { %v4671_v44 = vpop.f32.mrb[0].mxu1 }
 0x216   : > { %v463_v46 = vpop.f32.mrb[1].mxu1  ;;  %v6443_v61 = vadd.f32 %v4671_v44, %v280_v49 }
 0x217   : > { %v6445_v62 = vadd.f32 %v463_v46, %v280_v49 }
 0x218   : > { %503 = vst [vmem:[%s6441_s25 + $0x8] sm:$0xff] %v6443_v61 }
 0x219   : > { %v4674_v57 = vpop.f32.mrb[2].mxu1  ;;  %502 = vst [vmem:[%s6441_s25] sm:$0xff] %v6445_v62  ;;  %v5217_v4 = vpack.c.bf16 %v6443_v61, %v6445_v62 }
 0x21a   : > { %v473_v59 = vpop.f32.mrb[3].mxu1  ;;  %v6447_v58 = vadd.f32 %v4674_v57, %v280_v49 }
 0x21b   : > { %v6449_v63 = vadd.f32 %v473_v59, %v280_v49  ;;  %5218 = vmatprep.subr.bf16.mxu1 %v5217_v4 }
 0x21c   : > { %505 = vst [vmem:[%s6441_s25 + $0x18] sm:$0xff] %v6447_v58  ;;  %5220 = vmatpush3.bf16.msra.mxu1 %v5217_v4 }
 0x21d   : > { %504 = vst [vmem:[%s6441_s25 + $0x10] sm:$0xff] %v6449_v63  ;;  %v4677_v5 = vpop.f32.mrb[4].mxu1  ;;  %v5221_v10 = vpack.c.bf16 %v6447_v58, %v6449_v63 }
 0x21e   : > { %v6469_v6 = vadd.f32 %v4677_v5, %v280_v49  ;;  %v483_v7 = vpop.f32.mrb[5].mxu1 }
 0x21f   : > { %v6471_v9 = vadd.f32 %v483_v7, %v280_v49  ;;  %5222 = vmatprep.subr.bf16.mxu1 %v5221_v10 }
 0x220   : > { %507 = vst [vmem:[%s6441_s25 + $0x28] sm:$0xff] %v6469_v6  ;;  %5224 = vmatpush3.bf16.msra.mxu1 %v5221_v10 }
 0x221   : > { %506 = vst [vmem:[%s6441_s25 + $0x20] sm:$0xff] %v6471_v9  ;;  %v4680_v12 = vpop.f32.mrb[6].mxu1  ;;  %v5225_v13 = vpack.c.bf16 %v6469_v6, %v6471_v9 }
 0x222   : > { %v6481_v14 = vadd.f32 %v4680_v12, %v280_v49  ;;  %v493_v15 = vpop.f32.mrb[7].mxu1 }
 0x223   : > { %v6483_v16 = vadd.f32 %v493_v15, %v280_v49  ;;  %5226 = vmatprep.subr.bf16.mxu1 %v5225_v13 }
 0x224   : > { %509 = vst [vmem:[%s6441_s25 + $0x38] sm:$0xff] %v6481_v14  ;;  %5228 = vmatpush3.bf16.msra.mxu1 %v5225_v13 }
 0x225   : > { %508 = vst [vmem:[%s6441_s25 + $0x30] sm:$0xff] %v6483_v16  ;;  %v5229_v17 = vpack.c.bf16 %v6481_v14, %v6483_v16 }
 0x227   : > { %5230 = vmatprep.subr.bf16.mxu1 %v5229_v17 }
 0x228   : > { %5232 = vmatpush3.bf16.msra.mxu1 %v5229_v17 }
 0x290   : > { %v675_v32 = vpop.xlane.xlu0 %674 }
 0x291   : > { %v697_v33 = vsub.f32 %v633_v23, %v675_v32 }
 0x293   : > { %v705_v35 = vmul.f32 1.442695, %v697_v33  ;;  %v684_v18 = vpop.xlane.xlu1 %683 }
 0x294   : > { %v678_v36 = vpop.xlane.xlu0 %677  ;;  %v700_v23 = vsub.f32 %v6410_v25, %v684_v18 }
 0x295   : > { %5809 = vpow2.f32 %v705_v35  ;;  %v698_v38 = vsub.f32 %v4699_v22, %v678_v36 }
 0x296   : > { %v711_v55 = vmul.f32 1.442695, %v700_v23 }
 0x297   : > { %v707_v40 = vmul.f32 1.442695, %v698_v38  ;;  %v681_v20 = vpop.xlane.xlu1 %680 }
 0x298   : > { %v699_v21 = vsub.f32 %v6412_v50, %v681_v20  ;;  %v687_v22 = vpop.xlane.xlu0 %686 }
 0x299   : > { %5811 = vpow2.f32 %v707_v40  ;;  %v701_v51 = vsub.f32 %v6419_v54, %v687_v22 }
 0x29a   : > { %v709_v24 = vmul.f32 1.442695, %v699_v21 }
 0x29b   : > { %v690_v52 = vpop.xlane.xlu1 %689  ;;  %v713_v56 = vmul.f32 1.442695, %v701_v51 }
 0x29c   : > { %5813 = vpow2.f32 %v709_v24  ;;  %v702_v29 = vsub.f32 %v6417_v53, %v690_v52  ;;  %v693_v40 = vpop.xlane.xlu0 %692 }
 0x29d   : > { %5815 = vpow2.f32 %v711_v55  ;;  %v703_v42 = vsub.f32 %v6427_v28, %v693_v40 }
 0x29e   : > { %5817 = vpow2.f32 %v713_v56  ;;  %v715_v30 = vmul.f32 1.442695, %v702_v29 }
 0x29f   : > { %v6459_v60 = vpop.eup %5809  ;;  %v696_v36 = vpop.xlane.xlu1 %695  ;;  %v717_v46 = vmul.f32 1.442695, %v703_v42 }
 0x2a0   : > { %v721_v0 = vsel %vm672_vm2, %v6459_v60, 0.0  ;;  %5819 = vpow2.f32 %v715_v30  ;;  %v704_v38 = vsub.f32 %v6425_v26, %v696_v36 }
 0x2a1   : > { %722 = vadd.xlane.f32.xlu0 %v721_v0 }
 0x2a2   : > { %v719_v44 = vmul.f32 1.442695, %v704_v38 }
 0x2a3   : > { %v6463_v1 = vpop.eup %5811 }
 0x2a4   : > { %v724_v2 = vsel %vm672_vm2, %v6463_v1, 0.0  ;;  %5821 = vpow2.f32 %v719_v44 }
 0x2a5   : > { %725 = vadd.xlane.f32.xlu1 %v724_v2  ;;  %5823 = vpow2.f32 %v717_v46 }
 0x2a6   : > { %v6499_v31 = vpop.eup %5813 }
 0x2a7   : > { %v6501_v32 = vpop.eup %5815  ;;  %v727_v25 = vsel %vm672_vm2, %v6499_v31, 0.0 }
 0x2a8   : > { %v6505_v50 = vpop.eup %5817  ;;  %v730_v54 = vsel %vm672_vm2, %v6501_v32, 0.0 }
 0x2a9   : > { %v733_v53 = vsel %vm672_vm2, %v6505_v50, 0.0 }
 0x2aa   : > { %v6511_v33 = vpop.eup %5819 }
 0x2ab   : > { %v736_v35 = vsel %vm672_vm2, %v6511_v33, 0.0 }
 0x2ae   : > { %v6529_v49 = vpop.eup %5821 }
 0x2af   : > { %v742_v57 = vsel %vm672_vm2, %v6529_v49, 0.0  ;;  %v6533_v59 = vpop.eup %5823 }
 0x2b0   : > { %v739_v26 = vsel %vm672_vm2, %v6533_v59, 0.0 }
 0x2b6   : > { %5535 = vrot.lane.b32.xlu1 %v6301_v19, %s6090_s26 }
 0x2b7   : > { %5530 = vrot.lane.b32.xlu0 %v6295_v11, %s6090_s26 }
 0x2d6   : > { %728 = vadd.xlane.f32.xlu0 %v727_v25 }
 0x2da   : > { %731 = vadd.xlane.f32.xlu1 %v730_v54  ;;  %734 = vadd.xlane.f32.xlu0 %v733_v53 }
 0x2de   : > { %737 = vadd.xlane.f32.xlu1 %v736_v35 }
 0x2ef   : > { %5545 = vrot.lane.b32.xlu1 %v6313_v34, %s6090_s26 }
 0x2f0   : > { %5540 = vrot.lane.b32.xlu0 %v6307_v27, %s6090_s26 }
 0x2f4   : > { %890 = vrot.lane.b32.xlu0 %v6285_v3, %s6090_s26 }
 0x2f8   : > { %894 = vrot.lane.b32.xlu0 %v6324_v39, %s6090_s26 }
 0x2fc   : > { %898 = vrot.lane.b32.xlu0 %v6334_v43, %s6090_s26 }
 0x300   : > { %902 = vrot.lane.b32.xlu0 %v6344_v47, %s6090_s26 }
 0x313   : > { %743 = vadd.xlane.f32.xlu1 %v742_v57 }
 0x317   : > { %740 = vadd.xlane.f32.xlu1 %v739_v26 }
 0x328   : > { %892 = vrot.lane.b32.xlu1 %v6321_v37, %s6090_s26 }
 0x32c   : > { %896 = vrot.lane.b32.xlu1 %v6331_v41, %s6090_s26 }
 0x32e   : > { %v723_v28 = vpop.xlane.xlu0 %722 }
 0x32f   : > { %5825 = vrcp.f32 %v723_v28 }
 0x330   : > { %900 = vrot.lane.b32.xlu1 %v6341_v45, %s6090_s26 }
 0x332   : > { %v726_v0 = vpop.xlane.xlu1 %725  ;;  %v5531_v2 = vpop.permute.xlu0 %5530 }
 0x333   : > { %5827 = vrcp.f32 %v726_v0  ;;  %v5533_v4 = vunpack.i.h.bf16 %v5531_v2  ;;  %v5532_v5 = vunpack.i.l.bf16 %v5531_v2 }
 0x334   : > { %904 = vrot.lane.b32.xlu1 %v6350_v48, %s6090_s26 }
 0x335   : > { %v5233_v7 = vpack.c.bf16 %v5533_v4, %v5532_v5 }
 0x336   : > { %v5536_v12 = vpop.permute.xlu1 %5535 }
 0x337   : > { %5235 = vmatprep.subr.msk.bf16.mxu1 %vm6291_vm1, %v5233_v7  ;;  %v5538_v15 = vunpack.i.h.bf16 %v5536_v12  ;;  %v5537_v17 = vunpack.i.l.bf16 %v5536_v12 }
 0x339   : > { %v5826_v10 = vpop.eup %5825  ;;  %v5239_v21 = vpack.c.bf16 %v5538_v15, %v5537_v17 }
 0x33a   : > { %v753_v13 = vmul.f32 %v5826_v10, %v6459_v60 }
 0x33c   : > { %4725 = vmatprep.mubr.msk.f32.mxu1 %vm672_vm2, %v753_v13 }
 0x33d   : > { %v5828_v18 = vpop.eup %5827 }
 0x33e   : > { %v754_v20 = vmul.f32 %v5828_v18, %v6463_v1 }
 0x340   : > { %4726 = vmatmul.mubr.msk.f32.vlgmr.msra.gmra.mrb[8].mxu1 %vm672_vm2, %v754_v20 }
 0x341   : > { %5238 = vmatpush3.bf16.xpose.msk.msra.mxu1 %vm6291_vm1, %v5233_v7 }
 0x342   : > { %5241 = vmatprep.subr.msk.bf16.mxu1 %vm6291_vm1, %v5239_v21 }
 0x349   : > { %5244 = vmatpush3.bf16.xpose.msk.msra.mxu1 %vm6291_vm1, %v5239_v21 }
 0x363   : > { %v729_v60 = vpop.xlane.xlu0 %728 }
 0x364   : > { %5829 = vrcp.f32 %v729_v60 }
 0x367   : > { %v732_v22 = vpop.xlane.xlu1 %731  ;;  %v735_v23 = vpop.xlane.xlu0 %734 }
 0x368   : > { %5831 = vrcp.f32 %v732_v22 }
 0x369   : > { %5833 = vrcp.f32 %v735_v23 }
 0x36b   : > { %v738_v24 = vpop.xlane.xlu1 %737  ;;  %v5541_v1 = vpop.permute.xlu0 %5540 }
 0x36c   : > { %5835 = vrcp.f32 %v738_v24  ;;  %v5543_v51 = vunpack.i.h.bf16 %v5541_v1  ;;  %v5542_v52 = vunpack.i.l.bf16 %v5541_v1 }
 0x36e   : > { %v5830_v55 = vpop.eup %5829  ;;  %v5245_v56 = vpack.c.bf16 %v5543_v51, %v5542_v52 }
 0x36f   : > { %v5546_v29 = vpop.permute.xlu1 %5545  ;;  %v755_v30 = vmul.f32 %v5830_v55, %v6499_v31  ;;  %v891_v46 = vpop.permute.xlu0 %890 }
 0x370   : > { %v5548_v25 = vunpack.i.h.bf16 %v5546_v29  ;;  %v5547_v54 = vunpack.i.l.bf16 %v5546_v29  ;;  %5247 = vmatprep.subr.msk.bf16.mxu1 %vm6291_vm1, %v5245_v56 }
 0x371   : > { %4728 = vmatprep.mubr.msk.f32.mxu1 %vm672_vm2, %v755_v30  ;;  %5250 = vmatpush3.bf16.xpose.msk.msra.mxu1 %vm6291_vm1, %v5245_v56 }
 0x372   : > { %v5832_v53 = vpop.eup %5831  ;;  %v5251_v35 = vpack.c.bf16 %v5548_v25, %v5547_v54 }
 0x373   : > { %v5834_v36 = vpop.eup %5833  ;;  %v756_v38 = vmul.f32 %v5832_v53, %v6501_v32 }
 0x374   : > { %5253 = vmatprep.subr.msk.bf16.mxu1 %vm6291_vm1, %v5251_v35  ;;  %v757_v31 = vmul.f32 %v5834_v36, %v6505_v50  ;;  %v6617_v36 = vpack.i.bf16 %v6447_v58, %v6449_v63  ;;  %v6635_v58 = vpack.i.bf16 %v6443_v61, %v6445_v62 }
 0x375   : > { %4729 = vmatmul.mubr.msk.f32.gmra.mrb[10].mxu1 %vm672_vm2, %v756_v38  ;;  %v6623_v38 = vpack.i.bf16 %v6469_v6, %v6471_v9 }
 0x376   : > { %v5836_v40 = vpop.eup %5835  ;;  %4731 = vmatprep.mubr.msk.f32.mxu1 %vm672_vm2, %v757_v31  ;;  %v6629_v31 = vpack.i.bf16 %v6481_v14, %v6483_v16 }
 0x377   : > { %v758_v42 = vmul.f32 %v5836_v40, %v6511_v33  ;;  %v895_v33 = vpop.permute.xlu0 %894 }
 0x379   : > { %4732 = vmatmul.mubr.msk.f32.gmra.mrb[12].mxu1 %vm672_vm2, %v758_v42 }
 0x37a   : > { %5256 = vmatpush3.bf16.xpose.msk.msra.mxu1 %vm6291_vm1, %v5251_v35 }
 0x37b   : > { %v899_v4 = vpop.permute.xlu0 %898 }
 0x3a0   : > { %v744_v44 = vpop.xlane.xlu1 %743 }
 0x3a1   : > { %5837 = vrcp.f32 %v744_v44 }
 0x3a4   : > { %v741_v32 = vpop.xlane.xlu1 %740 }
 0x3a5   : > { %5839 = vrcp.f32 %v741_v32 }
 0x3a8   : > { %v893_v50 = vpop.permute.xlu1 %892 }
 0x3ab   : > { %v5838_v57 = vpop.eup %5837 }
 0x3ac   : > { %v760_v0 = vmul.f32 %v5838_v57, %v6529_v49  ;;  %v897_v2 = vpop.permute.xlu1 %896 }
 0x3af   : > { %v5840_v26 = vpop.eup %5839 }
 0x3b0   : > { %v759_v28 = vmul.f32 %v5840_v26, %v6533_v59  ;;  %v901_v5 = vpop.permute.xlu1 %900  ;;  %v903_v59 = vpop.permute.xlu0 %902 }
 0x3b2   : > { %4734 = vmatprep.mubr.msk.f32.mxu1 %vm672_vm2, %v759_v28 }
 0x3b3   : > { %4735 = vmatmul.mubr.msk.f32.gmra.mrb[14].mxu1 %vm672_vm2, %v760_v0 }
 0x3b4   : > { %4753 = vmatprep.mubr.msk.f32.mxu1 %vm518_vm0, %v891_v46  ;;  %v905_v49 = vpop.permute.xlu1 %904 }
 0x3b7   : > { %4754 = vmatmul.mubr.msk.f32.vlgmr.msra.gmra.mrb[16].mxu1 %vm518_vm0, %v893_v50 }
 0x3b8   : > { %4756 = vmatprep.mubr.msk.f32.mxu1 %vm518_vm0, %v895_v33 }
 0x3bb   : > { %4757 = vmatmul.mubr.msk.f32.gmra.mrb[18].mxu1 %vm518_vm0, %v897_v2 }
 0x3bc   : > { %4759 = vmatprep.mubr.msk.f32.mxu1 %vm518_vm0, %v899_v4 }
 0x3bf   : > { %4760 = vmatmul.mubr.msk.f32.gmra.mrb[20].mxu1 %vm518_vm0, %v901_v5 }
 0x3c0   : > { %4762 = vmatprep.mubr.msk.f32.mxu1 %vm518_vm0, %v903_v59 }
 0x3c3   : > { %4763 = vmatmul.mubr.msk.f32.gmra.mrb[22].mxu1 %vm518_vm0, %v905_v49 }
 0x413   : > { %v6585_v7 = vpop.f32.mrb[8].mxu1 }
 0x414   : > { %7754 = vst [vmem:[#allocation2_spill] sm:$0xff] %v6585_v7  ;;  %v6587_v10 = vpop.f32.mrb[9].mxu1 }
 0x415   : > { %7755 = vst [vmem:[#allocation3_spill] sm:$0xff] %v6587_v10 }
 0x448   : > { %v6589_v12 = vpop.f32.mrb[10].mxu1 }
 0x449   : > { %7756 = vst [vmem:[#allocation4_spill] sm:$0xff] %v6589_v12  ;;  %v6591_v13 = vpop.f32.mrb[11].mxu1 }
 0x44a   : > { %7757 = vst [vmem:[#allocation5_spill] sm:$0xff] %v6591_v13 }
 0x44c   : > { %v6593_v15 = vpop.f32.mrb[12].mxu1 }
 0x44d   : > { %7758 = vst [vmem:[#allocation6_spill] sm:$0xff] %v6593_v15  ;;  %v6595_v17 = vpop.f32.mrb[13].mxu1 }
 0x44e   : > { %7759 = vst [vmem:[#allocation7_spill] sm:$0xff] %v6595_v17 }
 0x486   : > { %v6597_v18 = vpop.f32.mrb[14].mxu1 }
 0x487   : > { %7760 = vst [vmem:[#allocation8_spill] sm:$0xff] %v6597_v18  ;;  %v6599_v20 = vpop.f32.mrb[15].mxu1 }
 0x488   : > { %7761 = vst [vmem:[#allocation9_spill] sm:$0xff] %v6599_v20 }
 0x48a   : > { %v4755_v21 = vpop.f32.mrb[16].mxu1 }
 0x48b   : > { %v1020_v60 = vpop.f32.mrb[17].mxu1  ;;  %v1062_v22 = vsel %vm672_vm2, %v4755_v21, -inf }
 0x48c   : > { %1063 = vmax.xlane.f32.xlu1 %v1062_v22  ;;  %v1059_v23 = vsel %vm672_vm2, %v1020_v60, -inf }
 0x48d   : > { %1060 = vmax.xlane.f32.xlu0 %v1059_v23 }
 0x48e   : > { %v4758_v24 = vpop.f32.mrb[18].mxu1 }
 0x48f   : > { %v1030_v1 = vpop.f32.mrb[19].mxu1  ;;  %v1068_v51 = vsel %vm672_vm2, %v4758_v24, -inf }
 0x490   : > { %v1065_v29 = vsel %vm672_vm2, %v1030_v1, -inf }
 0x491   : > { %1069 = vmax.xlane.f32.xlu0 %v1068_v51 }
 0x492   : > { %v4761_v52 = vpop.f32.mrb[20].mxu1 }
 0x493   : > { %v1040_v55 = vpop.f32.mrb[21].mxu1  ;;  %v1074_v56 = vsel %vm672_vm2, %v4761_v52, -inf }
 0x494   : > { %1075 = vmax.xlane.f32.xlu1 %v1074_v56  ;;  %v1071_v53 = vsel %vm672_vm2, %v1040_v55, -inf }
 0x495   : > { %1066 = vmax.xlane.f32.xlu0 %v1065_v29 }
 0x496   : > { %v6606_v30 = vpop.f32.mrb[22].mxu1 }
 0x497   : > { %v6608_v25 = vpop.f32.mrb[23].mxu1  ;;  %v1080_v54 = vsel %vm672_vm2, %v6606_v30, -inf }
 0x498   : > { %1081 = vmax.xlane.f32.xlu1 %v1080_v54  ;;  %v1077_v35 = vsel %vm672_vm2, %v6608_v25, -inf }
 0x499   : > { %1072 = vmax.xlane.f32.xlu0 %v1071_v53 }
 0x49d   : > { %1078 = vmax.xlane.f32.xlu0 %v1077_v35 }
 0x4a9   : > { %5555 = vrot.lane.b32.xlu1 %v6617_v36, %s6090_s26 }
 0x4ad   : > { %5560 = vrot.lane.b32.xlu1 %v6623_v38, %s6090_s26 }
 0x4b1   : > { %5565 = vrot.lane.b32.xlu1 %v6629_v31, %s6090_s26 }
 0x4b3   : > { %5550 = vrot.lane.b32.xlu0 %v6635_v58, %s6090_s26 }
 0x4b5   : > { %5575 = vrot.lane.b32.xlu1 %v6301_v19, %s6091_s27 }
 0x4b7   : > { %5570 = vrot.lane.b32.xlu0 %v6295_v11, %s6091_s27 }
 0x519   : > { %v1064_v63 = vpop.xlane.xlu1 %1063 }
 0x51a   : > { %v1084_v6 = vsub.f32 %v4755_v21, %v1064_v63  ;;  %v1061_v9 = vpop.xlane.xlu0 %1060 }
 0x51b   : > { %v1083_v14 = vsub.f32 %v1020_v60, %v1061_v9 }
 0x51c   : > { %v1093_v16 = vmul.f32 1.442695, %v1084_v6 }
 0x51d   : > { %v1091_v40 = vmul.f32 1.442695, %v1083_v14 }
 0x51e   : > { %5841 = vpow2.f32 %v1093_v16  ;;  %v1070_v42 = vpop.xlane.xlu0 %1069 }
 0x51f   : > { %5843 = vpow2.f32 %v1091_v40  ;;  %v1086_v61 = vsub.f32 %v4758_v24, %v1070_v42 }
 0x521   : > { %v1097_v62 = vmul.f32 1.442695, %v1086_v61  ;;  %v1076_v44 = vpop.xlane.xlu1 %1075 }
 0x522   : > { %v1088_v32 = vsub.f32 %v4761_v52, %v1076_v44  ;;  %v1067_v46 = vpop.xlane.xlu0 %1066 }
 0x523   : > { %5845 = vpow2.f32 %v1097_v62  ;;  %v1085_v57 = vsub.f32 %v1030_v1, %v1067_v46 }
 0x524   : > { %v1101_v26 = vmul.f32 1.442695, %v1088_v32 }
 0x525   : > { %v1095_v50 = vmul.f32 1.442695, %v1085_v57  ;;  %v1082_v28 = vpop.xlane.xlu1 %1081 }
 0x526   : > { %v1073_v0 = vpop.xlane.xlu0 %1072 }
 0x527   : > { %5847 = vpow2.f32 %v1095_v50  ;;  %v1087_v33 = vsub.f32 %v1040_v55, %v1073_v0  ;;  %v1090_v0 = vsub.f32 %v6606_v30, %v1082_v28 }
 0x528   : > { %v6643_v2 = vpop.eup %5841  ;;  %5849 = vpow2.f32 %v1101_v26 }
 0x529   : > { %v6645_v4 = vpop.eup %5843  ;;  %v1099_v5 = vmul.f32 1.442695, %v1087_v33  ;;  %v5556_v59 = vpop.permute.xlu1 %5555  ;;  %v1110_v49 = vsel %vm672_vm2, %v6643_v2, 0.0  ;;  %v1105_v33 = vmul.f32 1.442695, %v1090_v0 }
 0x52a   : > { %1111 = vadd.xlane.f32.xlu1 %v1110_v49  ;;  %v1079_v21 = vpop.xlane.xlu0 %1078  ;;  %v1107_v60 = vsel %vm672_vm2, %v6645_v4, 0.0  ;;  %v5558_v51 = vunpack.i.h.bf16 %v5556_v59  ;;  %v5557_v52 = vunpack.i.l.bf16 %v5556_v59 }
 0x52b   : > { %1108 = vadd.xlane.f32.xlu0 %v1107_v60  ;;  %5851 = vpow2.f32 %v1099_v5  ;;  %v1089_v5 = vsub.f32 %v6608_v25, %v1079_v21 }
 0x52c   : > { %v5261_v9 = vpack.c.bf16 %v5558_v51, %v5557_v52  ;;  %5853 = vpow2.f32 %v1105_v33 }
 0x52d   : > { %v6651_v22 = vpop.eup %5845  ;;  %v5561_v23 = vpop.permute.xlu1 %5560  ;;  %v1103_v59 = vmul.f32 1.442695, %v1089_v5 }
 0x52e   : > { %v5551_v24 = vpop.permute.xlu0 %5550  ;;  %v1116_v1 = vsel %vm672_vm2, %v6651_v22, 0.0  ;;  %v5563_v63 = vunpack.i.h.bf16 %v5561_v23  ;;  %v5562_v6 = vunpack.i.l.bf16 %v5561_v23 }
 0x52f   : > { %v5553_v55 = vunpack.i.h.bf16 %v5551_v24  ;;  %v5552_v56 = vunpack.i.l.bf16 %v5551_v24  ;;  %1117 = vadd.xlane.f32.xlu1 %v1116_v1  ;;  %5855 = vpow2.f32 %v1103_v59 }
 0x530   : > { %v5265_v62 = vpack.c.bf16 %v5563_v63, %v5562_v6 }
 0x531   : > { %v6655_v29 = vpop.eup %5847  ;;  %v5257_v54 = vpack.c.bf16 %v5553_v55, %v5552_v56  ;;  %v5566_v14 = vpop.permute.xlu1 %5565 }
 0x532   : > { %v1113_v53 = vsel %vm672_vm2, %v6655_v29, 0.0  ;;  %v6659_v35 = vpop.eup %5849  ;;  %v5568_v42 = vunpack.i.h.bf16 %v5566_v14  ;;  %v5567_v61 = vunpack.i.l.bf16 %v5566_v14  ;;  %v5571_v44 = vpop.permute.xlu0 %5570 }
 0x533   : > { %1114 = vadd.xlane.f32.xlu0 %v1113_v53  ;;  %5258 = vmatprep.subr.bf16.mxu0 %v5257_v54  ;;  %v1122_v16 = vsel %vm672_vm2, %v6659_v35, 0.0  ;;  %v5573_v46 = vunpack.i.h.bf16 %v5571_v44  ;;  %v5572_v57 = vunpack.i.l.bf16 %v5571_v44 }
 0x534   : > { %5260 = vmatpush3.bf16.msra.mxu0 %v5257_v54  ;;  %v5269_v26 = vpack.c.bf16 %v5568_v42, %v5567_v61 }
 0x535   : > { %5262 = vmatprep.subr.bf16.mxu0 %v5261_v9  ;;  %v6663_v40 = vpop.eup %5851  ;;  %v5273_v50 = vpack.c.bf16 %v5573_v46, %v5572_v57  ;;  %v5576_v21 = vpop.permute.xlu1 %5575 }
 0x536   : > { %v1119_v32 = vsel %vm672_vm2, %v6663_v40, 0.0  ;;  %v6681_v49 = vpop.eup %5853  ;;  %v5578_v55 = vunpack.i.h.bf16 %v5576_v21  ;;  %v5577_v56 = vunpack.i.l.bf16 %v5576_v21 }
 0x537   : > { %1123 = vadd.xlane.f32.xlu0 %v1122_v16  ;;  %v1128_v30 = vsel %vm672_vm2, %v6681_v49, 0.0 }
 0x538   : > { %5264 = vmatpush3.bf16.msra.mxu0 %v5261_v9  ;;  %v5279_v6 = vpack.c.bf16 %v5578_v55, %v5577_v56 }
 0x539   : > { %5266 = vmatprep.subr.bf16.mxu0 %v5265_v62  ;;  %v6687_v25 = vpop.eup %5855 }
 0x53a   : > { %v1125_v28 = vsel %vm672_vm2, %v6687_v25, 0.0 }
 0x53b   : > { %1120 = vadd.xlane.f32.xlu0 %v1119_v32 }
 0x53c   : > { %5268 = vmatpush3.bf16.msra.mxu0 %v5265_v62 }
 0x53d   : > { %5270 = vmatprep.subr.bf16.mxu0 %v5269_v26 }
 0x540   : > { %5585 = vrot.lane.b32.xlu1 %v6313_v34, %s6091_s27  ;;  %5272 = vmatpush3.bf16.msra.mxu0 %v5269_v26 }
 0x541   : > { %5275 = vmatprep.subr.msk.bf16.mxu0 %vm6291_vm1, %v5273_v50 }
 0x551   : > { %5580 = vrot.lane.b32.xlu0 %v6307_v27, %s6091_s27 }
 0x555   : > { %1308 = vrot.lane.b32.xlu0 %v6285_v3, %s6091_s27 }
 0x559   : > { %1312 = vrot.lane.b32.xlu0 %v6324_v39, %s6091_s27 }
 0x55d   : > { %1316 = vrot.lane.b32.xlu0 %v6334_v43, %s6091_s27 }
 0x561   : > { %1320 = vrot.lane.b32.xlu0 %v6344_v47, %s6091_s27 }
 0x564   : > { %1129 = vadd.xlane.f32.xlu1 %v1128_v30 }
 0x568   : > { %1126 = vadd.xlane.f32.xlu1 %v1125_v28 }
 0x579   : > { %1310 = vrot.lane.b32.xlu1 %v6321_v37, %s6091_s27 }
 0x57d   : > { %1314 = vrot.lane.b32.xlu1 %v6331_v41, %s6091_s27 }
 0x581   : > { %1318 = vrot.lane.b32.xlu1 %v6341_v45, %s6091_s27 }
 0x585   : > { %1322 = vrot.lane.b32.xlu1 %v6350_v48, %s6091_s27 }
 0x5b7   : > { %v1112_v60 = vpop.xlane.xlu1 %1111 }
 0x5b8   : > { %5857 = vrcp.f32 %v1112_v60  ;;  %v1109_v23 = vpop.xlane.xlu0 %1108 }
 0x5b9   : > { %5859 = vrcp.f32 %v1109_v23 }
 0x5bc   : > { %v1118_v24 = vpop.xlane.xlu1 %1117 }
 0x5bd   : > { %5861 = vrcp.f32 %v1118_v24 }
 0x5c0   : > { %v1115_v1 = vpop.xlane.xlu0 %1114  ;;  %v5586_v32 = vpop.permute.xlu1 %5585 }
 0x5c1   : > { %5863 = vrcp.f32 %v1115_v1  ;;  %v5588_v26 = vunpack.i.h.bf16 %v5586_v32 }
 0x5c2   : > { %v5858_v51 = vpop.eup %5857 }
 0x5c3   : > { %v5860_v52 = vpop.eup %5859  ;;  %v1140_v63 = vmul.f32 %v5858_v51, %v6643_v2 }
 0x5c4   : > { %v1124_v54 = vpop.xlane.xlu0 %1123  ;;  %v1139_v53 = vmul.f32 %v5860_v52, %v6645_v4 }
 0x5c5   : > { %5865 = vrcp.f32 %v1124_v54 }
 0x5c6   : > { %4781 = vmatprep.mubr.msk.f32.mxu0 %vm672_vm2, %v1139_v53 }
 0x5c7   : > { %4782 = vmatmul.mubr.msk.f32.vlgmr.msra.gmra.mrb[24].mxu0 %vm672_vm2, %v1140_v63  ;;  %v5862_v14 = vpop.eup %5861 }
 0x5c8   : > { %5278 = vmatpush3.bf16.xpose.msk.msra.mxu0 %vm6291_vm1, %v5273_v50  ;;  %v1121_v9 = vpop.xlane.xlu0 %1120  ;;  %v1142_v62 = vmul.f32 %v5862_v14, %v6651_v22 }
 0x5c9   : > { %5867 = vrcp.f32 %v1121_v9  ;;  %5281 = vmatprep.subr.msk.bf16.mxu0 %vm6291_vm1, %v5279_v6 }
 0x5cb   : > { %v5864_v16 = vpop.eup %5863 }
 0x5cc   : > { %v5581_v42 = vpop.permute.xlu0 %5580  ;;  %v1141_v4 = vmul.f32 %v5864_v16, %v6655_v29  ;;  %v5587_v29 = vunpack.i.l.bf16 %v5586_v32 }
 0x5cd   : > { %v5583_v2 = vunpack.i.h.bf16 %v5581_v42  ;;  %v5582_v61 = vunpack.i.l.bf16 %v5581_v42 }
 0x5ce   : > { %4784 = vmatprep.mubr.msk.f32.mxu0 %vm672_vm2, %v1141_v4  ;;  %v5291_v0 = vpack.c.bf16 %v5588_v26, %v5587_v29 }
 0x5cf   : > { %v5285_v44 = vpack.c.bf16 %v5583_v2, %v5582_v61  ;;  %4785 = vmatmul.mubr.msk.f32.gmra.mrb[26].mxu0 %vm672_vm2, %v1142_v62  ;;  %v5866_v46 = vpop.eup %5865 }
 0x5d0   : > { %5284 = vmatpush3.bf16.xpose.msk.msra.mxu0 %vm6291_vm1, %v5279_v6  ;;  %v1144_v22 = vmul.f32 %v5866_v46, %v6659_v35 }
 0x5d1   : > { %5287 = vmatprep.subr.msk.bf16.mxu0 %vm6291_vm1, %v5285_v44 }
 0x5d3   : > { %v5868_v57 = vpop.eup %5867 }
 0x5d4   : > { %v1143_v50 = vmul.f32 %v5868_v57, %v6663_v40  ;;  %v1309_v40 = vpop.permute.xlu0 %1308 }
 0x5d6   : > { %4787 = vmatprep.mubr.msk.f32.mxu0 %vm672_vm2, %v1143_v50 }
 0x5d7   : > { %4788 = vmatmul.mubr.msk.f32.gmra.mrb[28].mxu0 %vm672_vm2, %v1144_v22 }
 0x5d8   : > { %5290 = vmatpush3.bf16.xpose.msk.msra.mxu0 %vm6291_vm1, %v5285_v44  ;;  %v1313_v60 = vpop.permute.xlu0 %1312 }
 0x5d9   : > { %5293 = vmatprep.subr.msk.bf16.mxu0 %vm6291_vm1, %v5291_v0 }
 0x5dc   : > { %v1317_v24 = vpop.permute.xlu0 %1316 }
 0x5e0   : > { %5296 = vmatpush3.bf16.xpose.msk.msra.mxu0 %vm6291_vm1, %v5291_v0 }
 0x5f1   : > { %v1130_v33 = vpop.xlane.xlu1 %1129 }
 0x5f2   : > { %5869 = vrcp.f32 %v1130_v33 }
 0x5f5   : > { %v1127_v5 = vpop.xlane.xlu1 %1126 }
 0x5f6   : > { %5871 = vrcp.f32 %v1127_v5 }
 0x5f9   : > { %v1311_v30 = vpop.permute.xlu1 %1310 }
 0x5fc   : > { %v5870_v35 = vpop.eup %5869 }
 0x5fd   : > { %v1146_v21 = vmul.f32 %v5870_v35, %v6681_v49  ;;  %v1315_v23 = vpop.permute.xlu1 %1314 }
 0x600   : > { %v5872_v59 = vpop.eup %5871 }
 0x601   : > { %v1145_v28 = vmul.f32 %v5872_v59, %v6687_v25  ;;  %v1319_v1 = vpop.permute.xlu1 %1318  ;;  %v1321_v25 = vpop.permute.xlu0 %1320 }
 0x603   : > { %4790 = vmatprep.mubr.msk.f32.mxu0 %vm672_vm2, %v1145_v28 }
 0x604   : > { %4791 = vmatmul.mubr.msk.f32.gmra.mrb[30].mxu0 %vm672_vm2, %v1146_v21 }
 0x605   : > { %4809 = vmatprep.mubr.msk.f32.mxu0 %vm518_vm0, %v1309_v40  ;;  %v1323_v49 = vpop.permute.xlu1 %1322 }
 0x608   : > { %4810 = vmatmul.mubr.msk.f32.vlgmr.msra.gmra.mrb[32].mxu0 %vm518_vm0, %v1311_v30 }
 0x609   : > { %4812 = vmatprep.mubr.msk.f32.mxu0 %vm518_vm0, %v1313_v60 }
 0x60c   : > { %4813 = vmatmul.mubr.msk.f32.gmra.mrb[34].mxu0 %vm518_vm0, %v1315_v23 }
 0x60d   : > { %4815 = vmatprep.mubr.msk.f32.mxu0 %vm518_vm0, %v1317_v24 }
 0x610   : > { %4816 = vmatmul.mubr.msk.f32.gmra.mrb[36].mxu0 %vm518_vm0, %v1319_v1 }
 0x611   : > { %4818 = vmatprep.mubr.msk.f32.mxu0 %vm518_vm0, %v1321_v25 }
 0x614   : > { %4819 = vmatmul.mubr.msk.f32.gmra.mrb[38].mxu0 %vm518_vm0, %v1323_v49 }
 0x69a   : > { %v6737_v51 = vpop.f32.mrb[24].mxu0 }
 0x69b   : > { %v6739_v52 = vpop.f32.mrb[25].mxu0 }
 0x6a2   : > { %v6741_v55 = vpop.f32.mrb[26].mxu0 }
 0x6a3   : > { %v6743_v56 = vpop.f32.mrb[27].mxu0 }
 0x6aa   : > { %v6745_v54 = vpop.f32.mrb[28].mxu0 }
 0x6ab   : > { %v6747_v53 = vpop.f32.mrb[29].mxu0 }
 0x6d7   : > { %v6749_v63 = vpop.f32.mrb[30].mxu0 }
 0x6d8   : > { %v6751_v6 = vpop.f32.mrb[31].mxu0 }
 0x6db   : > { %v4811_v9 = vpop.f32.mrb[32].mxu0 }
 0x6dc   : > { %v1438_v14 = vpop.f32.mrb[33].mxu0  ;;  %v1480_v16 = vsel %vm672_vm2, %v4811_v9, -inf }
 0x6dd   : > { %1481 = vmax.xlane.f32.xlu1 %v1480_v16  ;;  %v1477_v42 = vsel %vm672_vm2, %v1438_v14, -inf }
 0x6de   : > { %1478 = vmax.xlane.f32.xlu0 %v1477_v42 }
 0x6df   : > { %v4814_v4 = vpop.f32.mrb[34].mxu0 }
 0x6e0   : > { %v1448_v2 = vpop.f32.mrb[35].mxu0  ;;  %v1486_v61 = vsel %vm672_vm2, %v4814_v4, -inf }
 0x6e1   : > { %v1483_v46 = vsel %vm672_vm2, %v1448_v2, -inf }
 0x6e2   : > { %1487 = vmax.xlane.f32.xlu0 %v1486_v61 }
 0x6e3   : > { %v4817_v62 = vpop.f32.mrb[36].mxu0 }
 0x6e4   : > { %v1458_v44 = vpop.f32.mrb[37].mxu0  ;;  %v1492_v32 = vsel %vm672_vm2, %v4817_v62, -inf }
 0x6e5   : > { %1493 = vmax.xlane.f32.xlu1 %v1492_v32  ;;  %v1489_v50 = vsel %vm672_vm2, %v1458_v44, -inf }
 0x6e6   : > { %1484 = vmax.xlane.f32.xlu0 %v1483_v46 }
 0x6e7   : > { %v6758_v57 = vpop.f32.mrb[38].mxu0 }
 0x6e8   : > { %v6760_v26 = vpop.f32.mrb[39].mxu0  ;;  %v1498_v29 = vsel %vm672_vm2, %v6758_v57, -inf }
 0x6e9   : > { %1499 = vmax.xlane.f32.xlu1 %v1498_v29  ;;  %v1495_v22 = vsel %vm672_vm2, %v6760_v26, -inf }
 0x6ea   : > { %1490 = vmax.xlane.f32.xlu0 %v1489_v50 }
 0x6ee   : > { %1496 = vmax.xlane.f32.xlu0 %v1495_v22 }
 0x6fa   : > { %5595 = vrot.lane.b32.xlu1 %v6617_v36, %s6091_s27 }
 0x6fe   : > { %5600 = vrot.lane.b32.xlu1 %v6623_v38, %s6091_s27 }
 0x702   : > { %5605 = vrot.lane.b32.xlu1 %v6629_v31, %s6091_s27 }
 0x704   : > { %5590 = vrot.lane.b32.xlu0 %v6635_v58, %s6091_s27 }
 0x706   : > { %5615 = vrot.lane.b32.xlu1 %v6301_v19, %s6092_s28 }
 0x708   : > { %5610 = vrot.lane.b32.xlu0 %v6295_v11, %s6092_s28 }
 0x76a   : > { %v1482_v0 = vpop.xlane.xlu1 %1481 }
 0x76b   : > { %v1502_v33 = vsub.f32 %v4811_v9, %v1482_v0  ;;  %v1479_v5 = vpop.xlane.xlu0 %1478 }
 0x76c   : > { %v1501_v36 = vsub.f32 %v1438_v14, %v1479_v5 }
 0x76d   : > { %v1511_v40 = vmul.f32 1.442695, %v1502_v33 }
 0x76e   : > { %v1509_v35 = vmul.f32 1.442695, %v1501_v36 }
 0x76f   : > { %5873 = vpow2.f32 %v1511_v40  ;;  %v1488_v38 = vpop.xlane.xlu0 %1487 }
 0x770   : > { %5875 = vpow2.f32 %v1509_v35  ;;  %v1504_v31 = vsub.f32 %v4814_v4, %v1488_v38 }
 0x772   : > { %v1515_v59 = vmul.f32 1.442695, %v1504_v31  ;;  %v1494_v30 = vpop.xlane.xlu1 %1493 }
 0x773   : > { %v1506_v58 = vsub.f32 %v4817_v62, %v1494_v30  ;;  %v1485_v28 = vpop.xlane.xlu0 %1484 }
 0x774   : > { %5877 = vpow2.f32 %v1515_v59  ;;  %v1503_v21 = vsub.f32 %v1448_v2, %v1485_v28 }
 0x775   : > { %v1519_v60 = vmul.f32 1.442695, %v1506_v58 }
 0x776   : > { %v1513_v23 = vmul.f32 1.442695, %v1503_v21  ;;  %v1500_v24 = vpop.xlane.xlu1 %1499 }
 0x777   : > { %v1491_v1 = vpop.xlane.xlu0 %1490 }
 0x778   : > { %5879 = vpow2.f32 %v1513_v23  ;;  %v1505_v25 = vsub.f32 %v1458_v44, %v1491_v1 }
 0x779   : > { %v6779_v49 = vpop.eup %5873  ;;  %5881 = vpow2.f32 %v1519_v60 }
 0x77a   : > { %v6781_v9 = vpop.eup %5875  ;;  %v1517_v14 = vmul.f32 1.442695, %v1505_v25  ;;  %v5596_v16 = vpop.permute.xlu1 %5595  ;;  %v1528_v42 = vsel %vm672_vm2, %v6779_v49, 0.0 }
 0x77b   : > { %1529 = vadd.xlane.f32.xlu1 %v1528_v42  ;;  %v1497_v4 = vpop.xlane.xlu0 %1496  ;;  %v1525_v2 = vsel %vm672_vm2, %v6781_v9, 0.0  ;;  %v5598_v46 = vunpack.i.h.bf16 %v5596_v16  ;;  %v5597_v29 = vunpack.i.l.bf16 %v5596_v16  ;;  %v1508_v42 = vsub.f32 %v6758_v57, %v1500_v24 }
 0x77c   : > { %1526 = vadd.xlane.f32.xlu0 %v1525_v2  ;;  %5883 = vpow2.f32 %v1517_v14 }
 0x77d   : > { %v5301_v38 = vpack.c.bf16 %v5598_v46, %v5597_v29  ;;  %v1523_v2 = vmul.f32 1.442695, %v1508_v42 }
 0x77e   : > { %v6787_v61 = vpop.eup %5877  ;;  %v5601_v62 = vpop.permute.xlu1 %5600 }
 0x77f   : > { %v5591_v44 = vpop.permute.xlu0 %5590  ;;  %v1534_v32 = vsel %vm672_vm2, %v6787_v61, 0.0  ;;  %v5603_v40 = vunpack.i.h.bf16 %v5601_v62  ;;  %v5602_v35 = vunpack.i.l.bf16 %v5601_v62  ;;  %v1507_v62 = vsub.f32 %v6760_v26, %v1497_v4 }
 0x780   : > { %v5593_v50 = vunpack.i.h.bf16 %v5591_v44  ;;  %v5592_v22 = vunpack.i.l.bf16 %v5591_v44  ;;  %1535 = vadd.xlane.f32.xlu1 %v1534_v32  ;;  %5885 = vpow2.f32 %v1523_v2 }
 0x781   : > { %v5305_v21 = vpack.c.bf16 %v5603_v40, %v5602_v35  ;;  %v1521_v44 = vmul.f32 1.442695, %v1507_v62 }
 0x782   : > { %v6791_v0 = vpop.eup %5879  ;;  %v5297_v33 = vpack.c.bf16 %v5593_v50, %v5592_v22  ;;  %v5606_v31 = vpop.permute.xlu1 %5605 }
 0x783   : > { %v1531_v5 = vsel %vm672_vm2, %v6791_v0, 0.0  ;;  %v6795_v36 = vpop.eup %5881  ;;  %v5608_v58 = vunpack.i.h.bf16 %v5606_v31  ;;  %v5607_v28 = vunpack.i.l.bf16 %v5606_v31  ;;  %v5611_v60 = vpop.permute.xlu0 %5610  ;;  %5887 = vpow2.f32 %v1521_v44 }
 0x784   : > { %1532 = vadd.xlane.f32.xlu0 %v1531_v5  ;;  %5298 = vmatprep.subr.bf16.mxu1 %v5297_v33  ;;  %v1540_v59 = vsel %vm672_vm2, %v6795_v36, 0.0  ;;  %v5613_v1 = vunpack.i.h.bf16 %v5611_v60  ;;  %v5612_v25 = vunpack.i.l.bf16 %v5611_v60 }
 0x785   : > { %5300 = vmatpush3.bf16.msra.mxu1 %v5297_v33  ;;  %v5309_v14 = vpack.c.bf16 %v5608_v58, %v5607_v28 }
 0x786   : > { %5302 = vmatprep.subr.bf16.mxu1 %v5301_v38  ;;  %v6799_v30 = vpop.eup %5883  ;;  %v5313_v16 = vpack.c.bf16 %v5613_v1, %v5612_v25  ;;  %v5616_v4 = vpop.permute.xlu1 %5615 }
 0x787   : > { %v1537_v23 = vsel %vm672_vm2, %v6799_v30, 0.0  ;;  %v5618_v40 = vunpack.i.h.bf16 %v5616_v4  ;;  %v5617_v35 = vunpack.i.l.bf16 %v5616_v4 }
 0x788   : > { %1541 = vadd.xlane.f32.xlu0 %v1540_v59 }
 0x789   : > { %5304 = vmatpush3.bf16.msra.mxu1 %v5301_v38  ;;  %v5319_v58 = vpack.c.bf16 %v5618_v40, %v5617_v35 }
 0x78a   : > { %5306 = vmatprep.subr.bf16.mxu1 %v5305_v21  ;;  %v6817_v32 = vpop.eup %5885 }
 0x78b   : > { %v1546_v57 = vsel %vm672_vm2, %v6817_v32, 0.0 }
 0x78c   : > { %1538 = vadd.xlane.f32.xlu0 %v1537_v23 }
 0x78d   : > { %5308 = vmatpush3.bf16.msra.mxu1 %v5305_v21  ;;  %v6823_v26 = vpop.eup %5887 }
 0x78e   : > { %5310 = vmatprep.subr.bf16.mxu1 %v5309_v14  ;;  %v1543_v24 = vsel %vm672_vm2, %v6823_v26, 0.0 }
 0x791   : > { %5625 = vrot.lane.b32.xlu1 %v6313_v34, %s6092_s28  ;;  %5312 = vmatpush3.bf16.msra.mxu1 %v5309_v14 }
 0x792   : > { %5315 = vmatprep.subr.msk.bf16.mxu1 %vm6291_vm1, %v5313_v16 }
 0x7a2   : > { %5620 = vrot.lane.b32.xlu0 %v6307_v27, %s6092_s28 }
 0x7a6   : > { %1718 = vrot.lane.b32.xlu0 %v6285_v3, %s6092_s28 }
 0x7aa   : > { %1722 = vrot.lane.b32.xlu0 %v6324_v39, %s6092_s28 }
 0x7ae   : > { %1726 = vrot.lane.b32.xlu0 %v6334_v43, %s6092_s28 }
 0x7b2   : > { %1730 = vrot.lane.b32.xlu0 %v6344_v47, %s6092_s28 }
 0x7b5   : > { %1547 = vadd.xlane.f32.xlu1 %v1546_v57 }
 0x7b9   : > { %1544 = vadd.xlane.f32.xlu1 %v1543_v24 }
 0x7ca   : > { %1720 = vrot.lane.b32.xlu1 %v6321_v37, %s6092_s28 }
 0x7ce   : > { %1724 = vrot.lane.b32.xlu1 %v6331_v41, %s6092_s28 }
 0x7d2   : > { %1728 = vrot.lane.b32.xlu1 %v6341_v45, %s6092_s28 }
 0x7d6   : > { %1732 = vrot.lane.b32.xlu1 %v6350_v48, %s6092_s28 }
 0x808   : > { %v1530_v46 = vpop.xlane.xlu1 %1529 }
 0x809   : > { %5889 = vrcp.f32 %v1530_v46  ;;  %v1527_v29 = vpop.xlane.xlu0 %1526 }
 0x80a   : > { %5891 = vrcp.f32 %v1527_v29 }
 0x80d   : > { %v1536_v50 = vpop.xlane.xlu1 %1535 }
 0x80e   : > { %5893 = vrcp.f32 %v1536_v50 }
 0x811   : > { %v1533_v22 = vpop.xlane.xlu0 %1532 }
 0x812   : > { %5895 = vrcp.f32 %v1533_v22 }
 0x813   : > { %v5890_v33 = vpop.eup %5889 }
 0x814   : > { %v5892_v5 = vpop.eup %5891  ;;  %v1558_v59 = vmul.f32 %v5890_v33, %v6779_v49 }
 0x815   : > { %v1542_v38 = vpop.xlane.xlu0 %1541  ;;  %v1557_v31 = vmul.f32 %v5892_v5, %v6781_v9 }
 0x816   : > { %5897 = vrcp.f32 %v1542_v38 }
 0x817   : > { %4837 = vmatprep.mubr.msk.f32.mxu1 %vm672_vm2, %v1557_v31 }
 0x818   : > { %4838 = vmatmul.mubr.msk.f32.vlgmr.msra.gmra.mrb[24].mxu1 %vm672_vm2, %v1558_v59  ;;  %v5894_v21 = vpop.eup %5893 }
 0x819   : > { %5318 = vmatpush3.bf16.xpose.msk.msra.mxu1 %vm6291_vm1, %v5313_v16  ;;  %v1539_v28 = vpop.xlane.xlu0 %1538  ;;  %v1560_v25 = vmul.f32 %v5894_v21, %v6787_v61  ;;  %v5626_v16 = vpop.permute.xlu1 %5625 }
 0x81a   : > { %5899 = vrcp.f32 %v1539_v28  ;;  %5321 = vmatprep.subr.msk.bf16.mxu1 %vm6291_vm1, %v5319_v58  ;;  %v5628_v62 = vunpack.i.h.bf16 %v5626_v16 }
 0x81c   : > { %v5896_v60 = vpop.eup %5895 }
 0x81d   : > { %v5621_v23 = vpop.permute.xlu0 %5620  ;;  %v1559_v9 = vmul.f32 %v5896_v60, %v6791_v0  ;;  %v5627_v0 = vunpack.i.l.bf16 %v5626_v16 }
 0x81e   : > { %v5623_v49 = vunpack.i.h.bf16 %v5621_v23  ;;  %v5622_v1 = vunpack.i.l.bf16 %v5621_v23 }
 0x81f   : > { %4840 = vmatprep.mubr.msk.f32.mxu1 %vm672_vm2, %v1559_v9  ;;  %v5331_v57 = vpack.c.bf16 %v5628_v62, %v5627_v0 }
 0x820   : > { %v5325_v14 = vpack.c.bf16 %v5623_v49, %v5622_v1  ;;  %4841 = vmatmul.mubr.msk.f32.gmra.mrb[26].mxu1 %vm672_vm2, %v1560_v25  ;;  %v5898_v42 = vpop.eup %5897 }
 0x821   : > { %5324 = vmatpush3.bf16.xpose.msk.msra.mxu1 %vm6291_vm1, %v5319_v58  ;;  %v1562_v61 = vmul.f32 %v5898_v42, %v6795_v36 }
 0x822   : > { %5327 = vmatprep.subr.msk.bf16.mxu1 %vm6291_vm1, %v5325_v14 }
 0x824   : > { %v5900_v2 = vpop.eup %5899 }
 0x825   : > { %v1561_v44 = vmul.f32 %v5900_v2, %v6799_v30  ;;  %v1719_v30 = vpop.permute.xlu0 %1718 }
 0x827   : > { %4843 = vmatprep.mubr.msk.f32.mxu1 %vm672_vm2, %v1561_v44 }
 0x828   : > { %4844 = vmatmul.mubr.msk.f32.gmra.mrb[28].mxu1 %vm672_vm2, %v1562_v61 }
 0x829   : > { %5330 = vmatpush3.bf16.xpose.msk.msra.mxu1 %vm6291_vm1, %v5325_v14  ;;  %v1723_v33 = vpop.permute.xlu0 %1722 }
 0x82a   : > { %5333 = vmatprep.subr.msk.bf16.mxu1 %vm6291_vm1, %v5331_v57 }
 0x82d   : > { %v1727_v40 = vpop.permute.xlu0 %1726 }
 0x831   : > { %5336 = vmatpush3.bf16.xpose.msk.msra.mxu1 %vm6291_vm1, %v5331_v57 }
 0x842   : > { %v1548_v24 = vpop.xlane.xlu1 %1547 }
 0x843   : > { %5901 = vrcp.f32 %v1548_v24 }
 0x846   : > { %v1545_v4 = vpop.xlane.xlu1 %1544 }
 0x847   : > { %5903 = vrcp.f32 %v1545_v4 }
 0x84a   : > { %v1721_v29 = vpop.permute.xlu1 %1720 }
 0x84d   : > { %v5902_v36 = vpop.eup %5901 }
 0x84e   : > { %v1564_v22 = vmul.f32 %v5902_v36, %v6817_v32  ;;  %v1725_v5 = vpop.permute.xlu1 %1724  ;;  %v6065_v36 = vld [vmem:[%s6441_s25 + $0x18] sm:$0xff] }
 0x851   : > { %v5904_v46 = vpop.eup %5903 }
 0x852   : > { %v1563_v50 = vmul.f32 %v5904_v46, %v6823_v26  ;;  %v1729_v35 = vpop.permute.xlu1 %1728  ;;  %v1731_v26 = vpop.permute.xlu0 %1730  ;;  %v6066_v46 = vld [vmem:[%s6441_s25 + $0x10] sm:$0xff] }
 0x854   : > { %4846 = vmatprep.mubr.msk.f32.mxu1 %vm672_vm2, %v1563_v50  ;;  %v6067_v50 = vld [vmem:[%s6441_s25 + $0x28] sm:$0xff] }
 0x855   : > { %4847 = vmatmul.mubr.msk.f32.gmra.mrb[30].mxu1 %vm672_vm2, %v1564_v22  ;;  %v6068_v22 = vld [vmem:[%s6441_s25 + $0x20] sm:$0xff] }
 0x856   : > { %4865 = vmatprep.mubr.msk.f32.mxu1 %vm518_vm0, %v1719_v30  ;;  %v1733_v32 = vpop.permute.xlu1 %1732 }
 0x859   : > { %4866 = vmatmul.mubr.msk.f32.vlgmr.msra.gmra.mrb[32].mxu1 %vm518_vm0, %v1721_v29  ;;  %v6905_v29 = vpack.i.bf16 %v6065_v36, %v6066_v46 }
 0x85a   : > { %4868 = vmatprep.mubr.msk.f32.mxu1 %vm518_vm0, %v1723_v33  ;;  %v6911_v33 = vpack.i.bf16 %v6067_v50, %v6068_v22 }
 0x85d   : > { %4869 = vmatmul.mubr.msk.f32.gmra.mrb[34].mxu1 %vm518_vm0, %v1725_v5  ;;  %v6069_v5 = vld [vmem:[%s6441_s25 + $0x38] sm:$0xff] }
 0x85e   : > { %4871 = vmatprep.mubr.msk.f32.mxu1 %vm518_vm0, %v1727_v40  ;;  %v6070_v40 = vld [vmem:[%s6441_s25 + $0x30] sm:$0xff] }
 0x861   : > { %4872 = vmatmul.mubr.msk.f32.gmra.mrb[36].mxu1 %vm518_vm0, %v1729_v35  ;;  %v6917_v35 = vpack.i.bf16 %v6069_v5, %v6070_v40 }
 0x862   : > { %4874 = vmatprep.mubr.msk.f32.mxu1 %vm518_vm0, %v1731_v26  ;;  %v6071_v26 = vld [vmem:[%s6441_s25 + $0x8] sm:$0xff] }
 0x865   : > { %4875 = vmatmul.mubr.msk.f32.gmra.mrb[38].mxu1 %vm518_vm0, %v1733_v32  ;;  %v6072_v32 = vld [vmem:[%s6441_s25] sm:$0xff] }
 0x8eb   : > { %v6873_v38 = vpop.f32.mrb[24].mxu1 }
 0x8ec   : > { %v6875_v31 = vpop.f32.mrb[25].mxu1 }
 0x8f3   : > { %v6877_v59 = vpop.f32.mrb[26].mxu1 }
 0x8f4   : > { %v6879_v58 = vpop.f32.mrb[27].mxu1 }
 0x8fb   : > { %v6881_v28 = vpop.f32.mrb[28].mxu1 }
 0x8fc   : > { %v6883_v21 = vpop.f32.mrb[29].mxu1 }
 0x928   : > { %v6885_v60 = vpop.f32.mrb[30].mxu1 }
 0x929   : > { %v6887_v23 = vpop.f32.mrb[31].mxu1 }
 0x92c   : > { %v4867_v9 = vpop.f32.mrb[32].mxu1 }
 0x92d   : > { %v1848_v49 = vpop.f32.mrb[33].mxu1  ;;  %v1890_v1 = vsel %vm672_vm2, %v4867_v9, -inf }
 0x92e   : > { %1891 = vmax.xlane.f32.xlu1 %v1890_v1  ;;  %v1887_v25 = vsel %vm672_vm2, %v1848_v49, -inf  ;;  %v6923_v1 = vpack.i.bf16 %v6071_v26, %v6072_v32 }
 0x92f   : > { %1888 = vmax.xlane.f32.xlu0 %v1887_v25 }
 0x930   : > { %v4870_v14 = vpop.f32.mrb[34].mxu1 }
 0x931   : > { %v1858_v16 = vpop.f32.mrb[35].mxu1  ;;  %v1896_v42 = vsel %vm672_vm2, %v4870_v14, -inf }
 0x932   : > { %v1893_v44 = vsel %vm672_vm2, %v1858_v16, -inf }
 0x933   : > { %1897 = vmax.xlane.f32.xlu0 %v1896_v42 }
 0x934   : > { %v4873_v2 = vpop.f32.mrb[36].mxu1 }
 0x935   : > { %v1868_v62 = vpop.f32.mrb[37].mxu1  ;;  %v1902_v0 = vsel %vm672_vm2, %v4873_v2, -inf }
 0x936   : > { %1903 = vmax.xlane.f32.xlu1 %v1902_v0  ;;  %v1899_v4 = vsel %vm672_vm2, %v1868_v62, -inf }
 0x937   : > { %1894 = vmax.xlane.f32.xlu0 %v1893_v44 }
 0x938   : > { %v6894_v61 = vpop.f32.mrb[38].mxu1 }
 0x939   : > { %v6896_v57 = vpop.f32.mrb[39].mxu1  ;;  %v1908_v24 = vsel %vm672_vm2, %v6894_v61, -inf }
 0x93a   : > { %1909 = vmax.xlane.f32.xlu1 %v1908_v24  ;;  %v1905_v30 = vsel %vm672_vm2, %v6896_v57, -inf }
 0x93b   : > { %1900 = vmax.xlane.f32.xlu0 %v1899_v4 }
 0x93f   : > { %1906 = vmax.xlane.f32.xlu0 %v1905_v30 }
 0x94b   : > { %5635 = vrot.lane.b32.xlu1 %v6905_v29, %s6092_s28 }
 0x94f   : > { %5640 = vrot.lane.b32.xlu1 %v6911_v33, %s6092_s28 }
 0x953   : > { %5645 = vrot.lane.b32.xlu1 %v6917_v35, %s6092_s28 }
 0x955   : > { %5630 = vrot.lane.b32.xlu0 %v6923_v1, %s6092_s28 }
 0x957   : > { %5655 = vrot.lane.b32.xlu1 %v6301_v19, %s6093_s29 }
 0x959   : > { %5650 = vrot.lane.b32.xlu0 %v6295_v11, %s6093_s29 }
 0x9bb   : > { %v1892_v25 = vpop.xlane.xlu1 %1891 }
 0x9bc   : > { %v1912_v42 = vsub.f32 %v4867_v9, %v1892_v25  ;;  %v1889_v0 = vpop.xlane.xlu0 %1888 }
 0x9bd   : > { %v1911_v44 = vsub.f32 %v1848_v49, %v1889_v0 }
 0x9be   : > { %v1921_v24 = vmul.f32 1.442695, %v1912_v42 }
 0x9bf   : > { %v1919_v4 = vmul.f32 1.442695, %v1911_v44 }
 0x9c0   : > { %5905 = vpow2.f32 %v1921_v24  ;;  %v1898_v30 = vpop.xlane.xlu0 %1897 }
 0x9c1   : > { %5907 = vpow2.f32 %v1919_v4  ;;  %v1914_v36 = vsub.f32 %v4870_v14, %v1898_v30 }
 0x9c3   : > { %v1925_v46 = vmul.f32 1.442695, %v1914_v36  ;;  %v1904_v50 = vpop.xlane.xlu1 %1903 }
 0x9c4   : > { %v1916_v22 = vsub.f32 %v4873_v2, %v1904_v50  ;;  %v1895_v5 = vpop.xlane.xlu0 %1894 }
 0x9c5   : > { %5909 = vpow2.f32 %v1925_v46  ;;  %v1913_v40 = vsub.f32 %v1858_v16, %v1895_v5 }
 0x9c6   : > { %v1929_v26 = vmul.f32 1.442695, %v1916_v22 }
 0x9c7   : > { %v1923_v32 = vmul.f32 1.442695, %v1913_v40  ;;  %v1910_v18 = vpop.xlane.xlu1 %1909 }
 0x9c8   : > { %v1901_v20 = vpop.xlane.xlu0 %1900 }
 0x9c9   : > { %5911 = vpow2.f32 %v1923_v32  ;;  %v1915_v9 = vsub.f32 %v1868_v62, %v1901_v20 }
 0x9ca   : > { %v6931_v25 = vpop.eup %5905  ;;  %5913 = vpow2.f32 %v1929_v26 }
 0x9cb   : > { %v6933_v49 = vpop.eup %5907  ;;  %v1927_v42 = vmul.f32 1.442695, %v1915_v9  ;;  %v5636_v0 = vpop.permute.xlu1 %5635  ;;  %v1938_v14 = vsel %vm672_vm2, %v6931_v25, 0.0 }
 0x9cc   : > { %1939 = vadd.xlane.f32.xlu1 %v1938_v14  ;;  %v1907_v2 = vpop.xlane.xlu0 %1906  ;;  %v1935_v16 = vsel %vm672_vm2, %v6933_v49, 0.0  ;;  %v5638_v4 = vunpack.i.h.bf16 %v5636_v0  ;;  %v5637_v30 = vunpack.i.l.bf16 %v5636_v0 }
 0x9cd   : > { %1936 = vadd.xlane.f32.xlu0 %v1935_v16  ;;  %5915 = vpow2.f32 %v1927_v42 }
 0x9ce   : > { %v5341_v9 = vpack.c.bf16 %v5638_v4, %v5637_v30 }
 0x9cf   : > { %v6939_v44 = vpop.eup %5909  ;;  %v5641_v20 = vpop.permute.xlu1 %5640 }
 0x9d0   : > { %v5631_v62 = vpop.permute.xlu0 %5630  ;;  %v1944_v24 = vsel %vm672_vm2, %v6939_v44, 0.0  ;;  %v5643_v26 = vunpack.i.h.bf16 %v5641_v20  ;;  %v5642_v32 = vunpack.i.l.bf16 %v5641_v20 }
 0x9d1   : > { %v5633_v36 = vunpack.i.h.bf16 %v5631_v62  ;;  %v5632_v46 = vunpack.i.l.bf16 %v5631_v62  ;;  %1945 = vadd.xlane.f32.xlu1 %v1944_v24 }
 0x9d2   : > { %v5345_v24 = vpack.c.bf16 %v5643_v26, %v5642_v32  ;;  %v1917_v32 = vsub.f32 %v6896_v57, %v1907_v2 }
 0x9d3   : > { %v6943_v50 = vpop.eup %5911  ;;  %v5337_v22 = vpack.c.bf16 %v5633_v36, %v5632_v46  ;;  %v5646_v42 = vpop.permute.xlu1 %5645 }
 0x9d4   : > { %v1941_v5 = vsel %vm672_vm2, %v6943_v50, 0.0  ;;  %v6947_v40 = vpop.eup %5913  ;;  %v5648_v16 = vunpack.i.h.bf16 %v5646_v42  ;;  %v5647_v62 = vunpack.i.l.bf16 %v5646_v42  ;;  %v5651_v36 = vpop.permute.xlu0 %5650 }
 0x9d5   : > { %1942 = vadd.xlane.f32.xlu0 %v1941_v5  ;;  %5338 = vmatprep.subr.bf16.mxu0 %v5337_v22  ;;  %v1950_v0 = vsel %vm672_vm2, %v6947_v40, 0.0  ;;  %v5653_v46 = vunpack.i.h.bf16 %v5651_v36  ;;  %v5652_v4 = vunpack.i.l.bf16 %v5651_v36  ;;  %v1918_v5 = vsub.f32 %v6894_v61, %v1910_v18 }
 0x9d6   : > { %5340 = vmatpush3.bf16.msra.mxu0 %v5337_v22  ;;  %v5349_v30 = vpack.c.bf16 %v5648_v16, %v5647_v62 }
 0x9d7   : > { %5342 = vmatprep.subr.bf16.mxu0 %v5341_v9  ;;  %v6951_v14 = vpop.eup %5915  ;;  %v5353_v22 = vpack.c.bf16 %v5653_v46, %v5652_v4  ;;  %v1933_v26 = vmul.f32 1.442695, %v1918_v5  ;;  %v5656_v2 = vpop.permute.xlu1 %5655 }
 0x9d8   : > { %v1947_v20 = vsel %vm672_vm2, %v6951_v14, 0.0  ;;  %v5658_v46 = vunpack.i.h.bf16 %v5656_v2  ;;  %v5657_v4 = vunpack.i.l.bf16 %v5656_v2 }
 0x9d9   : > { %1951 = vadd.xlane.f32.xlu0 %v1950_v0  ;;  %5917 = vpow2.f32 %v1933_v26 }
 0x9da   : > { %5344 = vmatpush3.bf16.msra.mxu0 %v5341_v9  ;;  %v1931_v9 = vmul.f32 1.442695, %v1917_v32  ;;  %v5359_v32 = vpack.c.bf16 %v5658_v46, %v5657_v4 }
 0x9db   : > { %5346 = vmatprep.subr.bf16.mxu0 %v5345_v24 }
 0x9dc   : > { %5919 = vpow2.f32 %v1931_v9 }
 0x9dd   : > { %1948 = vadd.xlane.f32.xlu0 %v1947_v20 }
 0x9de   : > { %5348 = vmatpush3.bf16.msra.mxu0 %v5345_v24 }
 0x9df   : > { %5350 = vmatprep.subr.bf16.mxu0 %v5349_v30 }
 0x9e2   : > { %5665 = vrot.lane.b32.xlu1 %v6313_v34, %s6093_s29  ;;  %5352 = vmatpush3.bf16.msra.mxu0 %v5349_v30 }
 0x9e3   : > { %5355 = vmatprep.subr.msk.bf16.mxu0 %vm6291_vm1, %v5353_v22  ;;  %v6969_v42 = vpop.eup %5917 }
 0x9e4   : > { %v1956_v18 = vsel %vm672_vm2, %v6969_v42, 0.0 }
 0x9e6   : > { %v6975_v61 = vpop.eup %5919 }
 0x9e7   : > { %v1953_v57 = vsel %vm672_vm2, %v6975_v61, 0.0 }
 0x9f3   : > { %5660 = vrot.lane.b32.xlu0 %v6307_v27, %s6093_s29 }
 0x9f7   : > { %2128 = vrot.lane.b32.xlu0 %v6285_v3, %s6093_s29 }
 0x9fb   : > { %2132 = vrot.lane.b32.xlu0 %v6324_v39, %s6093_s29 }
 0x9ff   : > { %2136 = vrot.lane.b32.xlu0 %v6334_v43, %s6093_s29 }
 0xa03   : > { %2140 = vrot.lane.b32.xlu0 %v6344_v47, %s6093_s29 }
 0xa06   : > { %1957 = vadd.xlane.f32.xlu1 %v1956_v18 }
 0xa0a   : > { %1954 = vadd.xlane.f32.xlu1 %v1953_v57 }
 0xa1b   : > { %2130 = vrot.lane.b32.xlu1 %v6321_v37, %s6093_s29 }
 0xa1f   : > { %2134 = vrot.lane.b32.xlu1 %v6331_v41, %s6093_s29 }
 0xa23   : > { %2138 = vrot.lane.b32.xlu1 %v6341_v45, %s6093_s29 }
 0xa27   : > { %2142 = vrot.lane.b32.xlu1 %v6350_v48, %s6093_s29 }
 0xa59   : > { %v1940_v0 = vpop.xlane.xlu1 %1939 }
 0xa5a   : > { %5921 = vrcp.f32 %v1940_v0  ;;  %v1937_v16 = vpop.xlane.xlu0 %1936 }
 0xa5b   : > { %5923 = vrcp.f32 %v1937_v16 }
 0xa5e   : > { %v1946_v62 = vpop.xlane.xlu1 %1945 }
 0xa5f   : > { %5925 = vrcp.f32 %v1946_v62 }
 0xa62   : > { %v1943_v24 = vpop.xlane.xlu0 %1942 }
 0xa63   : > { %5927 = vrcp.f32 %v1943_v24 }
 0xa64   : > { %v5922_v36 = vpop.eup %5921 }
 0xa65   : > { %v5924_v20 = vpop.eup %5923  ;;  %v1968_v26 = vmul.f32 %v5922_v36, %v6931_v25 }
 0xa66   : > { %v1952_v30 = vpop.xlane.xlu0 %1951  ;;  %v1967_v5 = vmul.f32 %v5924_v20, %v6933_v49 }
 0xa67   : > { %5929 = vrcp.f32 %v1952_v30 }
 0xa68   : > { %4893 = vmatprep.mubr.msk.f32.mxu0 %vm672_vm2, %v1967_v5 }
 0xa69   : > { %4894 = vmatmul.mubr.msk.f32.vlgmr.msra.gmra.mrb[40].mxu0 %vm672_vm2, %v1968_v26  ;;  %v5926_v18 = vpop.eup %5925 }
 0xa6a   : > { %5358 = vmatpush3.bf16.xpose.msk.msra.mxu0 %vm6291_vm1, %v5353_v22  ;;  %v1949_v9 = vpop.xlane.xlu0 %1948  ;;  %v1970_v16 = vmul.f32 %v5926_v18, %v6939_v44  ;;  %v5666_v22 = vpop.permute.xlu1 %5665 }
 0xa6b   : > { %5931 = vrcp.f32 %v1949_v9  ;;  %5361 = vmatprep.subr.msk.bf16.mxu0 %vm6291_vm1, %v5359_v32  ;;  %v5668_v20 = vunpack.i.h.bf16 %v5666_v22 }
 0xa6d   : > { %v5928_v57 = vpop.eup %5927 }
 0xa6e   : > { %v5661_v2 = vpop.permute.xlu0 %5660  ;;  %v1969_v49 = vmul.f32 %v5928_v57, %v6943_v50  ;;  %v5667_v50 = vunpack.i.l.bf16 %v5666_v22 }
 0xa6f   : > { %v5663_v25 = vunpack.i.h.bf16 %v5661_v2  ;;  %v5662_v0 = vunpack.i.l.bf16 %v5661_v2 }
 0xa70   : > { %4896 = vmatprep.mubr.msk.f32.mxu0 %vm672_vm2, %v1969_v49  ;;  %v5371_v4 = vpack.c.bf16 %v5668_v20, %v5667_v50 }
 0xa71   : > { %v5365_v62 = vpack.c.bf16 %v5663_v25, %v5662_v0  ;;  %4897 = vmatmul.mubr.msk.f32.gmra.mrb[42].mxu0 %vm672_vm2, %v1970_v16  ;;  %v5930_v24 = vpop.eup %5929 }
 0xa72   : > { %5364 = vmatpush3.bf16.xpose.msk.msra.mxu0 %vm6291_vm1, %v5359_v32  ;;  %v1972_v44 = vmul.f32 %v5930_v24, %v6947_v40 }
 0xa73   : > { %5367 = vmatprep.subr.msk.bf16.mxu0 %vm6291_vm1, %v5365_v62 }
 0xa75   : > { %v5932_v36 = vpop.eup %5931 }
 0xa76   : > { %v1971_v46 = vmul.f32 %v5932_v36, %v6951_v14  ;;  %v2129_v14 = vpop.permute.xlu0 %2128 }
 0xa78   : > { %4899 = vmatprep.mubr.msk.f32.mxu0 %vm672_vm2, %v1971_v46 }
 0xa79   : > { %4900 = vmatmul.mubr.msk.f32.gmra.mrb[44].mxu0 %vm672_vm2, %v1972_v44 }
 0xa7a   : > { %5370 = vmatpush3.bf16.xpose.msk.msra.mxu0 %vm6291_vm1, %v5365_v62  ;;  %v2133_v57 = vpop.permute.xlu0 %2132 }
 0xa7b   : > { %5373 = vmatprep.subr.msk.bf16.mxu0 %vm6291_vm1, %v5371_v4 }
 0xa7e   : > { %v2137_v49 = vpop.permute.xlu0 %2136 }
 0xa82   : > { %5376 = vmatpush3.bf16.xpose.msk.msra.mxu0 %vm6291_vm1, %v5371_v4 }
 0xa93   : > { %v1958_v30 = vpop.xlane.xlu1 %1957 }
 0xa94   : > { %5933 = vrcp.f32 %v1958_v30 }
 0xa97   : > { %v1955_v5 = vpop.xlane.xlu1 %1954 }
 0xa98   : > { %5935 = vrcp.f32 %v1955_v5 }
 0xa9b   : > { %v2131_v32 = vpop.permute.xlu1 %2130 }
 0xa9e   : > { %v5934_v40 = vpop.eup %5933 }
 0xa9f   : > { %v1974_v18 = vmul.f32 %v5934_v40, %v6969_v42  ;;  %v2135_v2 = vpop.permute.xlu1 %2134 }
 0xaa2   : > { %v5936_v26 = vpop.eup %5935 }
 0xaa3   : > { %v1973_v9 = vmul.f32 %v5936_v26, %v6975_v61  ;;  %v2139_v25 = vpop.permute.xlu1 %2138  ;;  %v2141_v61 = vpop.permute.xlu0 %2140 }
 0xaa5   : > { %4902 = vmatprep.mubr.msk.f32.mxu0 %vm672_vm2, %v1973_v9 }
 0xaa6   : > { %4903 = vmatmul.mubr.msk.f32.gmra.mrb[46].mxu0 %vm672_vm2, %v1974_v18 }
 0xaa7   : > { %4921 = vmatprep.mubr.msk.f32.mxu0 %vm518_vm0, %v2129_v14  ;;  %v2143_v42 = vpop.permute.xlu1 %2142 }
 0xaaa   : > { %4922 = vmatmul.mubr.msk.f32.vlgmr.msra.gmra.mrb[48].mxu0 %vm518_vm0, %v2131_v32 }
 0xaab   : > { %4924 = vmatprep.mubr.msk.f32.mxu0 %vm518_vm0, %v2133_v57 }
 0xaae   : > { %4925 = vmatmul.mubr.msk.f32.gmra.mrb[50].mxu0 %vm518_vm0, %v2135_v2 }
 0xaaf   : > { %4927 = vmatprep.mubr.msk.f32.mxu0 %vm518_vm0, %v2137_v49 }
 0xab2   : > { %4928 = vmatmul.mubr.msk.f32.gmra.mrb[52].mxu0 %vm518_vm0, %v2139_v25 }
 0xab3   : > { %4930 = vmatprep.mubr.msk.f32.mxu0 %vm518_vm0, %v2141_v61 }
 0xab6   : > { %4931 = vmatmul.mubr.msk.f32.gmra.mrb[54].mxu0 %vm518_vm0, %v2143_v42 }
 0xb3c   : > { %v7025_v0 = vpop.f32.mrb[40].mxu0 }
 0xb3d   : > { %v7027_v16 = vpop.f32.mrb[41].mxu0 }
 0xb44   : > { %v7029_v62 = vpop.f32.mrb[42].mxu0 }
 0xb45   : > { %v7031_v22 = vpop.f32.mrb[43].mxu0 }
 0xb4c   : > { %v7033_v24 = vpop.f32.mrb[44].mxu0 }
 0xb4d   : > { %v7035_v36 = vpop.f32.mrb[45].mxu0 }
 0xb79   : > { %v7037_v20 = vpop.f32.mrb[46].mxu0 }
 0xb7a   : > { %7762 = vst [vmem:[#allocation10_spill] sm:$0xff] %v7037_v20  ;;  %v7039_v50 = vpop.f32.mrb[47].mxu0 }
 0xb7b   : > { %7763 = vst [vmem:[#allocation11_spill] sm:$0xff] %v7039_v50 }
 0xb7d   : > { %v4923_v46 = vpop.f32.mrb[48].mxu0 }
 0xb7e   : > { %v2258_v44 = vpop.f32.mrb[49].mxu0  ;;  %v2300_v4 = vsel %vm672_vm2, %v4923_v46, -inf }
 0xb7f   : > { %2301 = vmax.xlane.f32.xlu1 %v2300_v4  ;;  %v2297_v30 = vsel %vm672_vm2, %v2258_v44, -inf }
 0xb80   : > { %2298 = vmax.xlane.f32.xlu0 %v2297_v30 }
 0xb81   : > { %v4926_v5 = vpop.f32.mrb[50].mxu0 }
 0xb82   : > { %v2268_v14 = vpop.f32.mrb[51].mxu0  ;;  %v2306_v40 = vsel %vm672_vm2, %v4926_v5, -inf }
 0xb83   : > { %v2303_v18 = vsel %vm672_vm2, %v2268_v14, -inf }
 0xb84   : > { %2307 = vmax.xlane.f32.xlu0 %v2306_v40 }
 0xb85   : > { %v4929_v26 = vpop.f32.mrb[52].mxu0 }
 0xb86   : > { %v2278_v32 = vpop.f32.mrb[53].mxu0  ;;  %v2312_v9 = vsel %vm672_vm2, %v4929_v26, -inf }
 0xb87   : > { %2313 = vmax.xlane.f32.xlu1 %v2312_v9  ;;  %v2309_v25 = vsel %vm672_vm2, %v2278_v32, -inf }
 0xb88   : > { %2304 = vmax.xlane.f32.xlu0 %v2303_v18 }
 0xb89   : > { %v7046_v57 = vpop.f32.mrb[54].mxu0 }
 0xb8a   : > { %v7048_v2 = vpop.f32.mrb[55].mxu0  ;;  %v2318_v49 = vsel %vm672_vm2, %v7046_v57, -inf }
 0xb8b   : > { %2319 = vmax.xlane.f32.xlu1 %v2318_v49  ;;  %v2315_v61 = vsel %vm672_vm2, %v7048_v2, -inf }
 0xb8c   : > { %2310 = vmax.xlane.f32.xlu0 %v2309_v25 }
 0xb90   : > { %2316 = vmax.xlane.f32.xlu0 %v2315_v61 }
 0xb9c   : > { %5675 = vrot.lane.b32.xlu1 %v6905_v29, %s6093_s29 }
 0xba0   : > { %5680 = vrot.lane.b32.xlu1 %v6911_v33, %s6093_s29 }
 0xba4   : > { %5685 = vrot.lane.b32.xlu1 %v6917_v35, %s6093_s29 }
 0xba6   : > { %5670 = vrot.lane.b32.xlu0 %v6923_v1, %s6093_s29 }
 0xba8   : > { %5695 = vrot.lane.b32.xlu1 %v6301_v19, %s6094_s30 }
 0xbaa   : > { %5690 = vrot.lane.b32.xlu0 %v6295_v11, %s6094_s30 }
 0xc0c   : > { %v2302_v42 = vpop.xlane.xlu1 %2301 }
 0xc0d   : > { %v2322_v4 = vsub.f32 %v4923_v46, %v2302_v42  ;;  %v2299_v30 = vpop.xlane.xlu0 %2298 }
 0xc0e   : > { %v2321_v40 = vsub.f32 %v2258_v44, %v2299_v30 }
 0xc0f   : > { %v2331_v9 = vmul.f32 1.442695, %v2322_v4 }
 0xc10   : > { %v2329_v18 = vmul.f32 1.442695, %v2321_v40 }
 0xc11   : > { %5937 = vpow2.f32 %v2331_v9  ;;  %v2308_v49 = vpop.xlane.xlu0 %2307 }
 0xc12   : > { %5939 = vpow2.f32 %v2329_v18  ;;  %v2324_v25 = vsub.f32 %v4926_v5, %v2308_v49 }
 0xc14   : > { %v2335_v61 = vmul.f32 1.442695, %v2324_v25  ;;  %v2314_v15 = vpop.xlane.xlu1 %2313 }
 0xc15   : > { %v2326_v17 = vsub.f32 %v4929_v26, %v2314_v15  ;;  %v2305_v12 = vpop.xlane.xlu0 %2304 }
 0xc16   : > { %5941 = vpow2.f32 %v2335_v61  ;;  %v2323_v13 = vsub.f32 %v2268_v14, %v2305_v12 }
 0xc17   : > { %v2339_v7 = vmul.f32 1.442695, %v2326_v17 }
 0xc18   : > { %v2333_v10 = vmul.f32 1.442695, %v2323_v13  ;;  %v2320_v50 = vpop.xlane.xlu1 %2319 }
 0xc19   : > { %v2311_v20 = vpop.xlane.xlu0 %2310 }
 0xc1a   : > { %5943 = vpow2.f32 %v2333_v10  ;;  %v2325_v46 = vsub.f32 %v2278_v32, %v2311_v20 }
 0xc1b   : > { %v7067_v42 = vpop.eup %5937  ;;  %5945 = vpow2.f32 %v2339_v7 }
 0xc1c   : > { %v7069_v44 = vpop.eup %5939  ;;  %v2337_v4 = vmul.f32 1.442695, %v2325_v46  ;;  %v5676_v30 = vpop.permute.xlu1 %5675  ;;  %v2348_v5 = vsel %vm672_vm2, %v7067_v42, 0.0 }
 0xc1d   : > { %2349 = vadd.xlane.f32.xlu1 %v2348_v5  ;;  %v2317_v15 = vpop.xlane.xlu0 %2316  ;;  %v2345_v12 = vsel %vm672_vm2, %v7069_v44, 0.0  ;;  %v5678_v7 = vunpack.i.h.bf16 %v5676_v30  ;;  %v5677_v14 = vunpack.i.l.bf16 %v5676_v30 }
 0xc1e   : > { %2346 = vadd.xlane.f32.xlu0 %v2345_v12  ;;  %5947 = vpow2.f32 %v2337_v4 }
 0xc1f   : > { %v5381_v46 = vpack.c.bf16 %v5678_v7, %v5677_v14 }
 0xc20   : > { %v7075_v13 = vpop.eup %5941  ;;  %v5681_v10 = vpop.permute.xlu1 %5680 }
 0xc21   : > { %v5671_v17 = vpop.permute.xlu0 %5670  ;;  %v2354_v20 = vsel %vm672_vm2, %v7075_v13, 0.0  ;;  %v5683_v25 = vunpack.i.h.bf16 %v5681_v10  ;;  %v5682_v61 = vunpack.i.l.bf16 %v5681_v10 }
 0xc22   : > { %v5673_v26 = vunpack.i.h.bf16 %v5671_v17  ;;  %v5672_v32 = vunpack.i.l.bf16 %v5671_v17  ;;  %2355 = vadd.xlane.f32.xlu1 %v2354_v20 }
 0xc23   : > { %v5385_v20 = vpack.c.bf16 %v5683_v25, %v5682_v61  ;;  %v2327_v61 = vsub.f32 %v7048_v2, %v2317_v15 }
 0xc24   : > { %v7079_v40 = vpop.eup %5943  ;;  %v5377_v9 = vpack.c.bf16 %v5673_v26, %v5672_v32  ;;  %v5686_v4 = vpop.permute.xlu1 %5685 }
 0xc25   : > { %v2351_v18 = vsel %vm672_vm2, %v7079_v40, 0.0  ;;  %v7083_v49 = vpop.eup %5945  ;;  %v5688_v12 = vunpack.i.h.bf16 %v5686_v4  ;;  %v5687_v17 = vunpack.i.l.bf16 %v5686_v4  ;;  %v5691_v26 = vpop.permute.xlu0 %5690 }
 0xc26   : > { %2352 = vadd.xlane.f32.xlu0 %v2351_v18  ;;  %5378 = vmatprep.subr.bf16.mxu1 %v5377_v9  ;;  %v2360_v30 = vsel %vm672_vm2, %v7083_v49, 0.0  ;;  %v5693_v32 = vunpack.i.h.bf16 %v5691_v26  ;;  %v5692_v7 = vunpack.i.l.bf16 %v5691_v26  ;;  %v2328_v18 = vsub.f32 %v7046_v57, %v2320_v50 }
 0xc27   : > { %5380 = vmatpush3.bf16.msra.mxu1 %v5377_v9  ;;  %v5389_v14 = vpack.c.bf16 %v5688_v12, %v5687_v17 }
 0xc28   : > { %5382 = vmatprep.subr.bf16.mxu1 %v5381_v46  ;;  %v7087_v5 = vpop.eup %5947  ;;  %v5393_v9 = vpack.c.bf16 %v5693_v32, %v5692_v7  ;;  %v2343_v25 = vmul.f32 1.442695, %v2328_v18  ;;  %v5696_v15 = vpop.permute.xlu1 %5695 }
 0xc29   : > { %v2357_v10 = vsel %vm672_vm2, %v7087_v5, 0.0  ;;  %v5698_v32 = vunpack.i.h.bf16 %v5696_v15  ;;  %v5697_v7 = vunpack.i.l.bf16 %v5696_v15 }
 0xc2a   : > { %2361 = vadd.xlane.f32.xlu0 %v2360_v30  ;;  %5949 = vpow2.f32 %v2343_v25 }
 0xc2b   : > { %5384 = vmatpush3.bf16.msra.mxu1 %v5381_v46  ;;  %v2341_v46 = vmul.f32 1.442695, %v2327_v61  ;;  %v5399_v61 = vpack.c.bf16 %v5698_v32, %v5697_v7 }
 0xc2c   : > { %5386 = vmatprep.subr.bf16.mxu1 %v5385_v20 }
 0xc2d   : > { %5951 = vpow2.f32 %v2341_v46 }
 0xc2e   : > { %2358 = vadd.xlane.f32.xlu0 %v2357_v10 }
 0xc2f   : > { %5388 = vmatpush3.bf16.msra.mxu1 %v5385_v20 }
 0xc30   : > { %5390 = vmatprep.subr.bf16.mxu1 %v5389_v14 }
 0xc33   : > { %5705 = vrot.lane.b32.xlu1 %v6313_v34, %s6094_s30  ;;  %5392 = vmatpush3.bf16.msra.mxu1 %v5389_v14 }
 0xc34   : > { %5395 = vmatprep.subr.msk.bf16.mxu1 %vm6291_vm1, %v5393_v9  ;;  %v7105_v4 = vpop.eup %5949 }
 0xc35   : > { %v2366_v50 = vsel %vm672_vm2, %v7105_v4, 0.0 }
 0xc37   : > { %v7111_v57 = vpop.eup %5951 }
 0xc38   : > { %v2363_v2 = vsel %vm672_vm2, %v7111_v57, 0.0 }
 0xc44   : > { %5700 = vrot.lane.b32.xlu0 %v6307_v27, %s6094_s30 }
 0xc48   : > { %2538 = vrot.lane.b32.xlu0 %v6285_v3, %s6094_s30 }
 0xc4c   : > { %2542 = vrot.lane.b32.xlu0 %v6324_v39, %s6094_s30 }
 0xc50   : > { %2546 = vrot.lane.b32.xlu0 %v6334_v43, %s6094_s30 }
 0xc54   : > { %2550 = vrot.lane.b32.xlu0 %v6344_v47, %s6094_s30 }
 0xc57   : > { %2367 = vadd.xlane.f32.xlu1 %v2366_v50 }
 0xc5b   : > { %2364 = vadd.xlane.f32.xlu1 %v2363_v2 }
 0xc6c   : > { %2540 = vrot.lane.b32.xlu1 %v6321_v37, %s6094_s30 }
 0xc70   : > { %2544 = vrot.lane.b32.xlu1 %v6331_v41, %s6094_s30 }
 0xc74   : > { %2548 = vrot.lane.b32.xlu1 %v6341_v45, %s6094_s30 }
 0xc78   : > { %2552 = vrot.lane.b32.xlu1 %v6350_v48, %s6094_s30 }
 0xcaa   : > { %v2350_v30 = vpop.xlane.xlu1 %2349 }
 0xcab   : > { %5953 = vrcp.f32 %v2350_v30  ;;  %v2347_v12 = vpop.xlane.xlu0 %2346 }
 0xcac   : > { %5955 = vrcp.f32 %v2347_v12 }
 0xcaf   : > { %v2356_v17 = vpop.xlane.xlu1 %2355 }
 0xcb0   : > { %5957 = vrcp.f32 %v2356_v17 }
 0xcb3   : > { %v2353_v20 = vpop.xlane.xlu0 %2352 }
 0xcb4   : > { %5959 = vrcp.f32 %v2353_v20 }
 0xcb5   : > { %v5954_v26 = vpop.eup %5953 }
 0xcb6   : > { %v5956_v10 = vpop.eup %5955  ;;  %v2378_v25 = vmul.f32 %v5954_v26, %v7067_v42 }
 0xcb7   : > { %v2362_v14 = vpop.xlane.xlu0 %2361  ;;  %v2377_v18 = vmul.f32 %v5956_v10, %v7069_v44 }
 0xcb8   : > { %5961 = vrcp.f32 %v2362_v14 }
 0xcb9   : > { %4949 = vmatprep.mubr.msk.f32.mxu1 %vm672_vm2, %v2377_v18 }
 0xcba   : > { %4950 = vmatmul.mubr.msk.f32.vlgmr.msra.gmra.mrb[40].mxu1 %vm672_vm2, %v2378_v25  ;;  %v5958_v50 = vpop.eup %5957 }
 0xcbb   : > { %5398 = vmatpush3.bf16.xpose.msk.msra.mxu1 %vm6291_vm1, %v5393_v9  ;;  %v2359_v46 = vpop.xlane.xlu0 %2358  ;;  %v2380_v12 = vmul.f32 %v5958_v50, %v7075_v13  ;;  %v5706_v9 = vpop.permute.xlu1 %5705 }
 0xcbc   : > { %5963 = vrcp.f32 %v2359_v46  ;;  %5401 = vmatprep.subr.msk.bf16.mxu1 %vm6291_vm1, %v5399_v61  ;;  %v5708_v10 = vunpack.i.h.bf16 %v5706_v9 }
 0xcbe   : > { %v5960_v2 = vpop.eup %5959 }
 0xcbf   : > { %v5701_v15 = vpop.permute.xlu0 %5700  ;;  %v2379_v44 = vmul.f32 %v5960_v2, %v7079_v40  ;;  %v5707_v40 = vunpack.i.l.bf16 %v5706_v9 }
 0xcc0   : > { %v5703_v42 = vunpack.i.h.bf16 %v5701_v15  ;;  %v5702_v30 = vunpack.i.l.bf16 %v5701_v15 }
 0xcc1   : > { %4952 = vmatprep.mubr.msk.f32.mxu1 %vm672_vm2, %v2379_v44  ;;  %v5411_v7 = vpack.c.bf16 %v5708_v10, %v5707_v40 }
 0xcc2   : > { %v5405_v17 = vpack.c.bf16 %v5703_v42, %v5702_v30  ;;  %4953 = vmatmul.mubr.msk.f32.gmra.mrb[42].mxu1 %vm672_vm2, %v2380_v12  ;;  %v5962_v20 = vpop.eup %5961 }
 0xcc3   : > { %5404 = vmatpush3.bf16.xpose.msk.msra.mxu1 %vm6291_vm1, %v5399_v61  ;;  %v2382_v13 = vmul.f32 %v5962_v20, %v7083_v49 }
 0xcc4   : > { %5407 = vmatprep.subr.msk.bf16.mxu1 %vm6291_vm1, %v5405_v17 }
 0xcc6   : > { %v5964_v26 = vpop.eup %5963 }
 0xcc7   : > { %v2381_v32 = vmul.f32 %v5964_v26, %v7087_v5  ;;  %v2539_v5 = vpop.permute.xlu0 %2538 }
 0xcc9   : > { %4955 = vmatprep.mubr.msk.f32.mxu1 %vm672_vm2, %v2381_v32 }
 0xcca   : > { %4956 = vmatmul.mubr.msk.f32.gmra.mrb[44].mxu1 %vm672_vm2, %v2382_v13 }
 0xccb   : > { %5410 = vmatpush3.bf16.xpose.msk.msra.mxu1 %vm6291_vm1, %v5405_v17  ;;  %v2543_v2 = vpop.permute.xlu0 %2542 }
 0xccc   : > { %5413 = vmatprep.subr.msk.bf16.mxu1 %vm6291_vm1, %v5411_v7 }
 0xccf   : > { %v2547_v44 = vpop.permute.xlu0 %2546 }
 0xcd3   : > { %5416 = vmatpush3.bf16.xpose.msk.msra.mxu1 %vm6291_vm1, %v5411_v7 }
 0xce4   : > { %v2368_v14 = vpop.xlane.xlu1 %2367 }
 0xce5   : > { %5965 = vrcp.f32 %v2368_v14 }
 0xce8   : > { %v2365_v18 = vpop.xlane.xlu1 %2364 }
 0xce9   : > { %5967 = vrcp.f32 %v2365_v18 }
 0xcec   : > { %v2541_v61 = vpop.permute.xlu1 %2540 }
 0xcef   : > { %v5966_v49 = vpop.eup %5965 }
 0xcf0   : > { %v2384_v50 = vmul.f32 %v5966_v49, %v7105_v4  ;;  %v2545_v15 = vpop.permute.xlu1 %2544 }
 0xcf3   : > { %v5968_v25 = vpop.eup %5967 }
 0xcf4   : > { %v2383_v46 = vmul.f32 %v5968_v25, %v7111_v57  ;;  %v2549_v42 = vpop.permute.xlu1 %2548  ;;  %v2551_v57 = vpop.permute.xlu0 %2550 }
 0xcf6   : > { %4958 = vmatprep.mubr.msk.f32.mxu1 %vm672_vm2, %v2383_v46 }
 0xcf7   : > { %4959 = vmatmul.mubr.msk.f32.gmra.mrb[46].mxu1 %vm672_vm2, %v2384_v50 }
 0xcf8   : > { %4977 = vmatprep.mubr.msk.f32.mxu1 %vm518_vm0, %v2539_v5  ;;  %v2553_v4 = vpop.permute.xlu1 %2552 }
 0xcfb   : > { %4978 = vmatmul.mubr.msk.f32.vlgmr.msra.gmra.mrb[48].mxu1 %vm518_vm0, %v2541_v61 }
 0xcfc   : > { %4980 = vmatprep.mubr.msk.f32.mxu1 %vm518_vm0, %v2543_v2 }
 0xcff   : > { %4981 = vmatmul.mubr.msk.f32.gmra.mrb[50].mxu1 %vm518_vm0, %v2545_v15 }
 0xd00   : > { %4983 = vmatprep.mubr.msk.f32.mxu1 %vm518_vm0, %v2547_v44 }
 0xd03   : > { %4984 = vmatmul.mubr.msk.f32.gmra.mrb[52].mxu1 %vm518_vm0, %v2549_v42 }
 0xd04   : > { %4986 = vmatprep.mubr.msk.f32.mxu1 %vm518_vm0, %v2551_v57 }
 0xd07   : > { %4987 = vmatmul.mubr.msk.f32.gmra.mrb[54].mxu1 %vm518_vm0, %v2553_v4 }
 0xd8d   : > { %v7161_v30 = vpop.f32.mrb[40].mxu1 }
 0xd8e   : > { %v7163_v12 = vpop.f32.mrb[41].mxu1 }
 0xd95   : > { %v7165_v17 = vpop.f32.mrb[42].mxu1 }
 0xd96   : > { %7764 = vst [vmem:[#allocation12_spill] sm:$0xff] %v7165_v17  ;;  %v7167_v9 = vpop.f32.mrb[43].mxu1 }
 0xd97   : > { %7765 = vst [vmem:[#allocation13_spill] sm:$0xff] %v7167_v9 }
 0xd9d   : > { %v7169_v20 = vpop.f32.mrb[44].mxu1 }
 0xd9e   : > { %7766 = vst [vmem:[#allocation14_spill] sm:$0xff] %v7169_v20  ;;  %v7171_v26 = vpop.f32.mrb[45].mxu1 }
 0xd9f   : > { %7767 = vst [vmem:[#allocation15_spill] sm:$0xff] %v7171_v26 }
 0xdca   : > { %v7173_v10 = vpop.f32.mrb[46].mxu1 }
 0xdcb   : > { %7768 = vst [vmem:[#allocation16_spill] sm:$0xff] %v7173_v10  ;;  %v7175_v40 = vpop.f32.mrb[47].mxu1 }
 0xdcc   : > { %7769 = vst [vmem:[#allocation17_spill] sm:$0xff] %v7175_v40 }
 0xdce   : > { %v4979_v32 = vpop.f32.mrb[48].mxu1 }
 0xdcf   : > { %v2668_v13 = vpop.f32.mrb[49].mxu1  ;;  %v2710_v7 = vsel %vm672_vm2, %v4979_v32, -inf }
 0xdd0   : > { %2711 = vmax.xlane.f32.xlu1 %v2710_v7  ;;  %v2707_v14 = vsel %vm672_vm2, %v2668_v13, -inf }
 0xdd1   : > { %2708 = vmax.xlane.f32.xlu0 %v2707_v14 }
 0xdd2   : > { %v4982_v18 = vpop.f32.mrb[50].mxu1 }
 0xdd3   : > { %v2678_v5 = vpop.f32.mrb[51].mxu1  ;;  %v2716_v49 = vsel %vm672_vm2, %v4982_v18, -inf }
 0xdd4   : > { %v2713_v50 = vsel %vm672_vm2, %v2678_v5, -inf }
 0xdd5   : > { %2717 = vmax.xlane.f32.xlu0 %v2716_v49 }
 0xdd6   : > { %v4985_v25 = vpop.f32.mrb[52].mxu1 }
 0xdd7   : > { %v2688_v61 = vpop.f32.mrb[53].mxu1  ;;  %v2722_v46 = vsel %vm672_vm2, %v4985_v25, -inf }
 0xdd8   : > { %2723 = vmax.xlane.f32.xlu1 %v2722_v46  ;;  %v2719_v42 = vsel %vm672_vm2, %v2688_v61, -inf }
 0xdd9   : > { %2714 = vmax.xlane.f32.xlu0 %v2713_v50 }
 0xdda   : > { %v7182_v2 = vpop.f32.mrb[54].mxu1 }
 0xddb   : > { %v7184_v15 = vpop.f32.mrb[55].mxu1  ;;  %v2728_v44 = vsel %vm672_vm2, %v7182_v2, -inf }
 0xddc   : > { %2729 = vmax.xlane.f32.xlu1 %v2728_v44  ;;  %v2725_v57 = vsel %vm672_vm2, %v7184_v15, -inf }
 0xddd   : > { %2720 = vmax.xlane.f32.xlu0 %v2719_v42 }
 0xde1   : > { %2726 = vmax.xlane.f32.xlu0 %v2725_v57 }
 0xded   : > { %5715 = vrot.lane.b32.xlu1 %v6905_v29, %s6094_s30 }
 0xdf1   : > { %5720 = vrot.lane.b32.xlu1 %v6911_v33, %s6094_s30 }
 0xdf5   : > { %5725 = vrot.lane.b32.xlu1 %v6917_v35, %s6094_s30 }
 0xdf7   : > { %5710 = vrot.lane.b32.xlu0 %v6923_v1, %s6094_s30 }
 0xdf9   : > { %5735 = vrot.lane.b32.xlu1 %v6301_v19, %s6095_s5 }
 0xdfb   : > { %5730 = vrot.lane.b32.xlu0 %v6295_v11, %s6095_s5 }
 0xe5d   : > { %v2712_v4 = vpop.xlane.xlu1 %2711 }
 0xe5e   : > { %v2732_v7 = vsub.f32 %v4979_v32, %v2712_v4  ;;  %v2709_v14 = vpop.xlane.xlu0 %2708 }
 0xe5f   : > { %v2731_v29 = vsub.f32 %v2668_v13, %v2709_v14 }
 0xe60   : > { %v2741_v49 = vmul.f32 1.442695, %v2732_v7 }
 0xe61   : > { %v2739_v46 = vmul.f32 1.442695, %v2731_v29 }
 0xe62   : > { %5969 = vpow2.f32 %v2741_v49  ;;  %v2718_v33 = vpop.xlane.xlu0 %2717 }
 0xe63   : > { %5971 = vpow2.f32 %v2739_v46  ;;  %v2734_v35 = vsub.f32 %v4982_v18, %v2718_v33 }
 0xe65   : > { %v2745_v50 = vmul.f32 1.442695, %v2734_v35  ;;  %v2724_v44 = vpop.xlane.xlu1 %2723 }
 0xe66   : > { %v2736_v1 = vsub.f32 %v4985_v25, %v2724_v44  ;;  %v2715_v42 = vpop.xlane.xlu0 %2714 }
 0xe67   : > { %5973 = vpow2.f32 %v2745_v50  ;;  %v2733_v57 = vsub.f32 %v2678_v5, %v2715_v42 }
 0xe68   : > { %v2749_v40 = vmul.f32 1.442695, %v2736_v1 }
 0xe69   : > { %v2743_v10 = vmul.f32 1.442695, %v2733_v57  ;;  %v2730_v26 = vpop.xlane.xlu1 %2729 }
 0xe6a   : > { %v2721_v20 = vpop.xlane.xlu0 %2720 }
 0xe6b   : > { %5975 = vpow2.f32 %v2743_v10  ;;  %v2735_v32 = vsub.f32 %v2688_v61, %v2721_v20 }
 0xe6c   : > { %v7203_v4 = vpop.eup %5969  ;;  %5977 = vpow2.f32 %v2749_v40 }
 0xe6d   : > { %v7205_v13 = vpop.eup %5971  ;;  %v2747_v7 = vmul.f32 1.442695, %v2735_v32  ;;  %v5716_v14 = vpop.permute.xlu1 %5715  ;;  %v2758_v18 = vsel %vm672_vm2, %v7203_v4, 0.0 }
 0xe6e   : > { %2759 = vadd.xlane.f32.xlu1 %v2758_v18  ;;  %v2727_v25 = vpop.xlane.xlu0 %2726  ;;  %v2755_v5 = vsel %vm672_vm2, %v7205_v13, 0.0  ;;  %v5718_v40 = vunpack.i.h.bf16 %v5716_v14  ;;  %v5717_v49 = vunpack.i.l.bf16 %v5716_v14 }
 0xe6f   : > { %2756 = vadd.xlane.f32.xlu0 %v2755_v5  ;;  %5979 = vpow2.f32 %v2747_v7 }
 0xe70   : > { %v5421_v32 = vpack.c.bf16 %v5718_v40, %v5717_v49 }
 0xe71   : > { %v7211_v29 = vpop.eup %5973  ;;  %v5721_v20 = vpop.permute.xlu1 %5720 }
 0xe72   : > { %v5711_v10 = vpop.permute.xlu0 %5710  ;;  %v2764_v61 = vsel %vm672_vm2, %v7211_v29, 0.0  ;;  %v5723_v42 = vunpack.i.h.bf16 %v5721_v20  ;;  %v5722_v57 = vunpack.i.l.bf16 %v5721_v20 }
 0xe73   : > { %v5713_v46 = vunpack.i.h.bf16 %v5711_v10  ;;  %v5712_v33 = vunpack.i.l.bf16 %v5711_v10  ;;  %2765 = vadd.xlane.f32.xlu1 %v2764_v61 }
 0xe74   : > { %v5425_v61 = vpack.c.bf16 %v5723_v42, %v5722_v57  ;;  %v2737_v57 = vsub.f32 %v7184_v15, %v2727_v25 }
 0xe75   : > { %v7215_v35 = vpop.eup %5975  ;;  %v5417_v50 = vpack.c.bf16 %v5713_v46, %v5712_v33  ;;  %v5726_v7 = vpop.permute.xlu1 %5725 }
 0xe76   : > { %v2761_v44 = vsel %vm672_vm2, %v7215_v35, 0.0  ;;  %v7219_v1 = vpop.eup %5977  ;;  %v5728_v5 = vunpack.i.h.bf16 %v5726_v7  ;;  %v5727_v10 = vunpack.i.l.bf16 %v5726_v7  ;;  %v5731_v46 = vpop.permute.xlu0 %5730 }
 0xe77   : > { %2762 = vadd.xlane.f32.xlu0 %v2761_v44  ;;  %5418 = vmatprep.subr.bf16.mxu0 %v5417_v50  ;;  %v2770_v14 = vsel %vm672_vm2, %v7219_v1, 0.0  ;;  %v5733_v33 = vunpack.i.h.bf16 %v5731_v46  ;;  %v5732_v40 = vunpack.i.l.bf16 %v5731_v46  ;;  %v2738_v44 = vsub.f32 %v7182_v2, %v2730_v26 }
 0xe78   : > { %5420 = vmatpush3.bf16.msra.mxu0 %v5417_v50  ;;  %v5429_v49 = vpack.c.bf16 %v5728_v5, %v5727_v10 }
 0xe79   : > { %5422 = vmatprep.subr.bf16.mxu0 %v5421_v32  ;;  %v7223_v18 = vpop.eup %5979  ;;  %v5433_v50 = vpack.c.bf16 %v5733_v33, %v5732_v40  ;;  %v2753_v42 = vmul.f32 1.442695, %v2738_v44  ;;  %v5736_v25 = vpop.permute.xlu1 %5735 }
 0xe7a   : > { %v2767_v20 = vsel %vm672_vm2, %v7223_v18, 0.0  ;;  %v5738_v33 = vunpack.i.h.bf16 %v5736_v25  ;;  %v5737_v40 = vunpack.i.l.bf16 %v5736_v25 }
 0xe7b   : > { %2771 = vadd.xlane.f32.xlu0 %v2770_v14  ;;  %5981 = vpow2.f32 %v2753_v42 }
 0xe7c   : > { %5424 = vmatpush3.bf16.msra.mxu0 %v5421_v32  ;;  %v2751_v32 = vmul.f32 1.442695, %v2737_v57  ;;  %v5439_v57 = vpack.c.bf16 %v5738_v33, %v5737_v40 }
 0xe7d   : > { %5426 = vmatprep.subr.bf16.mxu0 %v5425_v61 }
 0xe7e   : > { %5983 = vpow2.f32 %v2751_v32 }
 0xe7f   : > { %2768 = vadd.xlane.f32.xlu0 %v2767_v20 }
 0xe80   : > { %5428 = vmatpush3.bf16.msra.mxu0 %v5425_v61 }
 0xe81   : > { %5430 = vmatprep.subr.bf16.mxu0 %v5429_v49 }
 0xe84   : > { %5745 = vrot.lane.b32.xlu1 %v6313_v34, %s6095_s5  ;;  %5432 = vmatpush3.bf16.msra.mxu0 %v5429_v49 }
 0xe85   : > { %5435 = vmatprep.subr.msk.bf16.mxu0 %vm6291_vm1, %v5433_v50  ;;  %v7241_v7 = vpop.eup %5981 }
 0xe86   : > { %v2776_v26 = vsel %vm672_vm2, %v7241_v7, 0.0 }
 0xe88   : > { %v7247_v2 = vpop.eup %5983 }
 0xe89   : > { %v2773_v15 = vsel %vm672_vm2, %v7247_v2, 0.0 }
 0xe95   : > { %5740 = vrot.lane.b32.xlu0 %v6307_v27, %s6095_s5 }
 0xe99   : > { %2948 = vrot.lane.b32.xlu0 %v6285_v3, %s6095_s5 }
 0xe9d   : > { %2952 = vrot.lane.b32.xlu0 %v6324_v39, %s6095_s5 }
 0xea1   : > { %2956 = vrot.lane.b32.xlu0 %v6334_v43, %s6095_s5 }
 0xea5   : > { %2960 = vrot.lane.b32.xlu0 %v6344_v47, %s6095_s5 }
 0xea8   : > { %2777 = vadd.xlane.f32.xlu1 %v2776_v26 }
 0xeac   : > { %2774 = vadd.xlane.f32.xlu1 %v2773_v15 }
 0xebd   : > { %2950 = vrot.lane.b32.xlu1 %v6321_v37, %s6095_s5 }
 0xec1   : > { %2954 = vrot.lane.b32.xlu1 %v6331_v41, %s6095_s5 }
 0xec5   : > { %2958 = vrot.lane.b32.xlu1 %v6341_v45, %s6095_s5 }
 0xec9   : > { %2962 = vrot.lane.b32.xlu1 %v6350_v48, %s6095_s5 }
 0xefb   : > { %v2760_v14 = vpop.xlane.xlu1 %2759 }
 0xefc   : > { %5985 = vrcp.f32 %v2760_v14  ;;  %v2757_v5 = vpop.xlane.xlu0 %2756 }
 0xefd   : > { %5987 = vrcp.f32 %v2757_v5 }
 0xf00   : > { %v2766_v10 = vpop.xlane.xlu1 %2765 }
 0xf01   : > { %5989 = vrcp.f32 %v2766_v10 }
 0xf04   : > { %v2763_v61 = vpop.xlane.xlu0 %2762 }
 0xf05   : > { %5991 = vrcp.f32 %v2763_v61 }
 0xf06   : > { %v5986_v46 = vpop.eup %5985 }
 0xf07   : > { %v5988_v20 = vpop.eup %5987  ;;  %v2788_v42 = vmul.f32 %v5986_v46, %v7203_v4 }
 0xf08   : > { %v2772_v49 = vpop.xlane.xlu0 %2771  ;;  %v2787_v44 = vmul.f32 %v5988_v20, %v7205_v13 }
 0xf09   : > { %5993 = vrcp.f32 %v2772_v49 }
 0xf0a   : > { %5005 = vmatprep.mubr.msk.f32.mxu0 %vm672_vm2, %v2787_v44 }
 0xf0b   : > { %5006 = vmatmul.mubr.msk.f32.vlgmr.msra.gmra.mrb[56].mxu0 %vm672_vm2, %v2788_v42  ;;  %v5990_v26 = vpop.eup %5989 }
 0xf0c   : > { %5438 = vmatpush3.bf16.xpose.msk.msra.mxu0 %vm6291_vm1, %v5433_v50  ;;  %v2769_v32 = vpop.xlane.xlu0 %2768  ;;  %v2790_v5 = vmul.f32 %v5990_v26, %v7211_v29  ;;  %v5746_v50 = vpop.permute.xlu1 %5745 }
 0xf0d   : > { %5995 = vrcp.f32 %v2769_v32  ;;  %5441 = vmatprep.subr.msk.bf16.mxu0 %vm6291_vm1, %v5439_v57  ;;  %v5748_v20 = vunpack.i.h.bf16 %v5746_v50 }
 0xf0f   : > { %v5992_v15 = vpop.eup %5991 }
 0xf10   : > { %v5741_v25 = vpop.permute.xlu0 %5740  ;;  %v2789_v13 = vmul.f32 %v5992_v15, %v7215_v35  ;;  %v5747_v35 = vunpack.i.l.bf16 %v5746_v50 }
 0xf11   : > { %v5743_v4 = vunpack.i.h.bf16 %v5741_v25  ;;  %v5742_v14 = vunpack.i.l.bf16 %v5741_v25 }
 0xf12   : > { %5008 = vmatprep.mubr.msk.f32.mxu0 %vm672_vm2, %v2789_v13  ;;  %v5451_v40 = vpack.c.bf16 %v5748_v20, %v5747_v35 }
 0xf13   : > { %v5445_v10 = vpack.c.bf16 %v5743_v4, %v5742_v14  ;;  %5009 = vmatmul.mubr.msk.f32.gmra.mrb[58].mxu0 %vm672_vm2, %v2790_v5  ;;  %v5994_v61 = vpop.eup %5993 }
 0xf14   : > { %5444 = vmatpush3.bf16.xpose.msk.msra.mxu0 %vm6291_vm1, %v5439_v57  ;;  %v2792_v29 = vmul.f32 %v5994_v61, %v7219_v1 }
 0xf15   : > { %5447 = vmatprep.subr.msk.bf16.mxu0 %vm6291_vm1, %v5445_v10 }
 0xf17   : > { %v5996_v46 = vpop.eup %5995 }
 0xf18   : > { %v2791_v33 = vmul.f32 %v5996_v46, %v7223_v18  ;;  %v2949_v18 = vpop.permute.xlu0 %2948 }
 0xf1a   : > { %5011 = vmatprep.mubr.msk.f32.mxu0 %vm672_vm2, %v2791_v33 }
 0xf1b   : > { %5012 = vmatmul.mubr.msk.f32.gmra.mrb[60].mxu0 %vm672_vm2, %v2792_v29 }
 0xf1c   : > { %5450 = vmatpush3.bf16.xpose.msk.msra.mxu0 %vm6291_vm1, %v5445_v10  ;;  %v2953_v15 = vpop.permute.xlu0 %2952 }
 0xf1d   : > { %5453 = vmatprep.subr.msk.bf16.mxu0 %vm6291_vm1, %v5451_v40 }
 0xf20   : > { %v2957_v13 = vpop.permute.xlu0 %2956 }
 0xf24   : > { %5456 = vmatpush3.bf16.xpose.msk.msra.mxu0 %vm6291_vm1, %v5451_v40 }
 0xf35   : > { %v2778_v49 = vpop.xlane.xlu1 %2777 }
 0xf36   : > { %5997 = vrcp.f32 %v2778_v49 }
 0xf39   : > { %v2775_v44 = vpop.xlane.xlu1 %2774 }
 0xf3a   : > { %5999 = vrcp.f32 %v2775_v44 }
 0xf3d   : > { %v2951_v57 = vpop.permute.xlu1 %2950 }
 0xf40   : > { %v5998_v1 = vpop.eup %5997 }
 0xf41   : > { %v2794_v26 = vmul.f32 %v5998_v1, %v7241_v7  ;;  %v2955_v25 = vpop.permute.xlu1 %2954 }
 0xf44   : > { %v6000_v42 = vpop.eup %5999 }
 0xf45   : > { %v2793_v32 = vmul.f32 %v6000_v42, %v7247_v2  ;;  %v2959_v4 = vpop.permute.xlu1 %2958  ;;  %v2961_v2 = vpop.permute.xlu0 %2960 }
 0xf47   : > { %5014 = vmatprep.mubr.msk.f32.mxu0 %vm672_vm2, %v2793_v32 }
 0xf48   : > { %5015 = vmatmul.mubr.msk.f32.gmra.mrb[62].mxu0 %vm672_vm2, %v2794_v26 }
 0xf49   : > { %5033 = vmatprep.mubr.msk.f32.mxu0 %vm518_vm0, %v2949_v18  ;;  %v2963_v7 = vpop.permute.xlu1 %2962 }
 0xf4c   : > { %5034 = vmatmul.mubr.msk.f32.vlgmr.msra.gmra.mrb[64].mxu0 %vm518_vm0, %v2951_v57 }
 0xf4d   : > { %5036 = vmatprep.mubr.msk.f32.mxu0 %vm518_vm0, %v2953_v15 }
 0xf50   : > { %5037 = vmatmul.mubr.msk.f32.gmra.mrb[66].mxu0 %vm518_vm0, %v2955_v25 }
 0xf51   : > { %5039 = vmatprep.mubr.msk.f32.mxu0 %vm518_vm0, %v2957_v13 }
 0xf54   : > { %5040 = vmatmul.mubr.msk.f32.gmra.mrb[68].mxu0 %vm518_vm0, %v2959_v4 }
 0xf55   : > { %5042 = vmatprep.mubr.msk.f32.mxu0 %vm518_vm0, %v2961_v2 }
 0xf58   : > { %5043 = vmatmul.mubr.msk.f32.gmra.mrb[70].mxu0 %vm518_vm0, %v2963_v7  ;;  %v6073_v7 = vld [vmem:[%s6441_s25 + $0x18] sm:$0xff] }
 0xfde   : > { %v7297_v14 = vpop.f32.mrb[56].mxu0 }
 0xfdf   : > { %7770 = vst [vmem:[#allocation18_spill] sm:$0xff] %v7297_v14  ;;  %v7299_v5 = vpop.f32.mrb[57].mxu0 }
 0xfe0   : > { %7771 = vst [vmem:[#allocation19_spill] sm:$0xff] %v7299_v5 }
 0xfe6   : > { %v7301_v10 = vpop.f32.mrb[58].mxu0 }
 0xfe7   : > { %7772 = vst [vmem:[#allocation20_spill] sm:$0xff] %v7301_v10  ;;  %v7303_v50 = vpop.f32.mrb[59].mxu0 }
 0xfe8   : > { %7773 = vst [vmem:[#allocation21_spill] sm:$0xff] %v7303_v50 }
 0xfee   : > { %v7305_v61 = vpop.f32.mrb[60].mxu0 }
 0xfef   : > { %7774 = vst [vmem:[#allocation22_spill] sm:$0xff] %v7305_v61  ;;  %v7307_v46 = vpop.f32.mrb[61].mxu0 }
 0xff0   : > { %7775 = vst [vmem:[#allocation23_spill] sm:$0xff] %v7307_v46 }
0x101b   : > { %v7309_v20 = vpop.f32.mrb[62].mxu0 }
0x101c   : > { %7776 = vst [vmem:[#allocation24_spill] sm:$0xff] %v7309_v20  ;;  %v7311_v35 = vpop.f32.mrb[63].mxu0 }
0x101d   : > { %7777 = vst [vmem:[#allocation25_spill] sm:$0xff] %v7311_v35 }
0x101f   : > { %v5035_v33 = vpop.f32.mrb[64].mxu0 }
0x1020   : > { %v3078_v29 = vpop.f32.mrb[65].mxu0  ;;  %v3120_v40 = vsel %vm672_vm2, %v5035_v33, -inf }
0x1021   : > { %3121 = vmax.xlane.f32.xlu1 %v3120_v40  ;;  %v3117_v49 = vsel %vm672_vm2, %v3078_v29, -inf  ;;  %v6074_v40 = vld [vmem:[%s6441_s25 + $0x10] sm:$0xff] }
0x1022   : > { %3118 = vmax.xlane.f32.xlu0 %v3117_v49  ;;  %v7329_v49 = vpack.i.bf16 %v6073_v7, %v6074_v40  ;;  %v6080_v7 = vld [vmem:[%s6441_s25] sm:$0xff] }
0x1023   : > { %v5038_v44 = vpop.f32.mrb[66].mxu0 }
0x1024   : > { %v3088_v18 = vpop.f32.mrb[67].mxu0  ;;  %v3126_v1 = vsel %vm672_vm2, %v5038_v44, -inf }
0x1025   : > { %v3123_v26 = vsel %vm672_vm2, %v3088_v18, -inf }
0x1026   : > { %3127 = vmax.xlane.f32.xlu0 %v3126_v1  ;;  %v6075_v1 = vld [vmem:[%s6441_s25 + $0x28] sm:$0xff] }
0x1027   : > { %v5041_v42 = vpop.f32.mrb[68].mxu0 }
0x1028   : > { %v3098_v57 = vpop.f32.mrb[69].mxu0  ;;  %v3132_v32 = vsel %vm672_vm2, %v5041_v42, -inf }
0x1029   : > { %3133 = vmax.xlane.f32.xlu1 %v3132_v32  ;;  %v3129_v4 = vsel %vm672_vm2, %v3098_v57, -inf  ;;  %v6076_v32 = vld [vmem:[%s6441_s25 + $0x20] sm:$0xff] }
0x102a   : > { %3124 = vmax.xlane.f32.xlu0 %v3123_v26  ;;  %v7335_v26 = vpack.i.bf16 %v6075_v1, %v6076_v32 }
0x102b   : > { %v7318_v15 = vpop.f32.mrb[70].mxu0 }
0x102c   : > { %v7320_v25 = vpop.f32.mrb[71].mxu0  ;;  %v3138_v13 = vsel %vm672_vm2, %v7318_v15, -inf }
0x102d   : > { %3139 = vmax.xlane.f32.xlu1 %v3138_v13  ;;  %v3135_v2 = vsel %vm672_vm2, %v7320_v25, -inf  ;;  %v6077_v13 = vld [vmem:[%s6441_s25 + $0x38] sm:$0xff] }
0x102e   : > { %3130 = vmax.xlane.f32.xlu0 %v3129_v4  ;;  %v6078_v4 = vld [vmem:[%s6441_s25 + $0x30] sm:$0xff] }
0x102f   : > { %v7341_v35 = vpack.i.bf16 %v6077_v13, %v6078_v4 }
0x1032   : > { %3136 = vmax.xlane.f32.xlu0 %v3135_v2  ;;  %v6079_v2 = vld [vmem:[%s6441_s25 + $0x8] sm:$0xff] }
0x1033   : > { %v7347_v40 = vpack.i.bf16 %v6079_v2, %v6080_v7 }
0x103e   : > { %5755 = vrot.lane.b32.xlu1 %v7329_v49, %s6095_s5 }
0x1042   : > { %5760 = vrot.lane.b32.xlu1 %v7335_v26, %s6095_s5 }
0x1046   : > { %5765 = vrot.lane.b32.xlu1 %v7341_v35, %s6095_s5 }
0x1048   : > { %5750 = vrot.lane.b32.xlu0 %v7347_v40, %s6095_s5 }
0x104a   : > { %5775 = vrot.lane.b32.xlu1 %v6301_v19, %s6096_s6 }
0x104c   : > { %5770 = vrot.lane.b32.xlu0 %v6295_v11, %s6096_s6 }
0x10ae   : > { %v3122_v1 = vpop.xlane.xlu1 %3121 }
0x10af   : > { %v3142_v32 = vsub.f32 %v5035_v33, %v3122_v1  ;;  %v3119_v13 = vpop.xlane.xlu0 %3118 }
0x10b0   : > { %v3141_v4 = vsub.f32 %v3078_v29, %v3119_v13 }
0x10b1   : > { %v3151_v20 = vmul.f32 1.442695, %v3142_v32 }
0x10b2   : > { %v3149_v46 = vmul.f32 1.442695, %v3141_v4 }
0x10b3   : > { %6001 = vpow2.f32 %v3151_v20  ;;  %v3128_v61 = vpop.xlane.xlu0 %3127 }
0x10b4   : > { %6003 = vpow2.f32 %v3149_v46  ;;  %v3144_v2 = vsub.f32 %v5038_v44, %v3128_v61 }
0x10b6   : > { %v3155_v7 = vmul.f32 1.442695, %v3144_v2  ;;  %v3134_v50 = vpop.xlane.xlu1 %3133 }
0x10b7   : > { %v3146_v10 = vsub.f32 %v5041_v42, %v3134_v50  ;;  %v3125_v5 = vpop.xlane.xlu0 %3124 }
0x10b8   : > { %6005 = vpow2.f32 %v3155_v7  ;;  %v3143_v14 = vsub.f32 %v3088_v18, %v3125_v5 }
0x10b9   : > { %v3159_v19 = vmul.f32 1.442695, %v3146_v10 }
0x10ba   : > { %v3153_v9 = vmul.f32 1.442695, %v3143_v14  ;;  %v3140_v17 = vpop.xlane.xlu1 %3139 }
0x10bb   : > { %v3131_v11 = vpop.xlane.xlu0 %3130 }
0x10bc   : > { %6007 = vpow2.f32 %v3153_v9  ;;  %v3145_v33 = vsub.f32 %v3098_v57, %v3131_v11 }
0x10bd   : > { %v7355_v1 = vpop.eup %6001  ;;  %6009 = vpow2.f32 %v3159_v19 }
0x10be   : > { %v7357_v29 = vpop.eup %6003  ;;  %v3157_v20 = vmul.f32 1.442695, %v3145_v33  ;;  %v5756_v46 = vpop.permute.xlu1 %5755  ;;  %v3168_v61 = vsel %vm672_vm2, %v7355_v1, 0.0 }
0x10bf   : > { %3169 = vadd.xlane.f32.xlu1 %v3168_v61  ;;  %v3137_v50 = vpop.xlane.xlu0 %3136  ;;  %v3165_v5 = vsel %vm672_vm2, %v7357_v29, 0.0  ;;  %v5758_v18 = vunpack.i.h.bf16 %v5756_v46  ;;  %v5757_v42 = vunpack.i.l.bf16 %v5756_v46 }
0x10c0   : > { %3166 = vadd.xlane.f32.xlu0 %v3165_v5  ;;  %6011 = vpow2.f32 %v3157_v20 }
0x10c1   : > { %v5461_v33 = vpack.c.bf16 %v5758_v18, %v5757_v42 }
0x10c2   : > { %v7363_v14 = vpop.eup %6005  ;;  %v5761_v9 = vpop.permute.xlu1 %5760 }
0x10c3   : > { %v5751_v10 = vpop.permute.xlu0 %5750  ;;  %v3174_v44 = vsel %vm672_vm2, %v7363_v14, 0.0  ;;  %v5763_v19 = vunpack.i.h.bf16 %v5761_v9  ;;  %v5762_v11 = vunpack.i.l.bf16 %v5761_v9 }
0x10c4   : > { %v5753_v57 = vunpack.i.h.bf16 %v5751_v10  ;;  %v5752_v32 = vunpack.i.l.bf16 %v5751_v10  ;;  %3175 = vadd.xlane.f32.xlu1 %v3174_v44 }
0x10c5   : > { %v5465_v44 = vpack.c.bf16 %v5763_v19, %v5762_v11  ;;  %v3147_v11 = vsub.f32 %v7320_v25, %v3137_v50 }
0x10c6   : > { %v7367_v13 = vpop.eup %6007  ;;  %v5457_v4 = vpack.c.bf16 %v5753_v57, %v5752_v32  ;;  %v5766_v20 = vpop.permute.xlu1 %5765 }
0x10c7   : > { %v3171_v2 = vsel %vm672_vm2, %v7367_v13, 0.0  ;;  %v7371_v7 = vpop.eup %6009  ;;  %v5768_v5 = vunpack.i.h.bf16 %v5766_v20  ;;  %v5767_v10 = vunpack.i.l.bf16 %v5766_v20  ;;  %v5771_v57 = vpop.permute.xlu0 %5770 }
0x10c8   : > { %3172 = vadd.xlane.f32.xlu0 %v3171_v2  ;;  %5458 = vmatprep.subr.bf16.mxu1 %v5457_v4  ;;  %v3180_v46 = vsel %vm672_vm2, %v7371_v7, 0.0  ;;  %v5773_v18 = vunpack.i.h.bf16 %v5771_v57  ;;  %v5772_v42 = vunpack.i.l.bf16 %v5771_v57  ;;  %v3148_v2 = vsub.f32 %v7318_v15, %v3140_v17 }
0x10c9   : > { %5460 = vmatpush3.bf16.msra.mxu1 %v5457_v4  ;;  %v5469_v32 = vpack.c.bf16 %v5768_v5, %v5767_v10 }
0x10ca   : > { %5462 = vmatprep.subr.bf16.mxu1 %v5461_v33  ;;  %v7375_v61 = vpop.eup %6011  ;;  %v5473_v4 = vpack.c.bf16 %v5773_v18, %v5772_v42  ;;  %v3163_v19 = vmul.f32 1.442695, %v3148_v2 }
0x10cb   : > { %v3177_v9 = vsel %vm672_vm2, %v7375_v61, 0.0 }
0x10cc   : > { %3181 = vadd.xlane.f32.xlu0 %v3180_v46  ;;  %6013 = vpow2.f32 %v3163_v19 }
0x10cd   : > { %5464 = vmatpush3.bf16.msra.mxu1 %v5461_v33 }
0x10ce   : > { %5466 = vmatprep.subr.bf16.mxu1 %v5465_v44 }
0x10d0   : > { %3178 = vadd.xlane.f32.xlu0 %v3177_v9 }
0x10d1   : > { %5468 = vmatpush3.bf16.msra.mxu1 %v5465_v44 }
0x10d2   : > { %5470 = vmatprep.subr.bf16.mxu1 %v5469_v32 }
0x10d5   : > { %5785 = vrot.lane.b32.xlu1 %v6313_v34, %s6096_s6  ;;  %5472 = vmatpush3.bf16.msra.mxu1 %v5469_v32  ;;  %v3161_v34 = vmul.f32 1.442695, %v3147_v11 }
0x10d6   : > { %5475 = vmatprep.subr.msk.bf16.mxu1 %vm6291_vm1, %v5473_v4 }
0x10d7   : > { %6015 = vpow2.f32 %v3161_v34 }
0x10d9   : > { %3360 = vrot.lane.b32.xlu1 %v6321_v37, %s6096_s6 }
0x10e6   : > { %5780 = vrot.lane.b32.xlu0 %v6307_v27, %s6096_s6  ;;  %v7397_v27 = vpop.eup %6013 }
0x10e7   : > { %v7401_v37 = vpop.eup %6015 }
0x10ea   : > { %3358 = vrot.lane.b32.xlu0 %v6285_v3, %s6096_s6  ;;  %v3186_v3 = vsel %vm672_vm2, %v7397_v27, 0.0 }
0x10ee   : > { %3362 = vrot.lane.b32.xlu0 %v6324_v39, %s6096_s6  ;;  %v3183_v39 = vsel %vm672_vm2, %v7401_v37, 0.0 }
0x10f2   : > { %3366 = vrot.lane.b32.xlu0 %v6334_v43, %s6096_s6  ;;  %v5776_v43 = vpop.permute.xlu1 %5775 }
0x10f3   : > { %v5778_v20 = vunpack.i.h.bf16 %v5776_v43  ;;  %v5777_v46 = vunpack.i.l.bf16 %v5776_v43 }
0x10f6   : > { %3370 = vrot.lane.b32.xlu0 %v6344_v47, %s6096_s6 }
0x10fd   : > { %3187 = vadd.xlane.f32.xlu1 %v3186_v3 }
0x1101   : > { %3184 = vadd.xlane.f32.xlu1 %v3183_v39 }
0x1112   : > { %3364 = vrot.lane.b32.xlu1 %v6331_v41, %s6096_s6 }
0x1116   : > { %3368 = vrot.lane.b32.xlu1 %v6341_v45, %s6096_s6 }
0x111a   : > { %3372 = vrot.lane.b32.xlu1 %v6350_v48, %s6096_s6  ;;  %v5479_v48 = vpack.c.bf16 %v5778_v20, %v5777_v46 }
0x114c   : > { %v3170_v47 = vpop.xlane.xlu1 %3169 }
0x114d   : > { %6017 = vrcp.f32 %v3170_v47  ;;  %v3167_v17 = vpop.xlane.xlu0 %3166 }
0x114e   : > { %6019 = vrcp.f32 %v3167_v17 }
0x1151   : > { %v3176_v15 = vpop.xlane.xlu1 %3175 }
0x1152   : > { %6021 = vrcp.f32 %v3176_v15 }
0x1155   : > { %v3173_v25 = vpop.xlane.xlu0 %3172 }
0x1156   : > { %6023 = vrcp.f32 %v3173_v25 }
0x1157   : > { %v6018_v50 = vpop.eup %6017 }
0x1158   : > { %v6020_v33 = vpop.eup %6019  ;;  %v3198_v45 = vmul.f32 %v6018_v50, %v7355_v1 }
0x1159   : > { %v3182_v41 = vpop.xlane.xlu0 %3181  ;;  %v3197_v5 = vmul.f32 %v6020_v33, %v7357_v29 }
0x115a   : > { %6025 = vrcp.f32 %v3182_v41 }
0x115b   : > { %5061 = vmatprep.mubr.msk.f32.mxu1 %vm672_vm2, %v3197_v5 }
0x115c   : > { %5062 = vmatmul.mubr.msk.f32.vlgmr.msra.gmra.mrb[56].mxu1 %vm672_vm2, %v3198_v45  ;;  %v6022_v44 = vpop.eup %6021 }
0x115d   : > { %5478 = vmatpush3.bf16.xpose.msk.msra.mxu1 %vm6291_vm1, %v5473_v4  ;;  %v3179_v10 = vpop.xlane.xlu0 %3178  ;;  %v3200_v18 = vmul.f32 %v6022_v44, %v7363_v14  ;;  %v5786_v4 = vpop.permute.xlu1 %5785 }
0x115e   : > { %6027 = vrcp.f32 %v3179_v10  ;;  %5481 = vmatprep.subr.msk.bf16.mxu1 %vm6291_vm1, %v5479_v48  ;;  %v5788_v11 = vunpack.i.h.bf16 %v5786_v4 }
0x1160   : > { %v6024_v57 = vpop.eup %6023 }
0x1161   : > { %v5781_v9 = vpop.permute.xlu0 %5780  ;;  %v3199_v29 = vmul.f32 %v6024_v57, %v7367_v13  ;;  %v5787_v13 = vunpack.i.l.bf16 %v5786_v4  ;;  %v3361_v39 = vpop.permute.xlu1 %3360 }
0x1162   : > { %v5783_v1 = vunpack.i.h.bf16 %v5781_v9  ;;  %v5782_v32 = vunpack.i.l.bf16 %v5781_v9 }
0x1163   : > { %5064 = vmatprep.mubr.msk.f32.mxu1 %vm672_vm2, %v3199_v29  ;;  %v5491_v3 = vpack.c.bf16 %v5788_v11, %v5787_v13 }
0x1164   : > { %v5485_v42 = vpack.c.bf16 %v5783_v1, %v5782_v32  ;;  %5065 = vmatmul.mubr.msk.f32.gmra.mrb[58].mxu1 %vm672_vm2, %v3200_v18  ;;  %v6026_v2 = vpop.eup %6025 }
0x1165   : > { %5484 = vmatpush3.bf16.xpose.msk.msra.mxu1 %vm6291_vm1, %v5479_v48  ;;  %v3202_v14 = vmul.f32 %v6026_v2, %v7371_v7  ;;  %v3359_v7 = vpop.permute.xlu0 %3358 }
0x1166   : > { %5487 = vmatprep.subr.msk.bf16.mxu1 %vm6291_vm1, %v5485_v42 }
0x1168   : > { %v6028_v19 = vpop.eup %6027 }
0x1169   : > { %v3201_v34 = vmul.f32 %v6028_v19, %v7375_v61  ;;  %v3363_v50 = vpop.permute.xlu0 %3362 }
0x116b   : > { %5067 = vmatprep.mubr.msk.f32.mxu1 %vm672_vm2, %v3201_v34 }
0x116c   : > { %5068 = vmatmul.mubr.msk.f32.gmra.mrb[60].mxu1 %vm672_vm2, %v3202_v14 }
0x116d   : > { %5490 = vmatpush3.bf16.xpose.msk.msra.mxu1 %vm6291_vm1, %v5485_v42  ;;  %v3367_v33 = vpop.permute.xlu0 %3366 }
0x116e   : > { %5493 = vmatprep.subr.msk.bf16.mxu1 %vm6291_vm1, %v5491_v3 }
0x1175   : > { %5496 = vmatpush3.bf16.xpose.msk.msra.mxu1 %vm6291_vm1, %v5491_v3 }
0x118a   : > { %v3188_v43 = vpop.xlane.xlu1 %3187 }
0x118b   : > { %6029 = vrcp.f32 %v3188_v43 }
0x118e   : > { %v3185_v61 = vpop.xlane.xlu1 %3184 }
0x118f   : > { %6031 = vrcp.f32 %v3185_v61 }
0x1192   : > { %v3365_v8 = vpop.permute.xlu1 %3364 }
0x1195   : > { %v6030_v47 = vpop.eup %6029 }
0x1196   : > { %v3204_v25 = vmul.f32 %v6030_v47, %v7397_v27  ;;  %v3369_v20 = vpop.permute.xlu1 %3368 }
0x1199   : > { %v6032_v17 = vpop.eup %6031 }
0x119a   : > { %v3203_v15 = vmul.f32 %v6032_v17, %v7401_v37  ;;  %v3371_v37 = vpop.permute.xlu0 %3370  ;;  %v3373_v27 = vpop.permute.xlu1 %3372 }
0x119c   : > { %5070 = vmatprep.mubr.msk.f32.mxu1 %vm672_vm2, %v3203_v15 }
0x119d   : > { %5071 = vmatmul.mubr.msk.f32.gmra.mrb[62].mxu1 %vm672_vm2, %v3204_v25 }
0x119e   : > { %5089 = vmatprep.mubr.msk.f32.mxu1 %vm518_vm0, %v3359_v7 }
0x11a1   : > { %5090 = vmatmul.mubr.msk.f32.vlgmr.msra.gmra.mrb[64].mxu1 %vm518_vm0, %v3361_v39 }
0x11a2   : > { %5092 = vmatprep.mubr.msk.f32.mxu1 %vm518_vm0, %v3363_v50 }
0x11a5   : > { %5093 = vmatmul.mubr.msk.f32.gmra.mrb[66].mxu1 %vm518_vm0, %v3365_v8 }
0x11a6   : > { %5095 = vmatprep.mubr.msk.f32.mxu1 %vm518_vm0, %v3367_v33 }
0x11a9   : > { %5096 = vmatmul.mubr.msk.f32.gmra.mrb[68].mxu1 %vm518_vm0, %v3369_v20 }
0x11aa   : > { %5098 = vmatprep.mubr.msk.f32.mxu1 %vm518_vm0, %v3371_v37 }
0x11ad   : > { %5099 = vmatmul.mubr.msk.f32.gmra.mrb[70].mxu1 %vm518_vm0, %v3373_v27 }
0x122f   : > { %v7449_v46 = vpop.f32.mrb[56].mxu1 }
0x1230   : > { %v7451_v41 = vpop.f32.mrb[57].mxu1 }
0x1237   : > { %v7453_v5 = vpop.f32.mrb[58].mxu1 }
0x1238   : > { %v7455_v45 = vpop.f32.mrb[59].mxu1 }
0x123f   : > { %v7457_v48 = vpop.f32.mrb[60].mxu1 }
0x1240   : > { %v7459_v10 = vpop.f32.mrb[61].mxu1 }
0x1270   : > { %v7461_v44 = vpop.f32.mrb[62].mxu1 }
0x1271   : > { %v7463_v57 = vpop.f32.mrb[63].mxu1 }
0x1274   : > { %v5091_v9 = vpop.f32.mrb[64].mxu1 }
0x1275   : > { %v3488_v29 = vpop.f32.mrb[65].mxu1  ;;  %v3530_v1 = vsel %vm672_vm2, %v5091_v9, -inf }
0x1276   : > { %3531 = vmax.xlane.f32.xlu1 %v3530_v1  ;;  %v3527_v32 = vsel %vm672_vm2, %v3488_v29, -inf }
0x1277   : > { %3528 = vmax.xlane.f32.xlu0 %v3527_v32 }
0x1278   : > { %v5094_v18 = vpop.f32.mrb[66].mxu1 }
0x1279   : > { %v3498_v42 = vpop.f32.mrb[67].mxu1  ;;  %v3536_v4 = vsel %vm672_vm2, %v5094_v18, -inf }
0x127a   : > { %v3533_v13 = vsel %vm672_vm2, %v3498_v42, -inf }
0x127b   : > { %3537 = vmax.xlane.f32.xlu0 %v3536_v4 }
0x127c   : > { %v5097_v2 = vpop.f32.mrb[68].mxu1 }
0x127d   : > { %v3508_v19 = vpop.f32.mrb[69].mxu1  ;;  %v3542_v11 = vsel %vm672_vm2, %v5097_v2, -inf }
0x127e   : > { %3543 = vmax.xlane.f32.xlu1 %v3542_v11  ;;  %v3539_v39 = vsel %vm672_vm2, %v3508_v19, -inf }
0x127f   : > { %3534 = vmax.xlane.f32.xlu0 %v3533_v13 }
0x1280   : > { %v5100_v34 = vpop.f32.mrb[70].mxu1 }
0x1281   : > { %v3518_v14 = vpop.f32.mrb[71].mxu1  ;;  %v3548_v3 = vsel %vm672_vm2, %v5100_v34, -inf }
0x1282   : > { %3549 = vmax.xlane.f32.xlu1 %v3548_v3  ;;  %v3545_v43 = vsel %vm672_vm2, %v3518_v14, -inf }
0x1283   : > { %3540 = vmax.xlane.f32.xlu0 %v3539_v39 }
0x1287   : > { %3546 = vmax.xlane.f32.xlu0 %v3545_v43 }
0x1293   : > { %5795 = vrot.lane.b32.xlu1 %v7329_v49, %s6096_s6 }
0x129d   : > { %5790 = vrot.lane.b32.xlu0 %v7347_v40, %s6096_s6 }
0x1303   : > { %v3532_v61 = vpop.xlane.xlu1 %3531 }
0x1304   : > { %v3552_v7 = vsub.f32 %v5091_v9, %v3532_v61  ;;  %v3529_v47 = vpop.xlane.xlu0 %3528 }
0x1305   : > { %v3551_v17 = vsub.f32 %v3488_v29, %v3529_v47 }
0x1306   : > { %v3561_v15 = vmul.f32 1.442695, %v3552_v7 }
0x1307   : > { %v3559_v25 = vmul.f32 1.442695, %v3551_v17 }
0x1308   : > { %6033 = vpow2.f32 %v3561_v15  ;;  %v3538_v50 = vpop.xlane.xlu0 %3537 }
0x1309   : > { %6035 = vpow2.f32 %v3559_v25  ;;  %v3554_v8 = vsub.f32 %v5094_v18, %v3538_v50 }
0x130b   : > { %v3565_v33 = vmul.f32 1.442695, %v3554_v8  ;;  %v3544_v20 = vpop.xlane.xlu1 %3543 }
0x130c   : > { %v3556_v37 = vsub.f32 %v5097_v2, %v3544_v20  ;;  %v3535_v27 = vpop.xlane.xlu0 %3534 }
0x130d   : > { %6037 = vpow2.f32 %v3565_v33  ;;  %v3553_v1 = vsub.f32 %v3498_v42, %v3535_v27 }
0x130e   : > { %v3569_v49 = vmul.f32 1.442695, %v3556_v37 }
0x130f   : > { %v3563_v32 = vmul.f32 1.442695, %v3553_v1  ;;  %v3550_v4 = vpop.xlane.xlu1 %3549 }
0x1310   : > { %6039 = vpow2.f32 %v3569_v49  ;;  %v3558_v40 = vsub.f32 %v5100_v34, %v3550_v4  ;;  %v3541_v9 = vpop.xlane.xlu0 %3540 }
0x1311   : > { %6041 = vpow2.f32 %v3563_v32  ;;  %v3555_v29 = vsub.f32 %v3508_v19, %v3541_v9 }
0x1312   : > { %v7477_v11 = vpop.eup %6033  ;;  %v3573_v13 = vmul.f32 1.442695, %v3558_v40 }
0x1313   : > { %v7479_v3 = vpop.eup %6035  ;;  %v3567_v18 = vmul.f32 1.442695, %v3555_v29  ;;  %v3578_v2 = vsel %vm672_vm2, %v7477_v11, 0.0  ;;  %v5796_v19 = vpop.permute.xlu1 %5795  ;;  %v7794_v29 = vld [vmem:[#allocation3_spill] sm:$0xff] }
0x1314   : > { %6043 = vpow2.f32 %v3573_v13  ;;  %3579 = vadd.xlane.f32.xlu1 %v3578_v2  ;;  %v3547_v42 = vpop.xlane.xlu0 %3546  ;;  %v3575_v39 = vsel %vm672_vm2, %v7479_v3, 0.0  ;;  %v5798_v50 = vunpack.i.h.bf16 %v5796_v19  ;;  %v5797_v8 = vunpack.i.l.bf16 %v5796_v19 }
0x1315   : > { %6045 = vpow2.f32 %v3567_v18  ;;  %v3557_v34 = vsub.f32 %v3518_v14, %v3547_v42  ;;  %3576 = vadd.xlane.f32.xlu0 %v3575_v39 }
0x1316   : > { %v5501_v1 = vpack.c.bf16 %v5798_v50, %v5797_v8 }
0x1317   : > { %v7485_v43 = vpop.eup %6037  ;;  %v3571_v61 = vmul.f32 1.442695, %v3557_v34  ;;  %v7795_v34 = vld [vmem:[#allocation2_spill] sm:$0xff] }
0x1318   : > { %v5791_v7 = vpop.permute.xlu0 %5790  ;;  %v3584_v47 = vsel %vm672_vm2, %v7485_v43, 0.0 }
0x1319   : > { %6047 = vpow2.f32 %v3571_v61  ;;  %v5793_v17 = vunpack.i.h.bf16 %v5791_v7  ;;  %v5792_v15 = vunpack.i.l.bf16 %v5791_v7  ;;  %3585 = vadd.xlane.f32.xlu1 %v3584_v47  ;;  %v7796_v61 = vld [vmem:[#allocation5_spill] sm:$0xff] }
0x131a   : > { %v7489_v25 = vpop.eup %6039 }
0x131b   : > { %v7491_v33 = vpop.eup %6041  ;;  %v5497_v14 = vpack.c.bf16 %v5793_v17, %v5792_v15  ;;  %v3590_v20 = vsel %vm672_vm2, %v7489_v25, 0.0 }
0x131c   : > { %v3581_v37 = vsel %vm672_vm2, %v7491_v33, 0.0 }
0x131d   : > { %3591 = vadd.xlane.f32.xlu1 %v3590_v20  ;;  %3582 = vadd.xlane.f32.xlu0 %v3581_v37  ;;  %v7797_v20 = vld [vmem:[#allocation4_spill] sm:$0xff] }
0x131e   : > { %v7497_v27 = vpop.eup %6043  ;;  %5498 = vmatprep.subr.bf16.mxu0 %v5497_v14 }
0x131f   : > { %v7499_v49 = vpop.eup %6045  ;;  %5500 = vmatpush3.bf16.msra.mxu0 %v5497_v14  ;;  %v3596_v32 = vsel %vm672_vm2, %v7497_v27, 0.0 }
0x1320   : > { %5502 = vmatprep.subr.bf16.mxu0 %v5501_v1  ;;  %v3587_v4 = vsel %vm672_vm2, %v7499_v49, 0.0 }
0x1321   : > { %3597 = vadd.xlane.f32.xlu1 %v3596_v32  ;;  %3588 = vadd.xlane.f32.xlu0 %v3587_v4 }
0x1323   : > { %v7505_v40 = vpop.eup %6047  ;;  %5504 = vmatpush3.bf16.msra.mxu0 %v5501_v1  ;;  %v7798_v1 = vld [vmem:[#allocation7_spill] sm:$0xff] }
0x1324   : > { %v3593_v9 = vsel %vm672_vm2, %v7505_v40, 0.0 }
0x1325   : > { %3594 = vadd.xlane.f32.xlu1 %v3593_v9 }
0x1336   : > { %5805 = vrot.lane.b32.xlu1 %v7341_v35, %s6096_s6 }
0x1337   : > { %5800 = vrot.lane.b32.xlu0 %v7335_v26, %s6096_s6 }
0x133a   : > { %3778 = vrot.lane.b32.xlu1 %v6737_v51, %s6096_s6  ;;  %v7778_v51 = vld [vmem:[#allocation10_spill] sm:$0xff] }
0x133b   : > { %3776 = vrot.lane.b32.xlu0 %v6739_v52, %s6096_s6  ;;  %v7779_v52 = vld [vmem:[#allocation11_spill] sm:$0xff] }
0x133e   : > { %3782 = vrot.lane.b32.xlu1 %v6741_v55, %s6096_s6  ;;  %v7780_v55 = vld [vmem:[#allocation12_spill] sm:$0xff] }
0x133f   : > { %3780 = vrot.lane.b32.xlu0 %v6743_v56, %s6096_s6  ;;  %v7781_v56 = vld [vmem:[#allocation13_spill] sm:$0xff] }
0x1342   : > { %3786 = vrot.lane.b32.xlu1 %v6745_v54, %s6096_s6  ;;  %v7782_v54 = vld [vmem:[#allocation14_spill] sm:$0xff] }
0x1343   : > { %3784 = vrot.lane.b32.xlu0 %v6747_v53, %s6096_s6  ;;  %v7783_v53 = vld [vmem:[#allocation15_spill] sm:$0xff] }
0x1346   : > { %3790 = vrot.lane.b32.xlu1 %v6749_v63, %s6096_s6  ;;  %v7784_v63 = vld [vmem:[#allocation16_spill] sm:$0xff] }
0x1347   : > { %3788 = vrot.lane.b32.xlu0 %v6751_v6, %s6096_s6  ;;  %v7785_v6 = vld [vmem:[#allocation17_spill] sm:$0xff] }
0x134a   : > { %3810 = vrot.lane.b32.xlu1 %v6873_v38, %s6095_s5  ;;  %v7786_v38 = vld [vmem:[#allocation18_spill] sm:$0xff] }
0x134b   : > { %3808 = vrot.lane.b32.xlu0 %v6875_v31, %s6095_s5  ;;  %v7787_v31 = vld [vmem:[#allocation19_spill] sm:$0xff] }
0x134e   : > { %3814 = vrot.lane.b32.xlu1 %v6877_v59, %s6095_s5  ;;  %v7788_v59 = vld [vmem:[#allocation20_spill] sm:$0xff] }
0x134f   : > { %3812 = vrot.lane.b32.xlu0 %v6879_v58, %s6095_s5  ;;  %v7789_v58 = vld [vmem:[#allocation21_spill] sm:$0xff] }
0x1352   : > { %3818 = vrot.lane.b32.xlu1 %v6881_v28, %s6095_s5  ;;  %v7790_v28 = vld [vmem:[#allocation22_spill] sm:$0xff] }
0x1353   : > { %3816 = vrot.lane.b32.xlu0 %v6883_v21, %s6095_s5  ;;  %v7791_v21 = vld [vmem:[#allocation23_spill] sm:$0xff] }
0x1356   : > { %3822 = vrot.lane.b32.xlu1 %v6885_v60, %s6095_s5  ;;  %v7792_v60 = vld [vmem:[#allocation24_spill] sm:$0xff] }
0x1357   : > { %3820 = vrot.lane.b32.xlu0 %v6887_v23, %s6095_s5  ;;  %v7793_v23 = vld [vmem:[#allocation25_spill] sm:$0xff] }
0x135a   : > { %3842 = vrot.lane.b32.xlu1 %v7025_v0, %s6094_s30 }
0x135b   : > { %3840 = vrot.lane.b32.xlu0 %v7027_v16, %s6094_s30 }
0x135e   : > { %3846 = vrot.lane.b32.xlu1 %v7029_v62, %s6094_s30 }
0x135f   : > { %3844 = vrot.lane.b32.xlu0 %v7031_v22, %s6094_s30 }
0x1362   : > { %3850 = vrot.lane.b32.xlu1 %v7033_v24, %s6094_s30 }
0x1363   : > { %3848 = vrot.lane.b32.xlu0 %v7035_v36, %s6094_s30 }
0x1366   : > { %3854 = vrot.lane.b32.xlu1 %v7778_v51, %s6094_s30 }
0x1367   : > { %3852 = vrot.lane.b32.xlu0 %v7779_v52, %s6094_s30 }
0x136a   : > { %3874 = vrot.lane.b32.xlu1 %v7161_v30, %s6093_s29 }
0x136b   : > { %3872 = vrot.lane.b32.xlu0 %v7163_v12, %s6093_s29 }
0x136e   : > { %3878 = vrot.lane.b32.xlu1 %v7780_v55, %s6093_s29 }
0x136f   : > { %3876 = vrot.lane.b32.xlu0 %v7781_v56, %s6093_s29 }
0x1372   : > { %3882 = vrot.lane.b32.xlu1 %v7782_v54, %s6093_s29  ;;  %v7800_v54 = vld [vmem:[#allocation9_spill] sm:$0xff] }
0x1373   : > { %3880 = vrot.lane.b32.xlu0 %v7783_v53, %s6093_s29 }
0x1376   : > { %3886 = vrot.lane.b32.xlu1 %v7784_v63, %s6093_s29 }
0x1377   : > { %3884 = vrot.lane.b32.xlu0 %v7785_v6, %s6093_s29 }
0x137a   : > { %3906 = vrot.lane.b32.xlu1 %v7786_v38, %s6092_s28 }
0x137b   : > { %3904 = vrot.lane.b32.xlu0 %v7787_v31, %s6092_s28 }
0x137e   : > { %3910 = vrot.lane.b32.xlu1 %v7788_v59, %s6092_s28 }
0x137f   : > { %3908 = vrot.lane.b32.xlu0 %v7789_v58, %s6092_s28 }
0x1382   : > { %3914 = vrot.lane.b32.xlu1 %v7790_v28, %s6092_s28 }
0x1383   : > { %3912 = vrot.lane.b32.xlu0 %v7791_v21, %s6092_s28 }
0x1386   : > { %3918 = vrot.lane.b32.xlu1 %v7792_v60, %s6092_s28 }
0x1387   : > { %3916 = vrot.lane.b32.xlu0 %v7793_v23, %s6092_s28 }
0x138a   : > { %3938 = vrot.lane.b32.xlu1 %v7449_v46, %s6091_s27 }
0x138b   : > { %3936 = vrot.lane.b32.xlu0 %v7451_v41, %s6091_s27 }
0x138e   : > { %3942 = vrot.lane.b32.xlu1 %v7453_v5, %s6091_s27 }
0x138f   : > { %3940 = vrot.lane.b32.xlu0 %v7455_v45, %s6091_s27 }
0x1392   : > { %3946 = vrot.lane.b32.xlu1 %v7457_v48, %s6091_s27 }
0x1393   : > { %3944 = vrot.lane.b32.xlu0 %v7459_v10, %s6091_s27 }
0x1396   : > { %3950 = vrot.lane.b32.xlu1 %v7461_v44, %s6091_s27 }
0x1397   : > { %3948 = vrot.lane.b32.xlu0 %v7463_v57, %s6091_s27 }
0x13a1   : > { %v3580_v0 = vpop.xlane.xlu1 %3579 }
0x13a2   : > { %v3577_v16 = vpop.xlane.xlu0 %3576 }
0x13a3   : > { %6049 = vrcp.f32 %v3577_v16 }
0x13a4   : > { %6051 = vrcp.f32 %v3580_v0 }
0x13a6   : > { %v3586_v62 = vpop.xlane.xlu1 %3585 }
0x13aa   : > { %v3592_v22 = vpop.xlane.xlu1 %3591  ;;  %v3583_v24 = vpop.xlane.xlu0 %3582 }
0x13ab   : > { %6053 = vrcp.f32 %v3583_v24 }
0x13ac   : > { %6055 = vrcp.f32 %v3586_v62 }
0x13ad   : > { %v6050_v36 = vpop.eup %6049 }
0x13ae   : > { %v3598_v30 = vpop.xlane.xlu1 %3597  ;;  %v3589_v12 = vpop.xlane.xlu0 %3588  ;;  %v3607_v35 = vmul.f32 %v6050_v36, %v7479_v3 }
0x13af   : > { %6057 = vrcp.f32 %v3589_v12  ;;  %v6052_v18 = vpop.eup %6051 }
0x13b0   : > { %5117 = vmatprep.mubr.msk.f32.mxu0 %vm672_vm2, %v3607_v35  ;;  %6059 = vrcp.f32 %v3592_v22  ;;  %v3608_v47 = vmul.f32 %v6052_v18, %v7477_v11 }
0x13b2   : > { %v3595_v26 = vpop.xlane.xlu1 %3594  ;;  %v5801_v46 = vpop.permute.xlu0 %5800 }
0x13b3   : > { %v5803_v41 = vunpack.i.h.bf16 %v5801_v46  ;;  %v5802_v5 = vunpack.i.l.bf16 %v5801_v46  ;;  %6061 = vrcp.f32 %v3595_v26 }
0x13b4   : > { %6063 = vrcp.f32 %v3598_v30 }
0x13b5   : > { %v5505_v45 = vpack.c.bf16 %v5803_v41, %v5802_v5  ;;  %v6054_v39 = vpop.eup %6053 }
0x13b6   : > { %v5806_v48 = vpop.permute.xlu1 %5805  ;;  %v3777_v10 = vpop.permute.xlu0 %3776  ;;  %v3609_v8 = vmul.f32 %v6054_v39, %v7491_v33  ;;  %v7799_v33 = vld [vmem:[#allocation6_spill] sm:$0xff] }
0x13b7   : > { %v5808_v44 = vunpack.i.h.bf16 %v5806_v48  ;;  %v5807_v57 = vunpack.i.l.bf16 %v5806_v48  ;;  %v3992_v13 = vsel %vm518_vm0, %v7794_v29, %v3777_v10  ;;  %5506 = vmatprep.subr.bf16.mxu0 %v5505_v45  ;;  %v6056_v17 = vpop.eup %6055 }
0x13b8   : > { %5508 = vmatpush3.bf16.msra.mxu0 %v5505_v45  ;;  %v3610_v4 = vmul.f32 %v6056_v17, %v7485_v43 }
0x13b9   : > { %v5509_v3 = vpack.c.bf16 %v5808_v44, %v5807_v57  ;;  %v6058_v14 = vpop.eup %6057 }
0x13ba   : > { %v3779_v2 = vpop.permute.xlu1 %3778  ;;  %v3781_v42 = vpop.permute.xlu0 %3780  ;;  %v3611_v52 = vmul.f32 %v6058_v14, %v7499_v49  ;;  %v7801_v49 = vld [vmem:[#allocation8_spill] sm:$0xff] }
0x13bb   : > { %v3993_v19 = vsel %vm518_vm0, %v7795_v34, %v3779_v2  ;;  %v3994_v7 = vsel %vm518_vm0, %v7796_v61, %v3781_v42  ;;  %5510 = vmatprep.subr.bf16.mxu0 %v5509_v3  ;;  %v6060_v9 = vpop.eup %6059 }
0x13bc   : > { %5512 = vmatpush3.bf16.msra.mxu0 %v5509_v3  ;;  %v3612_v63 = vmul.f32 %v6060_v9, %v7489_v25 }
0x13bd   : > { %v6062_v55 = vpop.eup %6061 }
0x13be   : > { %v3783_v15 = vpop.permute.xlu1 %3782  ;;  %v3785_v50 = vpop.permute.xlu0 %3784  ;;  %v3613_v31 = vmul.f32 %v6062_v55, %v7505_v40 }
0x13bf   : > { %v3995_v37 = vsel %vm518_vm0, %v7797_v20, %v3783_v15  ;;  %v3996_v32 = vsel %vm518_vm0, %v7798_v1, %v3785_v50  ;;  %5118 = vmatmul.mubr.msk.f32.vlgmr.msra.gmra.mrb[72].mxu0 %vm672_vm2, %v3608_v47  ;;  %v6064_v43 = vpop.eup %6063 }
0x13c0   : > { %5120 = vmatprep.mubr.msk.f32.mxu0 %vm672_vm2, %v3609_v8  ;;  %v3614_v28 = vmul.f32 %v6064_v43, %v7497_v27 }
0x13c2   : > { %v3787_v11 = vpop.permute.xlu1 %3786  ;;  %v3789_v51 = vpop.permute.xlu0 %3788 }
0x13c3   : > { %v3997_v56 = vsel %vm518_vm0, %v7799_v33, %v3787_v11  ;;  %v3998_v53 = vsel %vm518_vm0, %v7800_v54, %v3789_v51  ;;  %5121 = vmatmul.mubr.msk.f32.gmra.mrb[74].mxu0 %vm672_vm2, %v3610_v4 }
0x13c4   : > { %5123 = vmatprep.mubr.msk.f32.mxu0 %vm672_vm2, %v3611_v52 }
0x13c6   : > { %v3791_v6 = vpop.permute.xlu1 %3790  ;;  %v3809_v38 = vpop.permute.xlu0 %3808 }
0x13c7   : > { %v3999_v59 = vsel %vm518_vm0, %v7801_v49, %v3791_v6  ;;  %v7638_v58 = vsel %vm4000_vm3, %v3992_v13, %v3809_v38  ;;  %5124 = vmatmul.mubr.msk.f32.gmra.mrb[76].mxu0 %vm672_vm2, %v3612_v63 }
0x13c8   : > { %5126 = vmatprep.mubr.msk.f32.mxu0 %vm672_vm2, %v3613_v31 }
0x13ca   : > { %v3811_v21 = vpop.permute.xlu1 %3810  ;;  %v3813_v60 = vpop.permute.xlu0 %3812 }
0x13cb   : > { %v4002_v25 = vsel %vm4000_vm3, %v3993_v19, %v3811_v21  ;;  %v7645_v23 = vsel %vm4000_vm3, %v3994_v7, %v3813_v60  ;;  %5127 = vmatmul.mubr.msk.f32.gmra.mrb[78].mxu0 %vm672_vm2, %v3614_v28 }
0x13ce   : > { %v3815_v40 = vpop.permute.xlu1 %3814  ;;  %v3817_v0 = vpop.permute.xlu0 %3816 }
0x13cf   : > { %v7649_v16 = vsel %vm4000_vm3, %v3995_v37, %v3815_v40  ;;  %v7652_v62 = vsel %vm4000_vm3, %v3996_v32, %v3817_v0 }
0x13d2   : > { %v3819_v22 = vpop.permute.xlu1 %3818  ;;  %v3821_v24 = vpop.permute.xlu0 %3820 }
0x13d3   : > { %v7655_v27 = vsel %vm4000_vm3, %v3997_v56, %v3819_v22  ;;  %v7658_v36 = vsel %vm4000_vm3, %v3998_v53, %v3821_v24 }
0x13d6   : > { %v3823_v30 = vpop.permute.xlu1 %3822  ;;  %v3841_v57 = vpop.permute.xlu0 %3840 }
0x13d7   : > { %v7661_v12 = vsel %vm4000_vm3, %v3999_v59, %v3823_v30  ;;  %v4010_v63 = vsel %vm4009_vm4, %v7638_v58, %v3841_v57 }
0x13da   : > { %v3843_v44 = vpop.permute.xlu1 %3842  ;;  %v3845_v13 = vpop.permute.xlu0 %3844 }
0x13db   : > { %v4011_v54 = vsel %vm4009_vm4, %v4002_v25, %v3843_v44  ;;  %v4012_v25 = vsel %vm4009_vm4, %v7645_v23, %v3845_v13 }
0x13de   : > { %v3847_v29 = vpop.permute.xlu1 %3846  ;;  %v3849_v18 = vpop.permute.xlu0 %3848 }
0x13df   : > { %v4013_v58 = vsel %vm4009_vm4, %v7649_v16, %v3847_v29 }
0x13e2   : > { %v3851_v3 = vpop.permute.xlu1 %3850  ;;  %v7673_v42 = vpop.permute.xlu0 %3852 }
0x13e3   : > { %v4015_v23 = vsel %vm4009_vm4, %v7655_v27, %v3851_v3 }
0x13e6   : > { %v7671_v2 = vpop.permute.xlu1 %3854  ;;  %v3873_v34 = vpop.permute.xlu0 %3872 }
0x13e7   : > { %v4018_v6 = vsel %vm672_vm2, %v4010_v63, %v3873_v34 }
0x13ea   : > { %v3875_v39 = vpop.permute.xlu1 %3874  ;;  %v3877_v61 = vpop.permute.xlu0 %3876 }
0x13eb   : > { %v4019_v43 = vsel %vm672_vm2, %v4011_v54, %v3875_v39  ;;  %v4020_v22 = vsel %vm672_vm2, %v4012_v25, %v3877_v61  ;;  %v4016_v39 = vsel %vm4009_vm4, %v7658_v36, %v7673_v42 }
0x13ee   : > { %v3879_v19 = vpop.permute.xlu1 %3878  ;;  %v3881_v47 = vpop.permute.xlu0 %3880 }
0x13ef   : > { %v4021_v40 = vsel %vm672_vm2, %v4013_v58, %v3879_v19 }
0x13f2   : > { %v3883_v7 = vpop.permute.xlu1 %3882  ;;  %v7677_v15 = vpop.permute.xlu0 %3884 }
0x13f6   : > { %v7675_v17 = vpop.permute.xlu1 %3886  ;;  %v3905_v8 = vpop.permute.xlu0 %3904 }
0x13f7   : > { %v4027_v31 = vsel %vm4026_vm5, %v4018_v6, %v3905_v8 }
0x13fa   : > { %v3907_v50 = vpop.permute.xlu1 %3906  ;;  %v3909_v20 = vpop.permute.xlu0 %3908 }
0x13fb   : > { %v4028_v38 = vsel %vm4026_vm5, %v4019_v43, %v3907_v50  ;;  %v4029_v16 = vsel %vm4026_vm5, %v4020_v22, %v3909_v20 }
0x13fe   : > { %v3911_v14 = vpop.permute.xlu1 %3910  ;;  %v3913_v1 = vpop.permute.xlu0 %3912 }
0x13ff   : > { %v4030_v24 = vsel %vm4026_vm5, %v4021_v40, %v3911_v14 }
0x1402   : > { %v3915_v37 = vpop.permute.xlu1 %3914  ;;  %v3917_v4 = vpop.permute.xlu0 %3916 }
0x1406   : > { %v3919_v32 = vpop.permute.xlu1 %3918  ;;  %v3937_v11 = vpop.permute.xlu0 %3936 }
0x1407   : > { %v4036_v28 = vsel %vm4035_vm6, %v4027_v31, %v3937_v11 }
0x140a   : > { %v3939_v9 = vpop.permute.xlu1 %3938  ;;  %v3941_v52 = vpop.permute.xlu0 %3940 }
0x140b   : > { %v4037_v49 = vsel %vm4035_vm6, %v4028_v38, %v3939_v9 }
0x140e   : > { %v3943_v51 = vpop.permute.xlu1 %3942  ;;  %v3945_v33 = vpop.permute.xlu0 %3944 }
0x140f   : > { %v4039_v30 = vsel %vm4035_vm6, %v4030_v24, %v3943_v51 }
0x1412   : > { %v3947_v55 = vpop.permute.xlu1 %3946  ;;  %v3949_v53 = vpop.permute.xlu0 %3948 }
0x1416   : > { %v3951_v56 = vpop.permute.xlu1 %3950 }
0x1492   : > { %v5119_v35 = vpop.f32.mrb[72].mxu0 }
0x1493   : > { %3970 = vrot.lane.b32.xlu1 %v5119_v35, %s6090_s26  ;;  %v3729_v26 = vpop.f32.mrb[73].mxu0 }
0x1494   : > { %3968 = vrot.lane.b32.xlu0 %v3729_v26, %s6090_s26  ;;  %v4038_v26 = vsel %vm4035_vm6, %v4029_v16, %v3941_v52 }
0x1496   : > { %v5122_v46 = vpop.f32.mrb[74].mxu0 }
0x1497   : > { %3974 = vrot.lane.b32.xlu1 %v5122_v46, %s6090_s26  ;;  %v3739_v41 = vpop.f32.mrb[75].mxu0 }
0x1498   : > { %3972 = vrot.lane.b32.xlu0 %v3739_v41, %s6090_s26 }
0x149a   : > { %v5125_v5 = vpop.f32.mrb[76].mxu0 }
0x149b   : > { %3978 = vrot.lane.b32.xlu1 %v5125_v5, %s6090_s26  ;;  %v3749_v45 = vpop.f32.mrb[77].mxu0  ;;  %v4014_v5 = vsel %vm4009_vm4, %v7652_v62, %v3849_v18  ;;  %v4017_v62 = vsel %vm4009_vm4, %v7661_v12, %v7671_v2  ;;  %v4024_v12 = vsel %vm672_vm2, %v4016_v39, %v7677_v15 }
0x149c   : > { %3976 = vrot.lane.b32.xlu0 %v3749_v45, %s6090_s26  ;;  %v4023_v45 = vsel %vm672_vm2, %v4015_v23, %v3883_v7  ;;  %v4025_v34 = vsel %vm672_vm2, %v4017_v62, %v7675_v17  ;;  %v4033_v61 = vsel %vm4026_vm5, %v4024_v12, %v3917_v4 }
0x149d   : > { %v4032_v44 = vsel %vm4026_vm5, %v4023_v45, %v3915_v37  ;;  %v4034_v2 = vsel %vm4026_vm5, %v4025_v34, %v3919_v32  ;;  %v4042_v50 = vsel %vm4035_vm6, %v4033_v61, %v3949_v53 }
0x149e   : > { %v5128_v48 = vpop.f32.mrb[78].mxu0  ;;  %v4041_v57 = vsel %vm4035_vm6, %v4032_v44, %v3947_v55  ;;  %v4043_v7 = vsel %vm4035_vm6, %v4034_v2, %v3951_v56 }
0x149f   : > { %3982 = vrot.lane.b32.xlu1 %v5128_v48, %s6090_s26  ;;  %v3759_v10 = vpop.f32.mrb[79].mxu0 }
0x14a0   : > { %3980 = vrot.lane.b32.xlu0 %v3759_v10, %s6090_s26  ;;  %v4022_v10 = vsel %vm672_vm2, %v4014_v5, %v3881_v47 }
0x14a1   : > { %v4031_v27 = vsel %vm4026_vm5, %v4022_v10, %v3913_v1 }
0x14a2   : > { %v4040_v13 = vsel %vm4035_vm6, %v4031_v27, %v3945_v33 }
0x1505   : > { %v3971_v59 = vpop.permute.xlu1 %3970 }
0x1506   : > { %v4046_v21 = vsel %vm4044_vm7, %v4037_v49, %v3971_v59  ;;  %v3969_v60 = vpop.permute.xlu0 %3968 }
0x1507   : > { %4054 = vst [vmem:[%s7689_s9 + $0x8] sm:$0xff] %v4046_v21  ;;  %v4045_v0 = vsel %vm4044_vm7, %v4036_v28, %v3969_v60 }
0x1508   : > { %4053 = vst [vmem:[%s7689_s9] sm:$0xff] %v4045_v0 }
0x1509   : > { %v3975_v35 = vpop.permute.xlu1 %3974 }
0x150a   : > { %v4048_v46 = vsel %vm4044_vm7, %v4039_v30, %v3975_v35  ;;  %v3973_v41 = vpop.permute.xlu0 %3972 }
0x150b   : > { %4056 = vst [vmem:[%s7689_s9 + $0x18] sm:$0xff] %v4048_v46  ;;  %v4047_v48 = vsel %vm4044_vm7, %v4038_v26, %v3973_v41 }
0x150c   : > { %4055 = vst [vmem:[%s7689_s9 + $0x10] sm:$0xff] %v4047_v48 }
0x150d   : > { %v3979_v29 = vpop.permute.xlu1 %3978 }
0x150e   : > { %v4050_v3 = vsel %vm4044_vm7, %v4041_v57, %v3979_v29  ;;  %v3977_v18 = vpop.permute.xlu0 %3976 }
0x150f   : > { %4058 = vst [vmem:[%s7689_s9 + $0x28] sm:$0xff] %v4050_v3  ;;  %v4049_v19 = vsel %vm4044_vm7, %v4040_v13, %v3977_v18 }
0x1510   : > { %4057 = vst [vmem:[%s7689_s9 + $0x20] sm:$0xff] %v4049_v19 }
0x1511   : > { %v3983_v47 = vpop.permute.xlu1 %3982 }
0x1512   : > { %v4052_v36 = vsel %vm4044_vm7, %v4043_v7, %v3983_v47  ;;  %v3981_v42 = vpop.permute.xlu0 %3980 }
0x1513   : > { %4060 = vst [vmem:[%s7689_s9 + $0x38] sm:$0xff] %v4052_v36  ;;  %v4051_v17 = vsel %vm4044_vm7, %v4042_v50, %v3981_v42 }
0x1514   : > { %4059 = vst [vmem:[%s7689_s9 + $0x30] sm:$0xff] %v4051_v17 }
0x1515 PF: > { %s15_s15 = sadd.s32 1, %s6087_s15  }
0x1516   : > { %p12_p4 = scmp.ge.s32.totalorder %s15_s15, 4  }
0x1518   :  { %14 = sbr.rel (!%p12_p4) target bundleno = 1 (0x1), region = 74 }

</bundles_post_ra>
